<compile_context>
chip_gen: v7x
topology: tpu7x:2x2x1
jax: 0.10.0
libtpu: 0.0.40
codegen_flags: <defaults>
</compile_context>

<pallas_src>
import functools
import math

import jax
import jax.numpy as jnp
from jax.experimental import pallas as pl
from jax.experimental.pallas import tpu as pltpu


# TPU-friendly toy config (lane-dense: hidden = n_heads * head_dim = 128).
CFG = dict(vocab=256, hidden=128, n_heads=4, head_dim=32, n_layers=2, ffn=256)
EPS = 1e-6
MAX_SEQ = 16     # KV-cache capacity (>= prefill_len + 1, multiple of 8 sublanes)


# ----------------------- single fused per-pass Pallas kernel -----------------------

def _pass_kernel(ids_ref, embed_ref, ln1_ref, wqkv_ref, wo_ref, ln2_ref,
                 wgu_ref, wd_ref, lnf_ref, lmw_ref, cos_ref, sina_ref, sinb_ref,
                 kc_in_ref, vc_in_ref,
                 logits_ref, tok_ref, kc_ref, vc_ref,
                 *, n_layers, n_heads, head_dim, ffn, past_len, seq, max_seq):
    """One full forward pass (prefill or decode), fully VMEM-resident."""
    hidden = n_heads * head_dim
    hd2 = head_dim // 2

    # ---- embedding gather: token ids come in through SMEM (scalar reads) ----
    rows = [embed_ref[pl.ds(ids_ref[0, i], 1), :] for i in range(seq)]
    x = jnp.concatenate(rows, axis=0) if seq > 1 else rows[0]           # [S,H] f32

    # Aliased KV-cache output buffers must be fully written before writeback.
    # TODO(synk): at realistic context lengths DMA only the `seq` new rows
    # (memory_space=pl.ANY + make_async_copy) instead of this full-cache copy.
    kc_ref[...] = kc_in_ref[...]
    vc_ref[...] = vc_in_ref[...]

    cos = cos_ref[...]
    sin_a = sina_ref[...]
    sin_b = sinb_ref[...]

    def rope(t):
        # Per-head rotate-half via two XLU lane rolls; the rotate-half sign and
        # the cross-head "wrong" contributions are folded into the precomputed
        # masked sin tables -> no MXU matmul, no f32x f32 dot.
        return (t * cos
                + pltpu.roll(t, hidden - hd2, axis=1) * sin_a
                + pltpu.roll(t, hd2, axis=1) * sin_b)

    # Causal mask generated in-kernel; also masks never-written cache rows.
    q_pos = past_len + jax.lax.broadcasted_iota(jnp.int32, (seq, max_seq), 0)
    k_pos = jax.lax.broadcasted_iota(jnp.int32, (seq, max_seq), 1)
    mask = jnp.where(k_pos <= q_pos, 0.0, -1e30).astype(jnp.float32)

    scale = 1.0 / math.sqrt(head_dim)

    for li in range(n_layers):                      # static unroll, n_layers = 2
        # ---------------- attention block ----------------
        var = jnp.mean(x * x, axis=-1, keepdims=True)
        h = (x * jax.lax.rsqrt(var + EPS) * ln1_ref[li]).astype(jnp.bfloat16)
        qkv = jnp.dot(h, wqkv_ref[li], preferred_element_type=jnp.float32)  # [S,3H]
        q = rope(qkv[:, :hidden])
        k = rope(qkv[:, hidden:2 * hidden])
        v = qkv[:, 2 * hidden:]

        # In-place bf16 KV-cache append (cache HBM buffers aliased in -> out).
        kc_ref[li, past_len:past_len + seq, :] = k.astype(jnp.bfloat16)
        vc_ref[li, past_len:past_len + seq, :] = v.astype(jnp.bfloat16)
        k_all = kc_ref[li]                                           # [T,H] bf16
        v_all = vc_ref[li]

        # TODO(synk): for realistic S/T replace with a flash-attention grid and
        # batch the heads with one einsum; at T<=16 the scores are one vreg.
        head_outs = []
        for hh in range(n_heads):                   # static unroll, n_heads = 4
            sl = slice(hh * head_dim, (hh + 1) * head_dim)
            s = jax.lax.dot_general(q[:, sl].astype(jnp.bfloat16), k_all[:, sl],
                                    (((1,), (1,)), ((), ())),
                                    preferred_element_type=jnp.float32)  # [S,T]
            s = s * scale + mask
            m = jnp.max(s, axis=-1, keepdims=True)
            p = jnp.exp(s - m)
            p = p / jnp.sum(p, axis=-1, keepdims=True)   # exact: argmax-faithful
            head_outs.append(jnp.dot(p.astype(jnp.bfloat16), v_all[:, sl],
                                     preferred_element_type=jnp.float32))
        attn = jnp.concatenate(head_outs, axis=-1).astype(jnp.bfloat16)   # [S,H]
        x = x + jnp.dot(attn, wo_ref[li], preferred_element_type=jnp.float32)

        # ---------------- MLP block ----------------
        var = jnp.mean(x * x, axis=-1, keepdims=True)
        h = (x * jax.lax.rsqrt(var + EPS) * ln2_ref[li]).astype(jnp.bfloat16)
        gu = jnp.dot(h, wgu_ref[li], preferred_element_type=jnp.float32)   # [S,2F]
        g = gu[:, :ffn]
        u = gu[:, ffn:]
        act = (g * jax.nn.sigmoid(g) * u).astype(jnp.bfloat16)      # SiLU on EUP
        x = x + jnp.dot(act, wd_ref[li], preferred_element_type=jnp.float32)

    # ---- final RMSNorm + lm_head on the LAST token only + fused argmax ----
    x_last = x[seq - 1:seq, :]
    var = jnp.mean(x_last * x_last, axis=-1, keepdims=True)
    h = (x_last * jax.lax.rsqrt(var + EPS) * lnf_ref[...]).astype(jnp.bfloat16)
    logits = jnp.dot(h, lmw_ref[...], preferred_element_type=jnp.float32)  # [1,V]
    logits_ref[...] = logits

    vocab = logits.shape[1]
    m = jnp.max(logits, axis=-1, keepdims=True)
    idx = jax.lax.broadcasted_iota(jnp.int32, logits.shape, 1)
    cand = jnp.where(logits == m, idx, vocab)          # first-max tie-break
    tok_ref[...] = jnp.min(cand, axis=-1, keepdims=True).astype(jnp.int32)


def vicuna_pass(params, ids, cos, sin_a, sin_b, kc, vc, past_len, cfg):
    """One fused forward pass: returns (last-token logits, argmax token, kc, vc)."""
    seq = ids.shape[1]
    L, h, f, v = cfg['n_layers'], cfg['hidden'], cfg['ffn'], cfg['vocab']
    nh, hd = cfg['n_heads'], cfg['head_dim']

    flops = L * (2 * seq * h * 3 * h + 2 * seq * h * h + 4 * seq * MAX_SEQ * h
                 + 2 * seq * h * 2 * f + 2 * seq * f * h) + 2 * h * v
    trans = L * (nh * seq * MAX_SEQ + seq * f)
    bytes_acc = (4 * params['embed'].size
                 + 2 * (params['wqkv'].size + params['wo'].size + params['wgu'].size
                        + params['wd'].size + params['lm_head'].size)
                 + 4 * kc.size + 4 * seq * h + 4 * v)
    cost = pl.CostEstimate(flops=int(flops), transcendentals=int(trans),
                           bytes_accessed=int(bytes_acc))

    smem = pl.BlockSpec(memory_space=pltpu.MemorySpace.SMEM)
    vmem = pl.BlockSpec(memory_space=pltpu.MemorySpace.VMEM)

    return pl.pallas_call(
        functools.partial(_pass_kernel, n_layers=L, n_heads=nh, head_dim=hd,
                          ffn=f, past_len=past_len, seq=seq, max_seq=MAX_SEQ),
        out_shape=(jax.ShapeDtypeStruct((1, v), jnp.float32),     # last-token logits
                   jax.ShapeDtypeStruct((1, 1), jnp.int32),       # fused argmax token
                   jax.ShapeDtypeStruct(kc.shape, kc.dtype),      # updated K cache
                   jax.ShapeDtypeStruct(vc.shape, vc.dtype)),     # updated V cache
        in_specs=[smem] + [vmem] * 14,
        out_specs=(vmem, vmem, vmem, vmem),
        input_output_aliases={13: 2, 14: 3},       # KV caches updated in place
        cost_estimate=cost,
    )(ids, params['embed'], params['ln1'], params['wqkv'], params['wo'],
      params['ln2'], params['wgu'], params['wd'], params['ln_f'],
      params['lm_head'], cos, sin_a, sin_b, kc, vc)


# ----------------------------- model glue (plain JAX) -----------------------------

def init_params(key, cfg):
    h, f, L, v = cfg['hidden'], cfg['ffn'], cfg['n_layers'], cfg['vocab']

    def w(k, shape, scale=0.05):
        return scale * jax.random.normal(k, shape, dtype=jnp.float32)

    keys = jax.random.split(key, 2 + L * 7)
    wqkv, wo, wgu, wd = [], [], [], []
    for li in range(L):
        k = keys[2 + li * 7: 2 + (li + 1) * 7]
        wq_, wk_, wv_ = w(k[0], (h, h)), w(k[1], (h, h)), w(k[2], (h, h))
        wo_ = w(k[3], (h, h))
        wg_, wu_, wd_ = w(k[4], (h, f)), w(k[5], (h, f)), w(k[6], (f, h))
        wqkv.append(jnp.concatenate([wq_, wk_, wv_], axis=1))
        wo.append(wo_)
        wgu.append(jnp.concatenate([wg_, wu_], axis=1))
        wd.append(wd_)
    return {
        'embed': w(keys[0], (v, h)),                                 # f32 [V,H]
        'ln1': jnp.ones((L, 1, h), jnp.float32),
        'ln2': jnp.ones((L, 1, h), jnp.float32),
        'ln_f': jnp.ones((1, h), jnp.float32),
        'wqkv': jnp.stack(wqkv).astype(jnp.bfloat16),                # [L,H,3H]
        'wo': jnp.stack(wo).astype(jnp.bfloat16),                    # [L,H,H]
        'wgu': jnp.stack(wgu).astype(jnp.bfloat16),                  # [L,H,2F]
        'wd': jnp.stack(wd).astype(jnp.bfloat16),                    # [L,F,H]
        'lm_head': w(keys[1], (h, v)).astype(jnp.bfloat16),          # [H,V]
    }


def rope_tables(positions, cfg, theta=10000.0):
    """cos plus two masked/signed sin tables matching the in-kernel XLU rolls."""
    hd, nh = cfg['head_dim'], cfg['n_heads']
    inv_freq = 1.0 / (theta ** (jnp.arange(0, hd, 2, dtype=jnp.float32) / hd))
    freqs = positions.astype(jnp.float32)[:, None] * inv_freq[None, :]   # [S,hd/2]
    emb = jnp.concatenate([freqs, freqs], axis=-1)                       # [S,hd]
    cos = jnp.tile(jnp.cos(emb), (1, nh))                                # [S,nh*hd]
    sin = jnp.sin(emb)
    first_half = (jnp.arange(hd) < hd // 2)[None, :]
    sin_a = jnp.tile(jnp.where(first_half, -sin, 0.0), (1, nh))  # pairs roll(+H-hd/2)
    sin_b = jnp.tile(jnp.where(first_half, 0.0, sin), (1, nh))   # pairs roll(+hd/2)
    return cos, sin_a, sin_b


def combined_forward(params_first, params_second, input_ids, cfg):
    seq = input_ids.shape[1]
    L, h, nh, hd = cfg['n_layers'], cfg['hidden'], cfg['n_heads'], cfg['head_dim']
    kc = jnp.zeros((L, MAX_SEQ, h), jnp.bfloat16)
    vc = jnp.zeros((L, MAX_SEQ, h), jnp.bfloat16)

    # --- FirstVicuna: prefill over the prompt (last-token argmax fused in-kernel) ---
    cos, sin_a, sin_b = rope_tables(jnp.arange(seq), cfg)
    _, token, kc, vc = vicuna_pass(params_first, input_ids.astype(jnp.int32),
                                   cos, sin_a, sin_b, kc, vc, 0, cfg)

    # --- SecondVicuna: single-token decode against the in-place KV cache ---
    cos1, sin_a1, sin_b1 = rope_tables(jnp.arange(seq, seq + 1), cfg)
    logits2, _, kc, vc = vicuna_pass(params_second, token,
                                     cos1, sin_a1, sin_b1, kc, vc, seq, cfg)

    total = seq + 1
    return_vals = [logits2[None]]                                    # [1,1,vocab]
    for li in range(L):                                              # HF KV layout
        k_hf = (kc[li, :total].astype(jnp.float32)
                .reshape(total, nh, hd).transpose(1, 0, 2)[None])
        v_hf = (vc[li, :total].astype(jnp.float32)
                .reshape(total, nh, hd).transpose(1, 0, 2)[None])
        return_vals.append(k_hf)
        return_vals.append(v_hf)
    return tuple(return_vals)


# ----------------------------------- main -----------------------------------

if __name__ == "__main__":
    key = jax.random.PRNGKey(0)
    # FirstVicuna and SecondVicuna share the same checkpoint path in the spec,
    # so they share one deterministic parameter set here.
    params = init_params(key, CFG)

    seq = 8
    input_ids = jax.random.randint(jax.random.PRNGKey(0), (1, seq), 0, CFG['vocab'],
                                   dtype=jnp.int32)

    fwd = jax.jit(functools.partial(combined_forward, params, params, cfg=CFG))
    out = jax.block_until_ready(fwd(input_ids))

    # sanity: logits [1,1,vocab]; per-layer kv [1, n_heads, seq+1, head_dim]
    assert out[0].shape == (1, 1, CFG['vocab'])
    assert out[1].shape == (1, CFG['n_heads'], seq + 1, CFG['head_dim'])
    assert len(out) == 1 + 2 * CFG['n_layers']
    print("KERNEL_OK")
</pallas_src>

<mosaic_0001>
module attributes {stable_mosaic.version = 11 : i64} {
  func.func @_pass_kernel(%arg0: memref<1x8xi32, #tpu.memory_space<smem>>, %arg1: memref<256x128xf32, #tpu.memory_space<vmem>>, %arg2: memref<2x1x128xf32, #tpu.memory_space<vmem>>, %arg3: memref<2x128x384xbf16, #tpu.memory_space<vmem>>, %arg4: memref<2x128x128xbf16, #tpu.memory_space<vmem>>, %arg5: memref<2x1x128xf32, #tpu.memory_space<vmem>>, %arg6: memref<2x128x512xbf16, #tpu.memory_space<vmem>>, %arg7: memref<2x256x128xbf16, #tpu.memory_space<vmem>>, %arg8: memref<1x128xf32, #tpu.memory_space<vmem>>, %arg9: memref<128x256xbf16, #tpu.memory_space<vmem>>, %arg10: memref<8x128xf32, #tpu.memory_space<vmem>>, %arg11: memref<8x128xf32, #tpu.memory_space<vmem>>, %arg12: memref<8x128xf32, #tpu.memory_space<vmem>>, %arg13: memref<2x16x128xbf16, #tpu.memory_space<vmem>>, %arg14: memref<2x16x128xbf16, #tpu.memory_space<vmem>>, %arg15: memref<1x256xf32, #tpu.memory_space<vmem>>, %arg16: memref<1x1xi32, #tpu.memory_space<vmem>>, %arg17: memref<2x16x128xbf16, #tpu.memory_space<vmem>>, %arg18: memref<2x16x128xbf16, #tpu.memory_space<vmem>>) attributes {dimension_semantics = [], scalar_prefetch = 0 : i64, scratch_operands = 0 : i64, tpu.core_type = #tpu.core_type<tc>} {
    %c0 = arith.constant 0 : index
    %c0_0 = arith.constant 0 : index
    %0 = memref.load %arg0[%c0, %c0_0] : memref<1x8xi32, #tpu.memory_space<smem>>
    %1 = arith.index_cast %0 : i32 to index
    %c0_1 = arith.constant 0 : index
    %2 = vector.load %arg1[%1, %c0_1] : memref<256x128xf32, #tpu.memory_space<vmem>>, vector<1x128xf32>
    %c0_2 = arith.constant 0 : index
    %c1 = arith.constant 1 : index
    %3 = memref.load %arg0[%c0_2, %c1] : memref<1x8xi32, #tpu.memory_space<smem>>
    %4 = arith.index_cast %3 : i32 to index
    %c0_3 = arith.constant 0 : index
    %5 = vector.load %arg1[%4, %c0_3] : memref<256x128xf32, #tpu.memory_space<vmem>>, vector<1x128xf32>
    %c0_4 = arith.constant 0 : index
    %c2 = arith.constant 2 : index
    %6 = memref.load %arg0[%c0_4, %c2] : memref<1x8xi32, #tpu.memory_space<smem>>
    %7 = arith.index_cast %6 : i32 to index
    %c0_5 = arith.constant 0 : index
    %8 = vector.load %arg1[%7, %c0_5] : memref<256x128xf32, #tpu.memory_space<vmem>>, vector<1x128xf32>
    %c0_6 = arith.constant 0 : index
    %c3 = arith.constant 3 : index
    %9 = memref.load %arg0[%c0_6, %c3] : memref<1x8xi32, #tpu.memory_space<smem>>
    %10 = arith.index_cast %9 : i32 to index
    %c0_7 = arith.constant 0 : index
    %11 = vector.load %arg1[%10, %c0_7] : memref<256x128xf32, #tpu.memory_space<vmem>>, vector<1x128xf32>
    %c0_8 = arith.constant 0 : index
    %c4 = arith.constant 4 : index
    %12 = memref.load %arg0[%c0_8, %c4] : memref<1x8xi32, #tpu.memory_space<smem>>
    %13 = arith.index_cast %12 : i32 to index
    %c0_9 = arith.constant 0 : index
    %14 = vector.load %arg1[%13, %c0_9] : memref<256x128xf32, #tpu.memory_space<vmem>>, vector<1x128xf32>
    %c0_10 = arith.constant 0 : index
    %c5 = arith.constant 5 : index
    %15 = memref.load %arg0[%c0_10, %c5] : memref<1x8xi32, #tpu.memory_space<smem>>
    %16 = arith.index_cast %15 : i32 to index
    %c0_11 = arith.constant 0 : index
    %17 = vector.load %arg1[%16, %c0_11] : memref<256x128xf32, #tpu.memory_space<vmem>>, vector<1x128xf32>
    %c0_12 = arith.constant 0 : index
    %c6 = arith.constant 6 : index
    %18 = memref.load %arg0[%c0_12, %c6] : memref<1x8xi32, #tpu.memory_space<smem>>
    %19 = arith.index_cast %18 : i32 to index
    %c0_13 = arith.constant 0 : index
    %20 = vector.load %arg1[%19, %c0_13] : memref<256x128xf32, #tpu.memory_space<vmem>>, vector<1x128xf32>
    %c0_14 = arith.constant 0 : index
    %c7 = arith.constant 7 : index
    %21 = memref.load %arg0[%c0_14, %c7] : memref<1x8xi32, #tpu.memory_space<smem>>
    %22 = arith.index_cast %21 : i32 to index
    %c0_15 = arith.constant 0 : index
    %23 = vector.load %arg1[%22, %c0_15] : memref<256x128xf32, #tpu.memory_space<vmem>>, vector<1x128xf32>
    %24 = tpu.concatenate %2, %5, %8, %11, %14, %17, %20, %23 in 0 : vector<1x128xf32>, vector<1x128xf32>, vector<1x128xf32>, vector<1x128xf32>, vector<1x128xf32>, vector<1x128xf32>, vector<1x128xf32>, vector<1x128xf32> -> vector<8x128xf32>
    %c0_16 = arith.constant 0 : index
    %c0_17 = arith.constant 0 : index
    %c0_18 = arith.constant 0 : index
    %25 = vector.load %arg13[%c0_16, %c0_17, %c0_18] : memref<2x16x128xbf16, #tpu.memory_space<vmem>>, vector<2x16x128xbf16>
    %c0_19 = arith.constant 0 : index
    %c0_20 = arith.constant 0 : index
    %c0_21 = arith.constant 0 : index
    %26 = vector.load %arg17[%c0_19, %c0_20, %c0_21] : memref<2x16x128xbf16, #tpu.memory_space<vmem>>, vector<2x16x128xbf16>
    tpu.vector_store %arg17[%c0_19, %c0_20, %c0_21], %25 {strides = array<i32>} : memref<2x16x128xbf16, #tpu.memory_space<vmem>>, vector<2x16x128xbf16>,
    %c0_22 = arith.constant 0 : index
    %c0_23 = arith.constant 0 : index
    %c0_24 = arith.constant 0 : index
    %27 = vector.load %arg14[%c0_22, %c0_23, %c0_24] : memref<2x16x128xbf16, #tpu.memory_space<vmem>>, vector<2x16x128xbf16>
    %c0_25 = arith.constant 0 : index
    %c0_26 = arith.constant 0 : index
    %c0_27 = arith.constant 0 : index
    %28 = vector.load %arg18[%c0_25, %c0_26, %c0_27] : memref<2x16x128xbf16, #tpu.memory_space<vmem>>, vector<2x16x128xbf16>
    tpu.vector_store %arg18[%c0_25, %c0_26, %c0_27], %27 {strides = array<i32>} : memref<2x16x128xbf16, #tpu.memory_space<vmem>>, vector<2x16x128xbf16>,
    %c0_28 = arith.constant 0 : index
    %c0_29 = arith.constant 0 : index
    %29 = vector.load %arg10[%c0_28, %c0_29] : memref<8x128xf32, #tpu.memory_space<vmem>>, vector<8x128xf32>
    %c0_30 = arith.constant 0 : index
    %c0_31 = arith.constant 0 : index
    %30 = vector.load %arg11[%c0_30, %c0_31] : memref<8x128xf32, #tpu.memory_space<vmem>>, vector<8x128xf32>
    %c0_32 = arith.constant 0 : index
    %c0_33 = arith.constant 0 : index
    %31 = vector.load %arg12[%c0_32, %c0_33] : memref<8x128xf32, #tpu.memory_space<vmem>>, vector<8x128xf32>
    %32 = tpu.iota {dimensions = array<i32: 0>} : vector<8x16xi32>
    %c0_i32 = arith.constant 0 : i32
    %33 = vector.broadcast %c0_i32 : i32 to vector<8x16xi32>
    %34 = arith.addi %33, %32 : vector<8x16xi32>
    %35 = tpu.iota {dimensions = array<i32: 1>} : vector<8x16xi32>
    %36 = arith.cmpi sle, %35, %34 : vector<8x16xi32>
    %cst = arith.constant 0.000000e+00 : f32
    %cst_34 = arith.constant -1.000000e+30 : f32
    %37 = vector.broadcast %cst : f32 to vector<8x16xf32>
    %38 = vector.broadcast %cst_34 : f32 to vector<8x16xf32>
    %39 = arith.select %36, %37, %38 : vector<8x16xi1>, vector<8x16xf32>
    %40 = arith.mulf %24, %24 : vector<8x128xf32>
    %cst_35 = arith.constant dense<0.000000e+00> : vector<8xf32>
    %41 = vector.multi_reduction <add>, %40, %cst_35 [1] : vector<8x128xf32> to vector<8xf32>
    %42 = vector.shape_cast %41 : vector<8xf32> to vector<8x1xf32>
    %cst_36 = arith.constant 1.280000e+02 : f32
    %43 = vector.broadcast %cst_36 : f32 to vector<8x1xf32>
    %44 = arith.divf %42, %43 : vector<8x1xf32>
    %cst_37 = arith.constant 9.99999997E-7 : f32
    %45 = vector.broadcast %cst_37 : f32 to vector<8x1xf32>
    %46 = arith.addf %44, %45 : vector<8x1xf32>
    %47 = math.rsqrt %46 : vector<8x1xf32>
    %48 = vector.broadcast %47 : vector<8x1xf32> to vector<8x128xf32>
    %49 = arith.mulf %24, %48 : vector<8x128xf32>
    %c0_38 = arith.constant 0 : index
    %c0_39 = arith.constant 0 : index
    %c0_40 = arith.constant 0 : index
    %50 = vector.load %arg2[%c0_38, %c0_39, %c0_40] : memref<2x1x128xf32, #tpu.memory_space<vmem>>, vector<1x1x128xf32>
    %51 = vector.shape_cast %50 : vector<1x1x128xf32> to vector<1x128xf32>
    %52 = vector.broadcast %51 : vector<1x128xf32> to vector<8x128xf32>
    %53 = arith.mulf %49, %52 : vector<8x128xf32>
    %54 = arith.truncf %53 : vector<8x128xf32> to vector<8x128xbf16>
    %c0_41 = arith.constant 0 : index
    %c0_42 = arith.constant 0 : index
    %c0_43 = arith.constant 0 : index
    %55 = vector.load %arg3[%c0_41, %c0_42, %c0_43] : memref<2x128x384xbf16, #tpu.memory_space<vmem>>, vector<1x128x384xbf16>
    %56 = vector.shape_cast %55 : vector<1x128x384xbf16> to vector<128x384xbf16>
    %cst_44 = arith.constant dense<0.000000e+00> : vector<8x384xf32>
    %57 = tpu.matmul %54, %56, %cst_44 {dimension_numbers = #tpu.dot_dimension_numbers<[1], [0], [0], [1], [0, 0, 1, 1], [], []>} : vector<8x128xbf16>, vector<128x384xbf16>, vector<8x384xf32> -> vector<8x384xf32>
    %58 = vector.extract_strided_slice %57 {offsets = [0, 0], sizes = [8, 128], strides = [1, 1]} : vector<8x384xf32> to vector<8x128xf32>
    %59 = arith.mulf %58, %29 : vector<8x128xf32>
    %c112_i32 = arith.constant 112 : i32
    %60 = tpu.dynamic_rotate %58 by %c112_i32 dim 1 : vector<8x128xf32>, i32 -> vector<8x128xf32>
    %61 = arith.mulf %60, %30 : vector<8x128xf32>
    %62 = arith.addf %59, %61 : vector<8x128xf32>
    %c16_i32 = arith.constant 16 : i32
    %63 = tpu.dynamic_rotate %58 by %c16_i32 dim 1 : vector<8x128xf32>, i32 -> vector<8x128xf32>
    %64 = arith.mulf %63, %31 : vector<8x128xf32>
    %65 = arith.addf %62, %64 : vector<8x128xf32>
    %66 = vector.extract_strided_slice %57 {offsets = [0, 128], sizes = [8, 128], strides = [1, 1]} : vector<8x384xf32> to vector<8x128xf32>
    %67 = arith.mulf %66, %29 : vector<8x128xf32>
    %c112_i32_45 = arith.constant 112 : i32
    %68 = tpu.dynamic_rotate %66 by %c112_i32_45 dim 1 : vector<8x128xf32>, i32 -> vector<8x128xf32>
    %69 = arith.mulf %68, %30 : vector<8x128xf32>
    %70 = arith.addf %67, %69 : vector<8x128xf32>
    %c16_i32_46 = arith.constant 16 : i32
    %71 = tpu.dynamic_rotate %66 by %c16_i32_46 dim 1 : vector<8x128xf32>, i32 -> vector<8x128xf32>
    %72 = arith.mulf %71, %31 : vector<8x128xf32>
    %73 = arith.addf %70, %72 : vector<8x128xf32>
    %74 = vector.extract_strided_slice %57 {offsets = [0, 256], sizes = [8, 128], strides = [1, 1]} : vector<8x384xf32> to vector<8x128xf32>
    %75 = arith.truncf %73 : vector<8x128xf32> to vector<8x128xbf16>
    %c0_47 = arith.constant 0 : index
    %c0_48 = arith.constant 0 : index
    %c0_49 = arith.constant 0 : index
    %76 = vector.load %arg17[%c0_47, %c0_48, %c0_49] : memref<2x16x128xbf16, #tpu.memory_space<vmem>>, vector<1x8x128xbf16>
    %77 = vector.shape_cast %76 : vector<1x8x128xbf16> to vector<8x128xbf16>
    %78 = vector.shape_cast %75 : vector<8x128xbf16> to vector<1x8x128xbf16>
    tpu.vector_store %arg17[%c0_47, %c0_48, %c0_49], %78 {strides = array<i32>} : memref<2x16x128xbf16, #tpu.memory_space<vmem>>, vector<1x8x128xbf16>,
    %79 = arith.truncf %74 : vector<8x128xf32> to vector<8x128xbf16>
    %c0_50 = arith.constant 0 : index
    %c0_51 = arith.constant 0 : index
    %c0_52 = arith.constant 0 : index
    %80 = vector.load %arg18[%c0_50, %c0_51, %c0_52] : memref<2x16x128xbf16, #tpu.memory_space<vmem>>, vector<1x8x128xbf16>
    %81 = vector.shape_cast %80 : vector<1x8x128xbf16> to vector<8x128xbf16>
    %82 = vector.shape_cast %79 : vector<8x128xbf16> to vector<1x8x128xbf16>
    tpu.vector_store %arg18[%c0_50, %c0_51, %c0_52], %82 {strides = array<i32>} : memref<2x16x128xbf16, #tpu.memory_space<vmem>>, vector<1x8x128xbf16>,
    %c0_53 = arith.constant 0 : index
    %c0_54 = arith.constant 0 : index
    %c0_55 = arith.constant 0 : index
    %83 = vector.load %arg17[%c0_53, %c0_54, %c0_55] : memref<2x16x128xbf16, #tpu.memory_space<vmem>>, vector<1x16x128xbf16>
    %84 = vector.shape_cast %83 : vector<1x16x128xbf16> to vector<16x128xbf16>
    %c0_56 = arith.constant 0 : index
    %c0_57 = arith.constant 0 : index
    %c0_58 = arith.constant 0 : index
    %85 = vector.load %arg18[%c0_56, %c0_57, %c0_58] : memref<2x16x128xbf16, #tpu.memory_space<vmem>>, vector<1x16x128xbf16>
    %86 = vector.shape_cast %85 : vector<1x16x128xbf16> to vector<16x128xbf16>
    %87 = vector.extract_strided_slice %65 {offsets = [0, 0], sizes = [8, 32], strides = [1, 1]} : vector<8x128xf32> to vector<8x32xf32>
    %88 = arith.truncf %87 : vector<8x32xf32> to vector<8x32xbf16>
    %89 = vector.extract_strided_slice %84 {offsets = [0, 0], sizes = [16, 32], strides = [1, 1]} : vector<16x128xbf16> to vector<16x32xbf16>
    %cst_59 = arith.constant dense<0.000000e+00> : vector<8x16xf32>
    %90 = tpu.matmul %88, %89, %cst_59 {dimension_numbers = #tpu.dot_dimension_numbers<[1], [1], [0], [0], [0, 0, 1, 0], [], []>} : vector<8x32xbf16>, vector<16x32xbf16>, vector<8x16xf32> -> vector<8x16xf32>
    %cst_60 = arith.constant 0.176776692 : f32
    %91 = vector.broadcast %cst_60 : f32 to vector<8x16xf32>
    %92 = arith.mulf %90, %91 : vector<8x16xf32>
    %93 = arith.addf %92, %39 : vector<8x16xf32>
    %cst_61 = arith.constant dense<0xFF800000> : vector<8xf32>
    %94 = vector.multi_reduction <maximumf>, %93, %cst_61 [1] : vector<8x16xf32> to vector<8xf32>
    %95 = vector.shape_cast %94 : vector<8xf32> to vector<8x1xf32>
    %96 = vector.broadcast %95 : vector<8x1xf32> to vector<8x16xf32>
    %97 = arith.subf %93, %96 : vector<8x16xf32>
    %98 = math.exp %97 : vector<8x16xf32>
    %cst_62 = arith.constant dense<0.000000e+00> : vector<8xf32>
    %99 = vector.multi_reduction <add>, %98, %cst_62 [1] : vector<8x16xf32> to vector<8xf32>
    %100 = vector.shape_cast %99 : vector<8xf32> to vector<8x1xf32>
    %101 = vector.broadcast %100 : vector<8x1xf32> to vector<8x16xf32>
    %102 = arith.divf %98, %101 : vector<8x16xf32>
    %103 = arith.truncf %102 : vector<8x16xf32> to vector<8x16xbf16>
    %104 = vector.extract_strided_slice %86 {offsets = [0, 0], sizes = [16, 32], strides = [1, 1]} : vector<16x128xbf16> to vector<16x32xbf16>
    %cst_63 = arith.constant dense<0.000000e+00> : vector<8x32xf32>
    %105 = tpu.matmul %103, %104, %cst_63 {dimension_numbers = #tpu.dot_dimension_numbers<[1], [0], [0], [1], [0, 0, 1, 1], [], []>} : vector<8x16xbf16>, vector<16x32xbf16>, vector<8x32xf32> -> vector<8x32xf32>
    %106 = vector.extract_strided_slice %65 {offsets = [0, 32], sizes = [8, 32], strides = [1, 1]} : vector<8x128xf32> to vector<8x32xf32>
    %107 = arith.truncf %106 : vector<8x32xf32> to vector<8x32xbf16>
    %108 = vector.extract_strided_slice %84 {offsets = [0, 32], sizes = [16, 32], strides = [1, 1]} : vector<16x128xbf16> to vector<16x32xbf16>
    %cst_64 = arith.constant dense<0.000000e+00> : vector<8x16xf32>
    %109 = tpu.matmul %107, %108, %cst_64 {dimension_numbers = #tpu.dot_dimension_numbers<[1], [1], [0], [0], [0, 0, 1, 0], [], []>} : vector<8x32xbf16>, vector<16x32xbf16>, vector<8x16xf32> -> vector<8x16xf32>
    %cst_65 = arith.constant 0.176776692 : f32
    %110 = vector.broadcast %cst_65 : f32 to vector<8x16xf32>
    %111 = arith.mulf %109, %110 : vector<8x16xf32>
    %112 = arith.addf %111, %39 : vector<8x16xf32>
    %cst_66 = arith.constant dense<0xFF800000> : vector<8xf32>
    %113 = vector.multi_reduction <maximumf>, %112, %cst_66 [1] : vector<8x16xf32> to vector<8xf32>
    %114 = vector.shape_cast %113 : vector<8xf32> to vector<8x1xf32>
    %115 = vector.broadcast %114 : vector<8x1xf32> to vector<8x16xf32>
    %116 = arith.subf %112, %115 : vector<8x16xf32>
    %117 = math.exp %116 : vector<8x16xf32>
    %cst_67 = arith.constant dense<0.000000e+00> : vector<8xf32>
    %118 = vector.multi_reduction <add>, %117, %cst_67 [1] : vector<8x16xf32> to vector<8xf32>
    %119 = vector.shape_cast %118 : vector<8xf32> to vector<8x1xf32>
    %120 = vector.broadcast %119 : vector<8x1xf32> to vector<8x16xf32>
    %121 = arith.divf %117, %120 : vector<8x16xf32>
    %122 = arith.truncf %121 : vector<8x16xf32> to vector<8x16xbf16>
    %123 = vector.extract_strided_slice %86 {offsets = [0, 32], sizes = [16, 32], strides = [1, 1]} : vector<16x128xbf16> to vector<16x32xbf16>
    %cst_68 = arith.constant dense<0.000000e+00> : vector<8x32xf32>
    %124 = tpu.matmul %122, %123, %cst_68 {dimension_numbers = #tpu.dot_dimension_numbers<[1], [0], [0], [1], [0, 0, 1, 1], [], []>} : vector<8x16xbf16>, vector<16x32xbf16>, vector<8x32xf32> -> vector<8x32xf32>
    %125 = vector.extract_strided_slice %65 {offsets = [0, 64], sizes = [8, 32], strides = [1, 1]} : vector<8x128xf32> to vector<8x32xf32>
    %126 = arith.truncf %125 : vector<8x32xf32> to vector<8x32xbf16>
    %127 = vector.extract_strided_slice %84 {offsets = [0, 64], sizes = [16, 32], strides = [1, 1]} : vector<16x128xbf16> to vector<16x32xbf16>
    %cst_69 = arith.constant dense<0.000000e+00> : vector<8x16xf32>
    %128 = tpu.matmul %126, %127, %cst_69 {dimension_numbers = #tpu.dot_dimension_numbers<[1], [1], [0], [0], [0, 0, 1, 0], [], []>} : vector<8x32xbf16>, vector<16x32xbf16>, vector<8x16xf32> -> vector<8x16xf32>
    %cst_70 = arith.constant 0.176776692 : f32
    %129 = vector.broadcast %cst_70 : f32 to vector<8x16xf32>
    %130 = arith.mulf %128, %129 : vector<8x16xf32>
    %131 = arith.addf %130, %39 : vector<8x16xf32>
    %cst_71 = arith.constant dense<0xFF800000> : vector<8xf32>
    %132 = vector.multi_reduction <maximumf>, %131, %cst_71 [1] : vector<8x16xf32> to vector<8xf32>
    %133 = vector.shape_cast %132 : vector<8xf32> to vector<8x1xf32>
    %134 = vector.broadcast %133 : vector<8x1xf32> to vector<8x16xf32>
    %135 = arith.subf %131, %134 : vector<8x16xf32>
    %136 = math.exp %135 : vector<8x16xf32>
    %cst_72 = arith.constant dense<0.000000e+00> : vector<8xf32>
    %137 = vector.multi_reduction <add>, %136, %cst_72 [1] : vector<8x16xf32> to vector<8xf32>
    %138 = vector.shape_cast %137 : vector<8xf32> to vector<8x1xf32>
    %139 = vector.broadcast %138 : vector<8x1xf32> to vector<8x16xf32>
    %140 = arith.divf %136, %139 : vector<8x16xf32>
    %141 = arith.truncf %140 : vector<8x16xf32> to vector<8x16xbf16>
    %142 = vector.extract_strided_slice %86 {offsets = [0, 64], sizes = [16, 32], strides = [1, 1]} : vector<16x128xbf16> to vector<16x32xbf16>
    %cst_73 = arith.constant dense<0.000000e+00> : vector<8x32xf32>
    %143 = tpu.matmul %141, %142, %cst_73 {dimension_numbers = #tpu.dot_dimension_numbers<[1], [0], [0], [1], [0, 0, 1, 1], [], []>} : vector<8x16xbf16>, vector<16x32xbf16>, vector<8x32xf32> -> vector<8x32xf32>
    %144 = vector.extract_strided_slice %65 {offsets = [0, 96], sizes = [8, 32], strides = [1, 1]} : vector<8x128xf32> to vector<8x32xf32>
    %145 = arith.truncf %144 : vector<8x32xf32> to vector<8x32xbf16>
    %146 = vector.extract_strided_slice %84 {offsets = [0, 96], sizes = [16, 32], strides = [1, 1]} : vector<16x128xbf16> to vector<16x32xbf16>
    %cst_74 = arith.constant dense<0.000000e+00> : vector<8x16xf32>
    %147 = tpu.matmul %145, %146, %cst_74 {dimension_numbers = #tpu.dot_dimension_numbers<[1], [1], [0], [0], [0, 0, 1, 0], [], []>} : vector<8x32xbf16>, vector<16x32xbf16>, vector<8x16xf32> -> vector<8x16xf32>
    %cst_75 = arith.constant 0.176776692 : f32
    %148 = vector.broadcast %cst_75 : f32 to vector<8x16xf32>
    %149 = arith.mulf %147, %148 : vector<8x16xf32>
    %150 = arith.addf %149, %39 : vector<8x16xf32>
    %cst_76 = arith.constant dense<0xFF800000> : vector<8xf32>
    %151 = vector.multi_reduction <maximumf>, %150, %cst_76 [1] : vector<8x16xf32> to vector<8xf32>
    %152 = vector.shape_cast %151 : vector<8xf32> to vector<8x1xf32>
    %153 = vector.broadcast %152 : vector<8x1xf32> to vector<8x16xf32>
    %154 = arith.subf %150, %153 : vector<8x16xf32>
    %155 = math.exp %154 : vector<8x16xf32>
    %cst_77 = arith.constant dense<0.000000e+00> : vector<8xf32>
    %156 = vector.multi_reduction <add>, %155, %cst_77 [1] : vector<8x16xf32> to vector<8xf32>
    %157 = vector.shape_cast %156 : vector<8xf32> to vector<8x1xf32>
    %158 = vector.broadcast %157 : vector<8x1xf32> to vector<8x16xf32>
    %159 = arith.divf %155, %158 : vector<8x16xf32>
    %160 = arith.truncf %159 : vector<8x16xf32> to vector<8x16xbf16>
    %161 = vector.extract_strided_slice %86 {offsets = [0, 96], sizes = [16, 32], strides = [1, 1]} : vector<16x128xbf16> to vector<16x32xbf16>
    %cst_78 = arith.constant dense<0.000000e+00> : vector<8x32xf32>
    %162 = tpu.matmul %160, %161, %cst_78 {dimension_numbers = #tpu.dot_dimension_numbers<[1], [0], [0], [1], [0, 0, 1, 1], [], []>} : vector<8x16xbf16>, vector<16x32xbf16>, vector<8x32xf32> -> vector<8x32xf32>
    %163 = tpu.concatenate %105, %124, %143, %162 in 1 : vector<8x32xf32>, vector<8x32xf32>, vector<8x32xf32>, vector<8x32xf32> -> vector<8x128xf32>
    %164 = arith.truncf %163 : vector<8x128xf32> to vector<8x128xbf16>
    %c0_79 = arith.constant 0 : index
    %c0_80 = arith.constant 0 : index
    %c0_81 = arith.constant 0 : index
    %165 = vector.load %arg4[%c0_79, %c0_80, %c0_81] : memref<2x128x128xbf16, #tpu.memory_space<vmem>>, vector<1x128x128xbf16>
    %166 = vector.shape_cast %165 : vector<1x128x128xbf16> to vector<128x128xbf16>
    %cst_82 = arith.constant dense<0.000000e+00> : vector<8x128xf32>
    %167 = tpu.matmul %164, %166, %cst_82 {dimension_numbers = #tpu.dot_dimension_numbers<[1], [0], [0], [1], [0, 0, 1, 1], [], []>} : vector<8x128xbf16>, vector<128x128xbf16>, vector<8x128xf32> -> vector<8x128xf32>
    %168 = arith.addf %24, %167 : vector<8x128xf32>
    %169 = arith.mulf %168, %168 : vector<8x128xf32>
    %cst_83 = arith.constant dense<0.000000e+00> : vector<8xf32>
    %170 = vector.multi_reduction <add>, %169, %cst_83 [1] : vector<8x128xf32> to vector<8xf32>
    %171 = vector.shape_cast %170 : vector<8xf32> to vector<8x1xf32>
    %cst_84 = arith.constant 1.280000e+02 : f32
    %172 = vector.broadcast %cst_84 : f32 to vector<8x1xf32>
    %173 = arith.divf %171, %172 : vector<8x1xf32>
    %cst_85 = arith.constant 9.99999997E-7 : f32
    %174 = vector.broadcast %cst_85 : f32 to vector<8x1xf32>
    %175 = arith.addf %173, %174 : vector<8x1xf32>
    %176 = math.rsqrt %175 : vector<8x1xf32>
    %177 = vector.broadcast %176 : vector<8x1xf32> to vector<8x128xf32>
    %178 = arith.mulf %168, %177 : vector<8x128xf32>
    %c0_86 = arith.constant 0 : index
    %c0_87 = arith.constant 0 : index
    %c0_88 = arith.constant 0 : index
    %179 = vector.load %arg5[%c0_86, %c0_87, %c0_88] : memref<2x1x128xf32, #tpu.memory_space<vmem>>, vector<1x1x128xf32>
    %180 = vector.shape_cast %179 : vector<1x1x128xf32> to vector<1x128xf32>
    %181 = vector.broadcast %180 : vector<1x128xf32> to vector<8x128xf32>
    %182 = arith.mulf %178, %181 : vector<8x128xf32>
    %183 = arith.truncf %182 : vector<8x128xf32> to vector<8x128xbf16>
    %c0_89 = arith.constant 0 : index
    %c0_90 = arith.constant 0 : index
    %c0_91 = arith.constant 0 : index
    %184 = vector.load %arg6[%c0_89, %c0_90, %c0_91] : memref<2x128x512xbf16, #tpu.memory_space<vmem>>, vector<1x128x512xbf16>
    %185 = vector.shape_cast %184 : vector<1x128x512xbf16> to vector<128x512xbf16>
    %cst_92 = arith.constant dense<0.000000e+00> : vector<8x512xf32>
    %186 = tpu.matmul %183, %185, %cst_92 {dimension_numbers = #tpu.dot_dimension_numbers<[1], [0], [0], [1], [0, 0, 1, 1], [], []>} : vector<8x128xbf16>, vector<128x512xbf16>, vector<8x512xf32> -> vector<8x512xf32>
    %187 = vector.extract_strided_slice %186 {offsets = [0, 0], sizes = [8, 256], strides = [1, 1]} : vector<8x512xf32> to vector<8x256xf32>
    %188 = vector.extract_strided_slice %186 {offsets = [0, 256], sizes = [8, 256], strides = [1, 1]} : vector<8x512xf32> to vector<8x256xf32>
    %189 = arith.negf %187 : vector<8x256xf32>
    %190 = math.exp %189 : vector<8x256xf32>
    %cst_93 = arith.constant 1.000000e+00 : f32
    %191 = vector.broadcast %cst_93 : f32 to vector<8x256xf32>
    %192 = arith.addf %191, %190 : vector<8x256xf32>
    %193 = arith.divf %191, %192 : vector<8x256xf32>
    %194 = arith.mulf %187, %193 : vector<8x256xf32>
    %195 = arith.mulf %194, %188 : vector<8x256xf32>
    %196 = arith.truncf %195 : vector<8x256xf32> to vector<8x256xbf16>
    %c0_94 = arith.constant 0 : index
    %c0_95 = arith.constant 0 : index
    %c0_96 = arith.constant 0 : index
    %197 = vector.load %arg7[%c0_94, %c0_95, %c0_96] : memref<2x256x128xbf16, #tpu.memory_space<vmem>>, vector<1x256x128xbf16>
    %198 = vector.shape_cast %197 : vector<1x256x128xbf16> to vector<256x128xbf16>
    %cst_97 = arith.constant dense<0.000000e+00> : vector<8x128xf32>
    %199 = tpu.matmul %196, %198, %cst_97 {dimension_numbers = #tpu.dot_dimension_numbers<[1], [0], [0], [1], [0, 0, 1, 1], [], []>} : vector<8x256xbf16>, vector<256x128xbf16>, vector<8x128xf32> -> vector<8x128xf32>
    %200 = arith.addf %168, %199 : vector<8x128xf32>
    %201 = arith.mulf %200, %200 : vector<8x128xf32>
    %cst_98 = arith.constant dense<0.000000e+00> : vector<8xf32>
    %202 = vector.multi_reduction <add>, %201, %cst_98 [1] : vector<8x128xf32> to vector<8xf32>
    %203 = vector.shape_cast %202 : vector<8xf32> to vector<8x1xf32>
    %cst_99 = arith.constant 1.280000e+02 : f32
    %204 = vector.broadcast %cst_99 : f32 to vector<8x1xf32>
    %205 = arith.divf %203, %204 : vector<8x1xf32>
    %cst_100 = arith.constant 9.99999997E-7 : f32
    %206 = vector.broadcast %cst_100 : f32 to vector<8x1xf32>
    %207 = arith.addf %205, %206 : vector<8x1xf32>
    %208 = math.rsqrt %207 : vector<8x1xf32>
    %209 = vector.broadcast %208 : vector<8x1xf32> to vector<8x128xf32>
    %210 = arith.mulf %200, %209 : vector<8x128xf32>
    %c1_101 = arith.constant 1 : index
    %c0_102 = arith.constant 0 : index
    %c0_103 = arith.constant 0 : index
    %211 = vector.load %arg2[%c1_101, %c0_102, %c0_103] : memref<2x1x128xf32, #tpu.memory_space<vmem>>, vector<1x1x128xf32>
    %212 = vector.shape_cast %211 : vector<1x1x128xf32> to vector<1x128xf32>
    %213 = vector.broadcast %212 : vector<1x128xf32> to vector<8x128xf32>
    %214 = arith.mulf %210, %213 : vector<8x128xf32>
    %215 = arith.truncf %214 : vector<8x128xf32> to vector<8x128xbf16>
    %c1_104 = arith.constant 1 : index
    %c0_105 = arith.constant 0 : index
    %c0_106 = arith.constant 0 : index
    %216 = vector.load %arg3[%c1_104, %c0_105, %c0_106] : memref<2x128x384xbf16, #tpu.memory_space<vmem>>, vector<1x128x384xbf16>
    %217 = vector.shape_cast %216 : vector<1x128x384xbf16> to vector<128x384xbf16>
    %cst_107 = arith.constant dense<0.000000e+00> : vector<8x384xf32>
    %218 = tpu.matmul %215, %217, %cst_107 {dimension_numbers = #tpu.dot_dimension_numbers<[1], [0], [0], [1], [0, 0, 1, 1], [], []>} : vector<8x128xbf16>, vector<128x384xbf16>, vector<8x384xf32> -> vector<8x384xf32>
    %219 = vector.extract_strided_slice %218 {offsets = [0, 0], sizes = [8, 128], strides = [1, 1]} : vector<8x384xf32> to vector<8x128xf32>
    %220 = arith.mulf %219, %29 : vector<8x128xf32>
    %c112_i32_108 = arith.constant 112 : i32
    %221 = tpu.dynamic_rotate %219 by %c112_i32_108 dim 1 : vector<8x128xf32>, i32 -> vector<8x128xf32>
    %222 = arith.mulf %221, %30 : vector<8x128xf32>
    %223 = arith.addf %220, %222 : vector<8x128xf32>
    %c16_i32_109 = arith.constant 16 : i32
    %224 = tpu.dynamic_rotate %219 by %c16_i32_109 dim 1 : vector<8x128xf32>, i32 -> vector<8x128xf32>
    %225 = arith.mulf %224, %31 : vector<8x128xf32>
    %226 = arith.addf %223, %225 : vector<8x128xf32>
    %227 = vector.extract_strided_slice %218 {offsets = [0, 128], sizes = [8, 128], strides = [1, 1]} : vector<8x384xf32> to vector<8x128xf32>
    %228 = arith.mulf %227, %29 : vector<8x128xf32>
    %c112_i32_110 = arith.constant 112 : i32
    %229 = tpu.dynamic_rotate %227 by %c112_i32_110 dim 1 : vector<8x128xf32>, i32 -> vector<8x128xf32>
    %230 = arith.mulf %229, %30 : vector<8x128xf32>
    %231 = arith.addf %228, %230 : vector<8x128xf32>
    %c16_i32_111 = arith.constant 16 : i32
    %232 = tpu.dynamic_rotate %227 by %c16_i32_111 dim 1 : vector<8x128xf32>, i32 -> vector<8x128xf32>
    %233 = arith.mulf %232, %31 : vector<8x128xf32>
    %234 = arith.addf %231, %233 : vector<8x128xf32>
    %235 = vector.extract_strided_slice %218 {offsets = [0, 256], sizes = [8, 128], strides = [1, 1]} : vector<8x384xf32> to vector<8x128xf32>
    %236 = arith.truncf %234 : vector<8x128xf32> to vector<8x128xbf16>
    %c1_112 = arith.constant 1 : index
    %c0_113 = arith.constant 0 : index
    %c0_114 = arith.constant 0 : index
    %237 = vector.load %arg17[%c1_112, %c0_113, %c0_114] : memref<2x16x128xbf16, #tpu.memory_space<vmem>>, vector<1x8x128xbf16>
    %238 = vector.shape_cast %237 : vector<1x8x128xbf16> to vector<8x128xbf16>
    %239 = vector.shape_cast %236 : vector<8x128xbf16> to vector<1x8x128xbf16>
    tpu.vector_store %arg17[%c1_112, %c0_113, %c0_114], %239 {strides = array<i32>} : memref<2x16x128xbf16, #tpu.memory_space<vmem>>, vector<1x8x128xbf16>,
    %240 = arith.truncf %235 : vector<8x128xf32> to vector<8x128xbf16>
    %c1_115 = arith.constant 1 : index
    %c0_116 = arith.constant 0 : index
    %c0_117 = arith.constant 0 : index
    %241 = vector.load %arg18[%c1_115, %c0_116, %c0_117] : memref<2x16x128xbf16, #tpu.memory_space<vmem>>, vector<1x8x128xbf16>
    %242 = vector.shape_cast %241 : vector<1x8x128xbf16> to vector<8x128xbf16>
    %243 = vector.shape_cast %240 : vector<8x128xbf16> to vector<1x8x128xbf16>
    tpu.vector_store %arg18[%c1_115, %c0_116, %c0_117], %243 {strides = array<i32>} : memref<2x16x128xbf16, #tpu.memory_space<vmem>>, vector<1x8x128xbf16>,
    %c1_118 = arith.constant 1 : index
    %c0_119 = arith.constant 0 : index
    %c0_120 = arith.constant 0 : index
    %244 = vector.load %arg17[%c1_118, %c0_119, %c0_120] : memref<2x16x128xbf16, #tpu.memory_space<vmem>>, vector<1x16x128xbf16>
    %245 = vector.shape_cast %244 : vector<1x16x128xbf16> to vector<16x128xbf16>
    %c1_121 = arith.constant 1 : index
    %c0_122 = arith.constant 0 : index
    %c0_123 = arith.constant 0 : index
    %246 = vector.load %arg18[%c1_121, %c0_122, %c0_123] : memref<2x16x128xbf16, #tpu.memory_space<vmem>>, vector<1x16x128xbf16>
    %247 = vector.shape_cast %246 : vector<1x16x128xbf16> to vector<16x128xbf16>
    %248 = vector.extract_strided_slice %226 {offsets = [0, 0], sizes = [8, 32], strides = [1, 1]} : vector<8x128xf32> to vector<8x32xf32>
    %249 = arith.truncf %248 : vector<8x32xf32> to vector<8x32xbf16>
    %250 = vector.extract_strided_slice %245 {offsets = [0, 0], sizes = [16, 32], strides = [1, 1]} : vector<16x128xbf16> to vector<16x32xbf16>
    %cst_124 = arith.constant dense<0.000000e+00> : vector<8x16xf32>
    %251 = tpu.matmul %249, %250, %cst_124 {dimension_numbers = #tpu.dot_dimension_numbers<[1], [1], [0], [0], [0, 0, 1, 0], [], []>} : vector<8x32xbf16>, vector<16x32xbf16>, vector<8x16xf32> -> vector<8x16xf32>
    %cst_125 = arith.constant 0.176776692 : f32
    %252 = vector.broadcast %cst_125 : f32 to vector<8x16xf32>
    %253 = arith.mulf %251, %252 : vector<8x16xf32>
    %254 = arith.addf %253, %39 : vector<8x16xf32>
    %cst_126 = arith.constant dense<0xFF800000> : vector<8xf32>
    %255 = vector.multi_reduction <maximumf>, %254, %cst_126 [1] : vector<8x16xf32> to vector<8xf32>
    %256 = vector.shape_cast %255 : vector<8xf32> to vector<8x1xf32>
    %257 = vector.broadcast %256 : vector<8x1xf32> to vector<8x16xf32>
    %258 = arith.subf %254, %257 : vector<8x16xf32>
    %259 = math.exp %258 : vector<8x16xf32>
    %cst_127 = arith.constant dense<0.000000e+00> : vector<8xf32>
    %260 = vector.multi_reduction <add>, %259, %cst_127 [1] : vector<8x16xf32> to vector<8xf32>
    %261 = vector.shape_cast %260 : vector<8xf32> to vector<8x1xf32>
    %262 = vector.broadcast %261 : vector<8x1xf32> to vector<8x16xf32>
    %263 = arith.divf %259, %262 : vector<8x16xf32>
    %264 = arith.truncf %263 : vector<8x16xf32> to vector<8x16xbf16>
    %265 = vector.extract_strided_slice %247 {offsets = [0, 0], sizes = [16, 32], strides = [1, 1]} : vector<16x128xbf16> to vector<16x32xbf16>
    %cst_128 = arith.constant dense<0.000000e+00> : vector<8x32xf32>
    %266 = tpu.matmul %264, %265, %cst_128 {dimension_numbers = #tpu.dot_dimension_numbers<[1], [0], [0], [1], [0, 0, 1, 1], [], []>} : vector<8x16xbf16>, vector<16x32xbf16>, vector<8x32xf32> -> vector<8x32xf32>
    %267 = vector.extract_strided_slice %226 {offsets = [0, 32], sizes = [8, 32], strides = [1, 1]} : vector<8x128xf32> to vector<8x32xf32>
    %268 = arith.truncf %267 : vector<8x32xf32> to vector<8x32xbf16>
    %269 = vector.extract_strided_slice %245 {offsets = [0, 32], sizes = [16, 32], strides = [1, 1]} : vector<16x128xbf16> to vector<16x32xbf16>
    %cst_129 = arith.constant dense<0.000000e+00> : vector<8x16xf32>
    %270 = tpu.matmul %268, %269, %cst_129 {dimension_numbers = #tpu.dot_dimension_numbers<[1], [1], [0], [0], [0, 0, 1, 0], [], []>} : vector<8x32xbf16>, vector<16x32xbf16>, vector<8x16xf32> -> vector<8x16xf32>
    %cst_130 = arith.constant 0.176776692 : f32
    %271 = vector.broadcast %cst_130 : f32 to vector<8x16xf32>
    %272 = arith.mulf %270, %271 : vector<8x16xf32>
    %273 = arith.addf %272, %39 : vector<8x16xf32>
    %cst_131 = arith.constant dense<0xFF800000> : vector<8xf32>
    %274 = vector.multi_reduction <maximumf>, %273, %cst_131 [1] : vector<8x16xf32> to vector<8xf32>
    %275 = vector.shape_cast %274 : vector<8xf32> to vector<8x1xf32>
    %276 = vector.broadcast %275 : vector<8x1xf32> to vector<8x16xf32>
    %277 = arith.subf %273, %276 : vector<8x16xf32>
    %278 = math.exp %277 : vector<8x16xf32>
    %cst_132 = arith.constant dense<0.000000e+00> : vector<8xf32>
    %279 = vector.multi_reduction <add>, %278, %cst_132 [1] : vector<8x16xf32> to vector<8xf32>
    %280 = vector.shape_cast %279 : vector<8xf32> to vector<8x1xf32>
    %281 = vector.broadcast %280 : vector<8x1xf32> to vector<8x16xf32>
    %282 = arith.divf %278, %281 : vector<8x16xf32>
    %283 = arith.truncf %282 : vector<8x16xf32> to vector<8x16xbf16>
    %284 = vector.extract_strided_slice %247 {offsets = [0, 32], sizes = [16, 32], strides = [1, 1]} : vector<16x128xbf16> to vector<16x32xbf16>
    %cst_133 = arith.constant dense<0.000000e+00> : vector<8x32xf32>
    %285 = tpu.matmul %283, %284, %cst_133 {dimension_numbers = #tpu.dot_dimension_numbers<[1], [0], [0], [1], [0, 0, 1, 1], [], []>} : vector<8x16xbf16>, vector<16x32xbf16>, vector<8x32xf32> -> vector<8x32xf32>
    %286 = vector.extract_strided_slice %226 {offsets = [0, 64], sizes = [8, 32], strides = [1, 1]} : vector<8x128xf32> to vector<8x32xf32>
    %287 = arith.truncf %286 : vector<8x32xf32> to vector<8x32xbf16>
    %288 = vector.extract_strided_slice %245 {offsets = [0, 64], sizes = [16, 32], strides = [1, 1]} : vector<16x128xbf16> to vector<16x32xbf16>
    %cst_134 = arith.constant dense<0.000000e+00> : vector<8x16xf32>
    %289 = tpu.matmul %287, %288, %cst_134 {dimension_numbers = #tpu.dot_dimension_numbers<[1], [1], [0], [0], [0, 0, 1, 0], [], []>} : vector<8x32xbf16>, vector<16x32xbf16>, vector<8x16xf32> -> vector<8x16xf32>
    %cst_135 = arith.constant 0.176776692 : f32
    %290 = vector.broadcast %cst_135 : f32 to vector<8x16xf32>
    %291 = arith.mulf %289, %290 : vector<8x16xf32>
    %292 = arith.addf %291, %39 : vector<8x16xf32>
    %cst_136 = arith.constant dense<0xFF800000> : vector<8xf32>
    %293 = vector.multi_reduction <maximumf>, %292, %cst_136 [1] : vector<8x16xf32> to vector<8xf32>
    %294 = vector.shape_cast %293 : vector<8xf32> to vector<8x1xf32>
    %295 = vector.broadcast %294 : vector<8x1xf32> to vector<8x16xf32>
    %296 = arith.subf %292, %295 : vector<8x16xf32>
    %297 = math.exp %296 : vector<8x16xf32>
    %cst_137 = arith.constant dense<0.000000e+00> : vector<8xf32>
    %298 = vector.multi_reduction <add>, %297, %cst_137 [1] : vector<8x16xf32> to vector<8xf32>
    %299 = vector.shape_cast %298 : vector<8xf32> to vector<8x1xf32>
    %300 = vector.broadcast %299 : vector<8x1xf32> to vector<8x16xf32>
    %301 = arith.divf %297, %300 : vector<8x16xf32>
    %302 = arith.truncf %301 : vector<8x16xf32> to vector<8x16xbf16>
    %303 = vector.extract_strided_slice %247 {offsets = [0, 64], sizes = [16, 32], strides = [1, 1]} : vector<16x128xbf16> to vector<16x32xbf16>
    %cst_138 = arith.constant dense<0.000000e+00> : vector<8x32xf32>
    %304 = tpu.matmul %302, %303, %cst_138 {dimension_numbers = #tpu.dot_dimension_numbers<[1], [0], [0], [1], [0, 0, 1, 1], [], []>} : vector<8x16xbf16>, vector<16x32xbf16>, vector<8x32xf32> -> vector<8x32xf32>
    %305 = vector.extract_strided_slice %226 {offsets = [0, 96], sizes = [8, 32], strides = [1, 1]} : vector<8x128xf32> to vector<8x32xf32>
    %306 = arith.truncf %305 : vector<8x32xf32> to vector<8x32xbf16>
    %307 = vector.extract_strided_slice %245 {offsets = [0, 96], sizes = [16, 32], strides = [1, 1]} : vector<16x128xbf16> to vector<16x32xbf16>
    %cst_139 = arith.constant dense<0.000000e+00> : vector<8x16xf32>
    %308 = tpu.matmul %306, %307, %cst_139 {dimension_numbers = #tpu.dot_dimension_numbers<[1], [1], [0], [0], [0, 0, 1, 0], [], []>} : vector<8x32xbf16>, vector<16x32xbf16>, vector<8x16xf32> -> vector<8x16xf32>
    %cst_140 = arith.constant 0.176776692 : f32
    %309 = vector.broadcast %cst_140 : f32 to vector<8x16xf32>
    %310 = arith.mulf %308, %309 : vector<8x16xf32>
    %311 = arith.addf %310, %39 : vector<8x16xf32>
    %cst_141 = arith.constant dense<0xFF800000> : vector<8xf32>
    %312 = vector.multi_reduction <maximumf>, %311, %cst_141 [1] : vector<8x16xf32> to vector<8xf32>
    %313 = vector.shape_cast %312 : vector<8xf32> to vector<8x1xf32>
    %314 = vector.broadcast %313 : vector<8x1xf32> to vector<8x16xf32>
    %315 = arith.subf %311, %314 : vector<8x16xf32>
    %316 = math.exp %315 : vector<8x16xf32>
    %cst_142 = arith.constant dense<0.000000e+00> : vector<8xf32>
    %317 = vector.multi_reduction <add>, %316, %cst_142 [1] : vector<8x16xf32> to vector<8xf32>
    %318 = vector.shape_cast %317 : vector<8xf32> to vector<8x1xf32>
    %319 = vector.broadcast %318 : vector<8x1xf32> to vector<8x16xf32>
    %320 = arith.divf %316, %319 : vector<8x16xf32>
    %321 = arith.truncf %320 : vector<8x16xf32> to vector<8x16xbf16>
    %322 = vector.extract_strided_slice %247 {offsets = [0, 96], sizes = [16, 32], strides = [1, 1]} : vector<16x128xbf16> to vector<16x32xbf16>
    %cst_143 = arith.constant dense<0.000000e+00> : vector<8x32xf32>
    %323 = tpu.matmul %321, %322, %cst_143 {dimension_numbers = #tpu.dot_dimension_numbers<[1], [0], [0], [1], [0, 0, 1, 1], [], []>} : vector<8x16xbf16>, vector<16x32xbf16>, vector<8x32xf32> -> vector<8x32xf32>
    %324 = tpu.concatenate %266, %285, %304, %323 in 1 : vector<8x32xf32>, vector<8x32xf32>, vector<8x32xf32>, vector<8x32xf32> -> vector<8x128xf32>
    %325 = arith.truncf %324 : vector<8x128xf32> to vector<8x128xbf16>
    %c1_144 = arith.constant 1 : index
    %c0_145 = arith.constant 0 : index
    %c0_146 = arith.constant 0 : index
    %326 = vector.load %arg4[%c1_144, %c0_145, %c0_146] : memref<2x128x128xbf16, #tpu.memory_space<vmem>>, vector<1x128x128xbf16>
    %327 = vector.shape_cast %326 : vector<1x128x128xbf16> to vector<128x128xbf16>
    %cst_147 = arith.constant dense<0.000000e+00> : vector<8x128xf32>
    %328 = tpu.matmul %325, %327, %cst_147 {dimension_numbers = #tpu.dot_dimension_numbers<[1], [0], [0], [1], [0, 0, 1, 1], [], []>} : vector<8x128xbf16>, vector<128x128xbf16>, vector<8x128xf32> -> vector<8x128xf32>
    %329 = arith.addf %200, %328 : vector<8x128xf32>
    %330 = arith.mulf %329, %329 : vector<8x128xf32>
    %cst_148 = arith.constant dense<0.000000e+00> : vector<8xf32>
    %331 = vector.multi_reduction <add>, %330, %cst_148 [1] : vector<8x128xf32> to vector<8xf32>
    %332 = vector.shape_cast %331 : vector<8xf32> to vector<8x1xf32>
    %cst_149 = arith.constant 1.280000e+02 : f32
    %333 = vector.broadcast %cst_149 : f32 to vector<8x1xf32>
    %334 = arith.divf %332, %333 : vector<8x1xf32>
    %cst_150 = arith.constant 9.99999997E-7 : f32
    %335 = vector.broadcast %cst_150 : f32 to vector<8x1xf32>
    %336 = arith.addf %334, %335 : vector<8x1xf32>
    %337 = math.rsqrt %336 : vector<8x1xf32>
    %338 = vector.broadcast %337 : vector<8x1xf32> to vector<8x128xf32>
    %339 = arith.mulf %329, %338 : vector<8x128xf32>
    %c1_151 = arith.constant 1 : index
    %c0_152 = arith.constant 0 : index
    %c0_153 = arith.constant 0 : index
    %340 = vector.load %arg5[%c1_151, %c0_152, %c0_153] : memref<2x1x128xf32, #tpu.memory_space<vmem>>, vector<1x1x128xf32>
    %341 = vector.shape_cast %340 : vector<1x1x128xf32> to vector<1x128xf32>
    %342 = vector.broadcast %341 : vector<1x128xf32> to vector<8x128xf32>
    %343 = arith.mulf %339, %342 : vector<8x128xf32>
    %344 = arith.truncf %343 : vector<8x128xf32> to vector<8x128xbf16>
    %c1_154 = arith.constant 1 : index
    %c0_155 = arith.constant 0 : index
    %c0_156 = arith.constant 0 : index
    %345 = vector.load %arg6[%c1_154, %c0_155, %c0_156] : memref<2x128x512xbf16, #tpu.memory_space<vmem>>, vector<1x128x512xbf16>
    %346 = vector.shape_cast %345 : vector<1x128x512xbf16> to vector<128x512xbf16>
    %cst_157 = arith.constant dense<0.000000e+00> : vector<8x512xf32>
    %347 = tpu.matmul %344, %346, %cst_157 {dimension_numbers = #tpu.dot_dimension_numbers<[1], [0], [0], [1], [0, 0, 1, 1], [], []>} : vector<8x128xbf16>, vector<128x512xbf16>, vector<8x512xf32> -> vector<8x512xf32>
    %348 = vector.extract_strided_slice %347 {offsets = [0, 0], sizes = [8, 256], strides = [1, 1]} : vector<8x512xf32> to vector<8x256xf32>
    %349 = vector.extract_strided_slice %347 {offsets = [0, 256], sizes = [8, 256], strides = [1, 1]} : vector<8x512xf32> to vector<8x256xf32>
    %350 = arith.negf %348 : vector<8x256xf32>
    %351 = math.exp %350 : vector<8x256xf32>
    %cst_158 = arith.constant 1.000000e+00 : f32
    %352 = vector.broadcast %cst_158 : f32 to vector<8x256xf32>
    %353 = arith.addf %352, %351 : vector<8x256xf32>
    %354 = arith.divf %352, %353 : vector<8x256xf32>
    %355 = arith.mulf %348, %354 : vector<8x256xf32>
    %356 = arith.mulf %355, %349 : vector<8x256xf32>
    %357 = arith.truncf %356 : vector<8x256xf32> to vector<8x256xbf16>
    %c1_159 = arith.constant 1 : index
    %c0_160 = arith.constant 0 : index
    %c0_161 = arith.constant 0 : index
    %358 = vector.load %arg7[%c1_159, %c0_160, %c0_161] : memref<2x256x128xbf16, #tpu.memory_space<vmem>>, vector<1x256x128xbf16>
    %359 = vector.shape_cast %358 : vector<1x256x128xbf16> to vector<256x128xbf16>
    %cst_162 = arith.constant dense<0.000000e+00> : vector<8x128xf32>
    %360 = tpu.matmul %357, %359, %cst_162 {dimension_numbers = #tpu.dot_dimension_numbers<[1], [0], [0], [1], [0, 0, 1, 1], [], []>} : vector<8x256xbf16>, vector<256x128xbf16>, vector<8x128xf32> -> vector<8x128xf32>
    %361 = arith.addf %329, %360 : vector<8x128xf32>
    %362 = vector.extract_strided_slice %361 {offsets = [7, 0], sizes = [1, 128], strides = [1, 1]} : vector<8x128xf32> to vector<1x128xf32>
    %363 = arith.mulf %362, %362 : vector<1x128xf32>
    %cst_163 = arith.constant dense<0.000000e+00> : vector<1xf32>
    %364 = vector.multi_reduction <add>, %363, %cst_163 [1] : vector<1x128xf32> to vector<1xf32>
    %365 = vector.shape_cast %364 : vector<1xf32> to vector<1x1xf32>
    %cst_164 = arith.constant 1.280000e+02 : f32
    %366 = vector.broadcast %cst_164 : f32 to vector<1x1xf32>
    %367 = arith.divf %365, %366 : vector<1x1xf32>
    %cst_165 = arith.constant 9.99999997E-7 : f32
    %368 = vector.broadcast %cst_165 : f32 to vector<1x1xf32>
    %369 = arith.addf %367, %368 : vector<1x1xf32>
    %370 = math.rsqrt %369 : vector<1x1xf32>
    %371 = vector.broadcast %370 : vector<1x1xf32> to vector<1x128xf32>
    %372 = arith.mulf %362, %371 : vector<1x128xf32>
    %c0_166 = arith.constant 0 : index
    %c0_167 = arith.constant 0 : index
    %373 = vector.load %arg8[%c0_166, %c0_167] : memref<1x128xf32, #tpu.memory_space<vmem>>, vector<1x128xf32>
    %374 = arith.mulf %372, %373 : vector<1x128xf32>
    %375 = arith.truncf %374 : vector<1x128xf32> to vector<1x128xbf16>
    %c0_168 = arith.constant 0 : index
    %c0_169 = arith.constant 0 : index
    %376 = vector.load %arg9[%c0_168, %c0_169] : memref<128x256xbf16, #tpu.memory_space<vmem>>, vector<128x256xbf16>
    %cst_170 = arith.constant dense<0.000000e+00> : vector<1x256xf32>
    %377 = tpu.matmul %375, %376, %cst_170 {dimension_numbers = #tpu.dot_dimension_numbers<[1], [0], [0], [1], [0, 0, 1, 1], [], []>} : vector<1x128xbf16>, vector<128x256xbf16>, vector<1x256xf32> -> vector<1x256xf32>
    %c0_171 = arith.constant 0 : index
    %c0_172 = arith.constant 0 : index
    %378 = vector.load %arg15[%c0_171, %c0_172] : memref<1x256xf32, #tpu.memory_space<vmem>>, vector<1x256xf32>
    tpu.vector_store %arg15[%c0_171, %c0_172], %377 {strides = array<i32>} : memref<1x256xf32, #tpu.memory_space<vmem>>, vector<1x256xf32>,
    %cst_173 = arith.constant dense<0xFF800000> : vector<1xf32>
    %379 = vector.multi_reduction <maximumf>, %377, %cst_173 [1] : vector<1x256xf32> to vector<1xf32>
    %380 = vector.shape_cast %379 : vector<1xf32> to vector<1x1xf32>
    %381 = tpu.iota {dimensions = array<i32: 1>} : vector<1x256xi32>
    %382 = vector.broadcast %380 : vector<1x1xf32> to vector<1x256xf32>
    %383 = arith.cmpf oeq, %377, %382 : vector<1x256xf32>
    %c256_i32 = arith.constant 256 : i32
    %384 = vector.broadcast %c256_i32 : i32 to vector<1x256xi32>
    %385 = arith.select %383, %381, %384 : vector<1x256xi1>, vector<1x256xi32>
    %cst_174 = arith.constant dense<2147483647> : vector<1xi32>
    %386 = vector.multi_reduction <minsi>, %385, %cst_174 [1] : vector<1x256xi32> to vector<1xi32>
    %387 = vector.shape_cast %386 : vector<1xi32> to vector<1x1xi32>
    %c0_175 = arith.constant 0 : index
    %c0_176 = arith.constant 0 : index
    %388 = vector.load %arg16[%c0_175, %c0_176] : memref<1x1xi32, #tpu.memory_space<vmem>>, vector<1x1xi32>
    tpu.vector_store %arg16[%c0_175, %c0_176], %387 {strides = array<i32>} : memref<1x1xi32, #tpu.memory_space<vmem>>, vector<1x1xi32>,
    return
  }
}

module attributes {stable_mosaic.version = 11 : i64} {
  func.func @_pass_kernel(%arg0: memref<1x1xi32, #tpu.memory_space<smem>>, %arg1: memref<256x128xf32, #tpu.memory_space<vmem>>, %arg2: memref<2x1x128xf32, #tpu.memory_space<vmem>>, %arg3: memref<2x128x384xbf16, #tpu.memory_space<vmem>>, %arg4: memref<2x128x128xbf16, #tpu.memory_space<vmem>>, %arg5: memref<2x1x128xf32, #tpu.memory_space<vmem>>, %arg6: memref<2x128x512xbf16, #tpu.memory_space<vmem>>, %arg7: memref<2x256x128xbf16, #tpu.memory_space<vmem>>, %arg8: memref<1x128xf32, #tpu.memory_space<vmem>>, %arg9: memref<128x256xbf16, #tpu.memory_space<vmem>>, %arg10: memref<1x128xf32, #tpu.memory_space<vmem>>, %arg11: memref<1x128xf32, #tpu.memory_space<vmem>>, %arg12: memref<1x128xf32, #tpu.memory_space<vmem>>, %arg13: memref<2x16x128xbf16, #tpu.memory_space<vmem>>, %arg14: memref<2x16x128xbf16, #tpu.memory_space<vmem>>, %arg15: memref<1x256xf32, #tpu.memory_space<vmem>>, %arg16: memref<1x1xi32, #tpu.memory_space<vmem>>, %arg17: memref<2x16x128xbf16, #tpu.memory_space<vmem>>, %arg18: memref<2x16x128xbf16, #tpu.memory_space<vmem>>) attributes {dimension_semantics = [], scalar_prefetch = 0 : i64, scratch_operands = 0 : i64, tpu.core_type = #tpu.core_type<tc>} {
    %c0 = arith.constant 0 : index
    %c0_0 = arith.constant 0 : index
    %0 = memref.load %arg0[%c0, %c0_0] : memref<1x1xi32, #tpu.memory_space<smem>>
    %1 = arith.index_cast %0 : i32 to index
    %c0_1 = arith.constant 0 : index
    %2 = vector.load %arg1[%1, %c0_1] : memref<256x128xf32, #tpu.memory_space<vmem>>, vector<1x128xf32>
    %c0_2 = arith.constant 0 : index
    %c0_3 = arith.constant 0 : index
    %c0_4 = arith.constant 0 : index
    %3 = vector.load %arg13[%c0_2, %c0_3, %c0_4] : memref<2x16x128xbf16, #tpu.memory_space<vmem>>, vector<2x16x128xbf16>
    %c0_5 = arith.constant 0 : index
    %c0_6 = arith.constant 0 : index
    %c0_7 = arith.constant 0 : index
    %4 = vector.load %arg17[%c0_5, %c0_6, %c0_7] : memref<2x16x128xbf16, #tpu.memory_space<vmem>>, vector<2x16x128xbf16>
    tpu.vector_store %arg17[%c0_5, %c0_6, %c0_7], %3 {strides = array<i32>} : memref<2x16x128xbf16, #tpu.memory_space<vmem>>, vector<2x16x128xbf16>,
    %c0_8 = arith.constant 0 : index
    %c0_9 = arith.constant 0 : index
    %c0_10 = arith.constant 0 : index
    %5 = vector.load %arg14[%c0_8, %c0_9, %c0_10] : memref<2x16x128xbf16, #tpu.memory_space<vmem>>, vector<2x16x128xbf16>
    %c0_11 = arith.constant 0 : index
    %c0_12 = arith.constant 0 : index
    %c0_13 = arith.constant 0 : index
    %6 = vector.load %arg18[%c0_11, %c0_12, %c0_13] : memref<2x16x128xbf16, #tpu.memory_space<vmem>>, vector<2x16x128xbf16>
    tpu.vector_store %arg18[%c0_11, %c0_12, %c0_13], %5 {strides = array<i32>} : memref<2x16x128xbf16, #tpu.memory_space<vmem>>, vector<2x16x128xbf16>,
    %c0_14 = arith.constant 0 : index
    %c0_15 = arith.constant 0 : index
    %7 = vector.load %arg10[%c0_14, %c0_15] : memref<1x128xf32, #tpu.memory_space<vmem>>, vector<1x128xf32>
    %c0_16 = arith.constant 0 : index
    %c0_17 = arith.constant 0 : index
    %8 = vector.load %arg11[%c0_16, %c0_17] : memref<1x128xf32, #tpu.memory_space<vmem>>, vector<1x128xf32>
    %c0_18 = arith.constant 0 : index
    %c0_19 = arith.constant 0 : index
    %9 = vector.load %arg12[%c0_18, %c0_19] : memref<1x128xf32, #tpu.memory_space<vmem>>, vector<1x128xf32>
    %10 = tpu.iota {dimensions = array<i32: 0>} : vector<1x16xi32>
    %c8_i32 = arith.constant 8 : i32
    %11 = vector.broadcast %c8_i32 : i32 to vector<1x16xi32>
    %12 = arith.addi %11, %10 : vector<1x16xi32>
    %13 = tpu.iota {dimensions = array<i32: 1>} : vector<1x16xi32>
    %14 = arith.cmpi sle, %13, %12 : vector<1x16xi32>
    %cst = arith.constant 0.000000e+00 : f32
    %cst_20 = arith.constant -1.000000e+30 : f32
    %15 = vector.broadcast %cst : f32 to vector<1x16xf32>
    %16 = vector.broadcast %cst_20 : f32 to vector<1x16xf32>
    %17 = arith.select %14, %15, %16 : vector<1x16xi1>, vector<1x16xf32>
    %18 = arith.mulf %2, %2 : vector<1x128xf32>
    %cst_21 = arith.constant dense<0.000000e+00> : vector<1xf32>
    %19 = vector.multi_reduction <add>, %18, %cst_21 [1] : vector<1x128xf32> to vector<1xf32>
    %20 = vector.shape_cast %19 : vector<1xf32> to vector<1x1xf32>
    %cst_22 = arith.constant 1.280000e+02 : f32
    %21 = vector.broadcast %cst_22 : f32 to vector<1x1xf32>
    %22 = arith.divf %20, %21 : vector<1x1xf32>
    %cst_23 = arith.constant 9.99999997E-7 : f32
    %23 = vector.broadcast %cst_23 : f32 to vector<1x1xf32>
    %24 = arith.addf %22, %23 : vector<1x1xf32>
    %25 = math.rsqrt %24 : vector<1x1xf32>
    %26 = vector.broadcast %25 : vector<1x1xf32> to vector<1x128xf32>
    %27 = arith.mulf %2, %26 : vector<1x128xf32>
    %c0_24 = arith.constant 0 : index
    %c0_25 = arith.constant 0 : index
    %c0_26 = arith.constant 0 : index
    %28 = vector.load %arg2[%c0_24, %c0_25, %c0_26] : memref<2x1x128xf32, #tpu.memory_space<vmem>>, vector<1x1x128xf32>
    %29 = vector.shape_cast %28 : vector<1x1x128xf32> to vector<1x128xf32>
    %30 = arith.mulf %27, %29 : vector<1x128xf32>
    %31 = arith.truncf %30 : vector<1x128xf32> to vector<1x128xbf16>
    %c0_27 = arith.constant 0 : index
    %c0_28 = arith.constant 0 : index
    %c0_29 = arith.constant 0 : index
    %32 = vector.load %arg3[%c0_27, %c0_28, %c0_29] : memref<2x128x384xbf16, #tpu.memory_space<vmem>>, vector<1x128x384xbf16>
    %33 = vector.shape_cast %32 : vector<1x128x384xbf16> to vector<128x384xbf16>
    %cst_30 = arith.constant dense<0.000000e+00> : vector<1x384xf32>
    %34 = tpu.matmul %31, %33, %cst_30 {dimension_numbers = #tpu.dot_dimension_numbers<[1], [0], [0], [1], [0, 0, 1, 1], [], []>} : vector<1x128xbf16>, vector<128x384xbf16>, vector<1x384xf32> -> vector<1x384xf32>
    %35 = vector.extract_strided_slice %34 {offsets = [0, 0], sizes = [1, 128], strides = [1, 1]} : vector<1x384xf32> to vector<1x128xf32>
    %36 = arith.mulf %35, %7 : vector<1x128xf32>
    %c112_i32 = arith.constant 112 : i32
    %37 = tpu.dynamic_rotate %35 by %c112_i32 dim 1 : vector<1x128xf32>, i32 -> vector<1x128xf32>
    %38 = arith.mulf %37, %8 : vector<1x128xf32>
    %39 = arith.addf %36, %38 : vector<1x128xf32>
    %c16_i32 = arith.constant 16 : i32
    %40 = tpu.dynamic_rotate %35 by %c16_i32 dim 1 : vector<1x128xf32>, i32 -> vector<1x128xf32>
    %41 = arith.mulf %40, %9 : vector<1x128xf32>
    %42 = arith.addf %39, %41 : vector<1x128xf32>
    %43 = vector.extract_strided_slice %34 {offsets = [0, 128], sizes = [1, 128], strides = [1, 1]} : vector<1x384xf32> to vector<1x128xf32>
    %44 = arith.mulf %43, %7 : vector<1x128xf32>
    %c112_i32_31 = arith.constant 112 : i32
    %45 = tpu.dynamic_rotate %43 by %c112_i32_31 dim 1 : vector<1x128xf32>, i32 -> vector<1x128xf32>
    %46 = arith.mulf %45, %8 : vector<1x128xf32>
    %47 = arith.addf %44, %46 : vector<1x128xf32>
    %c16_i32_32 = arith.constant 16 : i32
    %48 = tpu.dynamic_rotate %43 by %c16_i32_32 dim 1 : vector<1x128xf32>, i32 -> vector<1x128xf32>
    %49 = arith.mulf %48, %9 : vector<1x128xf32>
    %50 = arith.addf %47, %49 : vector<1x128xf32>
    %51 = vector.extract_strided_slice %34 {offsets = [0, 256], sizes = [1, 128], strides = [1, 1]} : vector<1x384xf32> to vector<1x128xf32>
    %52 = arith.truncf %50 : vector<1x128xf32> to vector<1x128xbf16>
    %c0_33 = arith.constant 0 : index
    %c8 = arith.constant 8 : index
    %c0_34 = arith.constant 0 : index
    %53 = vector.load %arg17[%c0_33, %c8, %c0_34] : memref<2x16x128xbf16, #tpu.memory_space<vmem>>, vector<1x1x128xbf16>
    %54 = vector.shape_cast %53 : vector<1x1x128xbf16> to vector<1x128xbf16>
    %55 = vector.shape_cast %52 : vector<1x128xbf16> to vector<1x1x128xbf16>
    tpu.vector_store %arg17[%c0_33, %c8, %c0_34], %55 {strides = array<i32>} : memref<2x16x128xbf16, #tpu.memory_space<vmem>>, vector<1x1x128xbf16>,
    %56 = arith.truncf %51 : vector<1x128xf32> to vector<1x128xbf16>
    %c0_35 = arith.constant 0 : index
    %c8_36 = arith.constant 8 : index
    %c0_37 = arith.constant 0 : index
    %57 = vector.load %arg18[%c0_35, %c8_36, %c0_37] : memref<2x16x128xbf16, #tpu.memory_space<vmem>>, vector<1x1x128xbf16>
    %58 = vector.shape_cast %57 : vector<1x1x128xbf16> to vector<1x128xbf16>
    %59 = vector.shape_cast %56 : vector<1x128xbf16> to vector<1x1x128xbf16>
    tpu.vector_store %arg18[%c0_35, %c8_36, %c0_37], %59 {strides = array<i32>} : memref<2x16x128xbf16, #tpu.memory_space<vmem>>, vector<1x1x128xbf16>,
    %c0_38 = arith.constant 0 : index
    %c0_39 = arith.constant 0 : index
    %c0_40 = arith.constant 0 : index
    %60 = vector.load %arg17[%c0_38, %c0_39, %c0_40] : memref<2x16x128xbf16, #tpu.memory_space<vmem>>, vector<1x16x128xbf16>
    %61 = vector.shape_cast %60 : vector<1x16x128xbf16> to vector<16x128xbf16>
    %c0_41 = arith.constant 0 : index
    %c0_42 = arith.constant 0 : index
    %c0_43 = arith.constant 0 : index
    %62 = vector.load %arg18[%c0_41, %c0_42, %c0_43] : memref<2x16x128xbf16, #tpu.memory_space<vmem>>, vector<1x16x128xbf16>
    %63 = vector.shape_cast %62 : vector<1x16x128xbf16> to vector<16x128xbf16>
    %64 = vector.extract_strided_slice %42 {offsets = [0, 0], sizes = [1, 32], strides = [1, 1]} : vector<1x128xf32> to vector<1x32xf32>
    %65 = arith.truncf %64 : vector<1x32xf32> to vector<1x32xbf16>
    %66 = vector.extract_strided_slice %61 {offsets = [0, 0], sizes = [16, 32], strides = [1, 1]} : vector<16x128xbf16> to vector<16x32xbf16>
    %cst_44 = arith.constant dense<0.000000e+00> : vector<1x16xf32>
    %67 = tpu.matmul %65, %66, %cst_44 {dimension_numbers = #tpu.dot_dimension_numbers<[1], [1], [0], [0], [0, 0, 1, 0], [], []>} : vector<1x32xbf16>, vector<16x32xbf16>, vector<1x16xf32> -> vector<1x16xf32>
    %cst_45 = arith.constant 0.176776692 : f32
    %68 = vector.broadcast %cst_45 : f32 to vector<1x16xf32>
    %69 = arith.mulf %67, %68 : vector<1x16xf32>
    %70 = arith.addf %69, %17 : vector<1x16xf32>
    %cst_46 = arith.constant dense<0xFF800000> : vector<1xf32>
    %71 = vector.multi_reduction <maximumf>, %70, %cst_46 [1] : vector<1x16xf32> to vector<1xf32>
    %72 = vector.shape_cast %71 : vector<1xf32> to vector<1x1xf32>
    %73 = vector.broadcast %72 : vector<1x1xf32> to vector<1x16xf32>
    %74 = arith.subf %70, %73 : vector<1x16xf32>
    %75 = math.exp %74 : vector<1x16xf32>
    %cst_47 = arith.constant dense<0.000000e+00> : vector<1xf32>
    %76 = vector.multi_reduction <add>, %75, %cst_47 [1] : vector<1x16xf32> to vector<1xf32>
    %77 = vector.shape_cast %76 : vector<1xf32> to vector<1x1xf32>
    %78 = vector.broadcast %77 : vector<1x1xf32> to vector<1x16xf32>
    %79 = arith.divf %75, %78 : vector<1x16xf32>
    %80 = arith.truncf %79 : vector<1x16xf32> to vector<1x16xbf16>
    %81 = vector.extract_strided_slice %63 {offsets = [0, 0], sizes = [16, 32], strides = [1, 1]} : vector<16x128xbf16> to vector<16x32xbf16>
    %cst_48 = arith.constant dense<0.000000e+00> : vector<1x32xf32>
    %82 = tpu.matmul %80, %81, %cst_48 {dimension_numbers = #tpu.dot_dimension_numbers<[1], [0], [0], [1], [0, 0, 1, 1], [], []>} : vector<1x16xbf16>, vector<16x32xbf16>, vector<1x32xf32> -> vector<1x32xf32>
    %83 = vector.extract_strided_slice %42 {offsets = [0, 32], sizes = [1, 32], strides = [1, 1]} : vector<1x128xf32> to vector<1x32xf32>
    %84 = arith.truncf %83 : vector<1x32xf32> to vector<1x32xbf16>
    %85 = vector.extract_strided_slice %61 {offsets = [0, 32], sizes = [16, 32], strides = [1, 1]} : vector<16x128xbf16> to vector<16x32xbf16>
    %cst_49 = arith.constant dense<0.000000e+00> : vector<1x16xf32>
    %86 = tpu.matmul %84, %85, %cst_49 {dimension_numbers = #tpu.dot_dimension_numbers<[1], [1], [0], [0], [0, 0, 1, 0], [], []>} : vector<1x32xbf16>, vector<16x32xbf16>, vector<1x16xf32> -> vector<1x16xf32>
    %cst_50 = arith.constant 0.176776692 : f32
    %87 = vector.broadcast %cst_50 : f32 to vector<1x16xf32>
    %88 = arith.mulf %86, %87 : vector<1x16xf32>
    %89 = arith.addf %88, %17 : vector<1x16xf32>
    %cst_51 = arith.constant dense<0xFF800000> : vector<1xf32>
    %90 = vector.multi_reduction <maximumf>, %89, %cst_51 [1] : vector<1x16xf32> to vector<1xf32>
    %91 = vector.shape_cast %90 : vector<1xf32> to vector<1x1xf32>
    %92 = vector.broadcast %91 : vector<1x1xf32> to vector<1x16xf32>
    %93 = arith.subf %89, %92 : vector<1x16xf32>
    %94 = math.exp %93 : vector<1x16xf32>
    %cst_52 = arith.constant dense<0.000000e+00> : vector<1xf32>
    %95 = vector.multi_reduction <add>, %94, %cst_52 [1] : vector<1x16xf32> to vector<1xf32>
    %96 = vector.shape_cast %95 : vector<1xf32> to vector<1x1xf32>
    %97 = vector.broadcast %96 : vector<1x1xf32> to vector<1x16xf32>
    %98 = arith.divf %94, %97 : vector<1x16xf32>
    %99 = arith.truncf %98 : vector<1x16xf32> to vector<1x16xbf16>
    %100 = vector.extract_strided_slice %63 {offsets = [0, 32], sizes = [16, 32], strides = [1, 1]} : vector<16x128xbf16> to vector<16x32xbf16>
    %cst_53 = arith.constant dense<0.000000e+00> : vector<1x32xf32>
    %101 = tpu.matmul %99, %100, %cst_53 {dimension_numbers = #tpu.dot_dimension_numbers<[1], [0], [0], [1], [0, 0, 1, 1], [], []>} : vector<1x16xbf16>, vector<16x32xbf16>, vector<1x32xf32> -> vector<1x32xf32>
    %102 = vector.extract_strided_slice %42 {offsets = [0, 64], sizes = [1, 32], strides = [1, 1]} : vector<1x128xf32> to vector<1x32xf32>
    %103 = arith.truncf %102 : vector<1x32xf32> to vector<1x32xbf16>
    %104 = vector.extract_strided_slice %61 {offsets = [0, 64], sizes = [16, 32], strides = [1, 1]} : vector<16x128xbf16> to vector<16x32xbf16>
    %cst_54 = arith.constant dense<0.000000e+00> : vector<1x16xf32>
    %105 = tpu.matmul %103, %104, %cst_54 {dimension_numbers = #tpu.dot_dimension_numbers<[1], [1], [0], [0], [0, 0, 1, 0], [], []>} : vector<1x32xbf16>, vector<16x32xbf16>, vector<1x16xf32> -> vector<1x16xf32>
    %cst_55 = arith.constant 0.176776692 : f32
    %106 = vector.broadcast %cst_55 : f32 to vector<1x16xf32>
    %107 = arith.mulf %105, %106 : vector<1x16xf32>
    %108 = arith.addf %107, %17 : vector<1x16xf32>
    %cst_56 = arith.constant dense<0xFF800000> : vector<1xf32>
    %109 = vector.multi_reduction <maximumf>, %108, %cst_56 [1] : vector<1x16xf32> to vector<1xf32>
    %110 = vector.shape_cast %109 : vector<1xf32> to vector<1x1xf32>
    %111 = vector.broadcast %110 : vector<1x1xf32> to vector<1x16xf32>
    %112 = arith.subf %108, %111 : vector<1x16xf32>
    %113 = math.exp %112 : vector<1x16xf32>
    %cst_57 = arith.constant dense<0.000000e+00> : vector<1xf32>
    %114 = vector.multi_reduction <add>, %113, %cst_57 [1] : vector<1x16xf32> to vector<1xf32>
    %115 = vector.shape_cast %114 : vector<1xf32> to vector<1x1xf32>
    %116 = vector.broadcast %115 : vector<1x1xf32> to vector<1x16xf32>
    %117 = arith.divf %113, %116 : vector<1x16xf32>
    %118 = arith.truncf %117 : vector<1x16xf32> to vector<1x16xbf16>
    %119 = vector.extract_strided_slice %63 {offsets = [0, 64], sizes = [16, 32], strides = [1, 1]} : vector<16x128xbf16> to vector<16x32xbf16>
    %cst_58 = arith.constant dense<0.000000e+00> : vector<1x32xf32>
    %120 = tpu.matmul %118, %119, %cst_58 {dimension_numbers = #tpu.dot_dimension_numbers<[1], [0], [0], [1], [0, 0, 1, 1], [], []>} : vector<1x16xbf16>, vector<16x32xbf16>, vector<1x32xf32> -> vector<1x32xf32>
    %121 = vector.extract_strided_slice %42 {offsets = [0, 96], sizes = [1, 32], strides = [1, 1]} : vector<1x128xf32> to vector<1x32xf32>
    %122 = arith.truncf %121 : vector<1x32xf32> to vector<1x32xbf16>
    %123 = vector.extract_strided_slice %61 {offsets = [0, 96], sizes = [16, 32], strides = [1, 1]} : vector<16x128xbf16> to vector<16x32xbf16>
    %cst_59 = arith.constant dense<0.000000e+00> : vector<1x16xf32>
    %124 = tpu.matmul %122, %123, %cst_59 {dimension_numbers = #tpu.dot_dimension_numbers<[1], [1], [0], [0], [0, 0, 1, 0], [], []>} : vector<1x32xbf16>, vector<16x32xbf16>, vector<1x16xf32> -> vector<1x16xf32>
    %cst_60 = arith.constant 0.176776692 : f32
    %125 = vector.broadcast %cst_60 : f32 to vector<1x16xf32>
    %126 = arith.mulf %124, %125 : vector<1x16xf32>
    %127 = arith.addf %126, %17 : vector<1x16xf32>
    %cst_61 = arith.constant dense<0xFF800000> : vector<1xf32>
    %128 = vector.multi_reduction <maximumf>, %127, %cst_61 [1] : vector<1x16xf32> to vector<1xf32>
    %129 = vector.shape_cast %128 : vector<1xf32> to vector<1x1xf32>
    %130 = vector.broadcast %129 : vector<1x1xf32> to vector<1x16xf32>
    %131 = arith.subf %127, %130 : vector<1x16xf32>
    %132 = math.exp %131 : vector<1x16xf32>
    %cst_62 = arith.constant dense<0.000000e+00> : vector<1xf32>
    %133 = vector.multi_reduction <add>, %132, %cst_62 [1] : vector<1x16xf32> to vector<1xf32>
    %134 = vector.shape_cast %133 : vector<1xf32> to vector<1x1xf32>
    %135 = vector.broadcast %134 : vector<1x1xf32> to vector<1x16xf32>
    %136 = arith.divf %132, %135 : vector<1x16xf32>
    %137 = arith.truncf %136 : vector<1x16xf32> to vector<1x16xbf16>
    %138 = vector.extract_strided_slice %63 {offsets = [0, 96], sizes = [16, 32], strides = [1, 1]} : vector<16x128xbf16> to vector<16x32xbf16>
    %cst_63 = arith.constant dense<0.000000e+00> : vector<1x32xf32>
    %139 = tpu.matmul %137, %138, %cst_63 {dimension_numbers = #tpu.dot_dimension_numbers<[1], [0], [0], [1], [0, 0, 1, 1], [], []>} : vector<1x16xbf16>, vector<16x32xbf16>, vector<1x32xf32> -> vector<1x32xf32>
    %140 = tpu.concatenate %82, %101, %120, %139 in 1 : vector<1x32xf32>, vector<1x32xf32>, vector<1x32xf32>, vector<1x32xf32> -> vector<1x128xf32>
    %141 = arith.truncf %140 : vector<1x128xf32> to vector<1x128xbf16>
    %c0_64 = arith.constant 0 : index
    %c0_65 = arith.constant 0 : index
    %c0_66 = arith.constant 0 : index
    %142 = vector.load %arg4[%c0_64, %c0_65, %c0_66] : memref<2x128x128xbf16, #tpu.memory_space<vmem>>, vector<1x128x128xbf16>
    %143 = vector.shape_cast %142 : vector<1x128x128xbf16> to vector<128x128xbf16>
    %cst_67 = arith.constant dense<0.000000e+00> : vector<1x128xf32>
    %144 = tpu.matmul %141, %143, %cst_67 {dimension_numbers = #tpu.dot_dimension_numbers<[1], [0], [0], [1], [0, 0, 1, 1], [], []>} : vector<1x128xbf16>, vector<128x128xbf16>, vector<1x128xf32> -> vector<1x128xf32>
    %145 = arith.addf %2, %144 : vector<1x128xf32>
    %146 = arith.mulf %145, %145 : vector<1x128xf32>
    %cst_68 = arith.constant dense<0.000000e+00> : vector<1xf32>
    %147 = vector.multi_reduction <add>, %146, %cst_68 [1] : vector<1x128xf32> to vector<1xf32>
    %148 = vector.shape_cast %147 : vector<1xf32> to vector<1x1xf32>
    %cst_69 = arith.constant 1.280000e+02 : f32
    %149 = vector.broadcast %cst_69 : f32 to vector<1x1xf32>
    %150 = arith.divf %148, %149 : vector<1x1xf32>
    %cst_70 = arith.constant 9.99999997E-7 : f32
    %151 = vector.broadcast %cst_70 : f32 to vector<1x1xf32>
    %152 = arith.addf %150, %151 : vector<1x1xf32>
    %153 = math.rsqrt %152 : vector<1x1xf32>
    %154 = vector.broadcast %153 : vector<1x1xf32> to vector<1x128xf32>
    %155 = arith.mulf %145, %154 : vector<1x128xf32>
    %c0_71 = arith.constant 0 : index
    %c0_72 = arith.constant 0 : index
    %c0_73 = arith.constant 0 : index
    %156 = vector.load %arg5[%c0_71, %c0_72, %c0_73] : memref<2x1x128xf32, #tpu.memory_space<vmem>>, vector<1x1x128xf32>
    %157 = vector.shape_cast %156 : vector<1x1x128xf32> to vector<1x128xf32>
    %158 = arith.mulf %155, %157 : vector<1x128xf32>
    %159 = arith.truncf %158 : vector<1x128xf32> to vector<1x128xbf16>
    %c0_74 = arith.constant 0 : index
    %c0_75 = arith.constant 0 : index
    %c0_76 = arith.constant 0 : index
    %160 = vector.load %arg6[%c0_74, %c0_75, %c0_76] : memref<2x128x512xbf16, #tpu.memory_space<vmem>>, vector<1x128x512xbf16>
    %161 = vector.shape_cast %160 : vector<1x128x512xbf16> to vector<128x512xbf16>
    %cst_77 = arith.constant dense<0.000000e+00> : vector<1x512xf32>
    %162 = tpu.matmul %159, %161, %cst_77 {dimension_numbers = #tpu.dot_dimension_numbers<[1], [0], [0], [1], [0, 0, 1, 1], [], []>} : vector<1x128xbf16>, vector<128x512xbf16>, vector<1x512xf32> -> vector<1x512xf32>
    %163 = vector.extract_strided_slice %162 {offsets = [0, 0], sizes = [1, 256], strides = [1, 1]} : vector<1x512xf32> to vector<1x256xf32>
    %164 = vector.extract_strided_slice %162 {offsets = [0, 256], sizes = [1, 256], strides = [1, 1]} : vector<1x512xf32> to vector<1x256xf32>
    %165 = arith.negf %163 : vector<1x256xf32>
    %166 = math.exp %165 : vector<1x256xf32>
    %cst_78 = arith.constant 1.000000e+00 : f32
    %167 = vector.broadcast %cst_78 : f32 to vector<1x256xf32>
    %168 = arith.addf %167, %166 : vector<1x256xf32>
    %169 = arith.divf %167, %168 : vector<1x256xf32>
    %170 = arith.mulf %163, %169 : vector<1x256xf32>
    %171 = arith.mulf %170, %164 : vector<1x256xf32>
    %172 = arith.truncf %171 : vector<1x256xf32> to vector<1x256xbf16>
    %c0_79 = arith.constant 0 : index
    %c0_80 = arith.constant 0 : index
    %c0_81 = arith.constant 0 : index
    %173 = vector.load %arg7[%c0_79, %c0_80, %c0_81] : memref<2x256x128xbf16, #tpu.memory_space<vmem>>, vector<1x256x128xbf16>
    %174 = vector.shape_cast %173 : vector<1x256x128xbf16> to vector<256x128xbf16>
    %cst_82 = arith.constant dense<0.000000e+00> : vector<1x128xf32>
    %175 = tpu.matmul %172, %174, %cst_82 {dimension_numbers = #tpu.dot_dimension_numbers<[1], [0], [0], [1], [0, 0, 1, 1], [], []>} : vector<1x256xbf16>, vector<256x128xbf16>, vector<1x128xf32> -> vector<1x128xf32>
    %176 = arith.addf %145, %175 : vector<1x128xf32>
    %177 = arith.mulf %176, %176 : vector<1x128xf32>
    %cst_83 = arith.constant dense<0.000000e+00> : vector<1xf32>
    %178 = vector.multi_reduction <add>, %177, %cst_83 [1] : vector<1x128xf32> to vector<1xf32>
    %179 = vector.shape_cast %178 : vector<1xf32> to vector<1x1xf32>
    %cst_84 = arith.constant 1.280000e+02 : f32
    %180 = vector.broadcast %cst_84 : f32 to vector<1x1xf32>
    %181 = arith.divf %179, %180 : vector<1x1xf32>
    %cst_85 = arith.constant 9.99999997E-7 : f32
    %182 = vector.broadcast %cst_85 : f32 to vector<1x1xf32>
    %183 = arith.addf %181, %182 : vector<1x1xf32>
    %184 = math.rsqrt %183 : vector<1x1xf32>
    %185 = vector.broadcast %184 : vector<1x1xf32> to vector<1x128xf32>
    %186 = arith.mulf %176, %185 : vector<1x128xf32>
    %c1 = arith.constant 1 : index
    %c0_86 = arith.constant 0 : index
    %c0_87 = arith.constant 0 : index
    %187 = vector.load %arg2[%c1, %c0_86, %c0_87] : memref<2x1x128xf32, #tpu.memory_space<vmem>>, vector<1x1x128xf32>
    %188 = vector.shape_cast %187 : vector<1x1x128xf32> to vector<1x128xf32>
    %189 = arith.mulf %186, %188 : vector<1x128xf32>
    %190 = arith.truncf %189 : vector<1x128xf32> to vector<1x128xbf16>
    %c1_88 = arith.constant 1 : index
    %c0_89 = arith.constant 0 : index
    %c0_90 = arith.constant 0 : index
    %191 = vector.load %arg3[%c1_88, %c0_89, %c0_90] : memref<2x128x384xbf16, #tpu.memory_space<vmem>>, vector<1x128x384xbf16>
    %192 = vector.shape_cast %191 : vector<1x128x384xbf16> to vector<128x384xbf16>
    %cst_91 = arith.constant dense<0.000000e+00> : vector<1x384xf32>
    %193 = tpu.matmul %190, %192, %cst_91 {dimension_numbers = #tpu.dot_dimension_numbers<[1], [0], [0], [1], [0, 0, 1, 1], [], []>} : vector<1x128xbf16>, vector<128x384xbf16>, vector<1x384xf32> -> vector<1x384xf32>
    %194 = vector.extract_strided_slice %193 {offsets = [0, 0], sizes = [1, 128], strides = [1, 1]} : vector<1x384xf32> to vector<1x128xf32>
    %195 = arith.mulf %194, %7 : vector<1x128xf32>
    %c112_i32_92 = arith.constant 112 : i32
    %196 = tpu.dynamic_rotate %194 by %c112_i32_92 dim 1 : vector<1x128xf32>, i32 -> vector<1x128xf32>
    %197 = arith.mulf %196, %8 : vector<1x128xf32>
    %198 = arith.addf %195, %197 : vector<1x128xf32>
    %c16_i32_93 = arith.constant 16 : i32
    %199 = tpu.dynamic_rotate %194 by %c16_i32_93 dim 1 : vector<1x128xf32>, i32 -> vector<1x128xf32>
    %200 = arith.mulf %199, %9 : vector<1x128xf32>
    %201 = arith.addf %198, %200 : vector<1x128xf32>
    %202 = vector.extract_strided_slice %193 {offsets = [0, 128], sizes = [1, 128], strides = [1, 1]} : vector<1x384xf32> to vector<1x128xf32>
    %203 = arith.mulf %202, %7 : vector<1x128xf32>
    %c112_i32_94 = arith.constant 112 : i32
    %204 = tpu.dynamic_rotate %202 by %c112_i32_94 dim 1 : vector<1x128xf32>, i32 -> vector<1x128xf32>
    %205 = arith.mulf %204, %8 : vector<1x128xf32>
    %206 = arith.addf %203, %205 : vector<1x128xf32>
    %c16_i32_95 = arith.constant 16 : i32
    %207 = tpu.dynamic_rotate %202 by %c16_i32_95 dim 1 : vector<1x128xf32>, i32 -> vector<1x128xf32>
    %208 = arith.mulf %207, %9 : vector<1x128xf32>
    %209 = arith.addf %206, %208 : vector<1x128xf32>
    %210 = vector.extract_strided_slice %193 {offsets = [0, 256], sizes = [1, 128], strides = [1, 1]} : vector<1x384xf32> to vector<1x128xf32>
    %211 = arith.truncf %209 : vector<1x128xf32> to vector<1x128xbf16>
    %c1_96 = arith.constant 1 : index
    %c8_97 = arith.constant 8 : index
    %c0_98 = arith.constant 0 : index
    %212 = vector.load %arg17[%c1_96, %c8_97, %c0_98] : memref<2x16x128xbf16, #tpu.memory_space<vmem>>, vector<1x1x128xbf16>
    %213 = vector.shape_cast %212 : vector<1x1x128xbf16> to vector<1x128xbf16>
    %214 = vector.shape_cast %211 : vector<1x128xbf16> to vector<1x1x128xbf16>
    tpu.vector_store %arg17[%c1_96, %c8_97, %c0_98], %214 {strides = array<i32>} : memref<2x16x128xbf16, #tpu.memory_space<vmem>>, vector<1x1x128xbf16>,
    %215 = arith.truncf %210 : vector<1x128xf32> to vector<1x128xbf16>
    %c1_99 = arith.constant 1 : index
    %c8_100 = arith.constant 8 : index
    %c0_101 = arith.constant 0 : index
    %216 = vector.load %arg18[%c1_99, %c8_100, %c0_101] : memref<2x16x128xbf16, #tpu.memory_space<vmem>>, vector<1x1x128xbf16>
    %217 = vector.shape_cast %216 : vector<1x1x128xbf16> to vector<1x128xbf16>
    %218 = vector.shape_cast %215 : vector<1x128xbf16> to vector<1x1x128xbf16>
    tpu.vector_store %arg18[%c1_99, %c8_100, %c0_101], %218 {strides = array<i32>} : memref<2x16x128xbf16, #tpu.memory_space<vmem>>, vector<1x1x128xbf16>,
    %c1_102 = arith.constant 1 : index
    %c0_103 = arith.constant 0 : index
    %c0_104 = arith.constant 0 : index
    %219 = vector.load %arg17[%c1_102, %c0_103, %c0_104] : memref<2x16x128xbf16, #tpu.memory_space<vmem>>, vector<1x16x128xbf16>
    %220 = vector.shape_cast %219 : vector<1x16x128xbf16> to vector<16x128xbf16>
    %c1_105 = arith.constant 1 : index
    %c0_106 = arith.constant 0 : index
    %c0_107 = arith.constant 0 : index
    %221 = vector.load %arg18[%c1_105, %c0_106, %c0_107] : memref<2x16x128xbf16, #tpu.memory_space<vmem>>, vector<1x16x128xbf16>
    %222 = vector.shape_cast %221 : vector<1x16x128xbf16> to vector<16x128xbf16>
    %223 = vector.extract_strided_slice %201 {offsets = [0, 0], sizes = [1, 32], strides = [1, 1]} : vector<1x128xf32> to vector<1x32xf32>
    %224 = arith.truncf %223 : vector<1x32xf32> to vector<1x32xbf16>
    %225 = vector.extract_strided_slice %220 {offsets = [0, 0], sizes = [16, 32], strides = [1, 1]} : vector<16x128xbf16> to vector<16x32xbf16>
    %cst_108 = arith.constant dense<0.000000e+00> : vector<1x16xf32>
    %226 = tpu.matmul %224, %225, %cst_108 {dimension_numbers = #tpu.dot_dimension_numbers<[1], [1], [0], [0], [0, 0, 1, 0], [], []>} : vector<1x32xbf16>, vector<16x32xbf16>, vector<1x16xf32> -> vector<1x16xf32>
    %cst_109 = arith.constant 0.176776692 : f32
    %227 = vector.broadcast %cst_109 : f32 to vector<1x16xf32>
    %228 = arith.mulf %226, %227 : vector<1x16xf32>
    %229 = arith.addf %228, %17 : vector<1x16xf32>
    %cst_110 = arith.constant dense<0xFF800000> : vector<1xf32>
    %230 = vector.multi_reduction <maximumf>, %229, %cst_110 [1] : vector<1x16xf32> to vector<1xf32>
    %231 = vector.shape_cast %230 : vector<1xf32> to vector<1x1xf32>
    %232 = vector.broadcast %231 : vector<1x1xf32> to vector<1x16xf32>
    %233 = arith.subf %229, %232 : vector<1x16xf32>
    %234 = math.exp %233 : vector<1x16xf32>
    %cst_111 = arith.constant dense<0.000000e+00> : vector<1xf32>
    %235 = vector.multi_reduction <add>, %234, %cst_111 [1] : vector<1x16xf32> to vector<1xf32>
    %236 = vector.shape_cast %235 : vector<1xf32> to vector<1x1xf32>
    %237 = vector.broadcast %236 : vector<1x1xf32> to vector<1x16xf32>
    %238 = arith.divf %234, %237 : vector<1x16xf32>
    %239 = arith.truncf %238 : vector<1x16xf32> to vector<1x16xbf16>
    %240 = vector.extract_strided_slice %222 {offsets = [0, 0], sizes = [16, 32], strides = [1, 1]} : vector<16x128xbf16> to vector<16x32xbf16>
    %cst_112 = arith.constant dense<0.000000e+00> : vector<1x32xf32>
    %241 = tpu.matmul %239, %240, %cst_112 {dimension_numbers = #tpu.dot_dimension_numbers<[1], [0], [0], [1], [0, 0, 1, 1], [], []>} : vector<1x16xbf16>, vector<16x32xbf16>, vector<1x32xf32> -> vector<1x32xf32>
    %242 = vector.extract_strided_slice %201 {offsets = [0, 32], sizes = [1, 32], strides = [1, 1]} : vector<1x128xf32> to vector<1x32xf32>
    %243 = arith.truncf %242 : vector<1x32xf32> to vector<1x32xbf16>
    %244 = vector.extract_strided_slice %220 {offsets = [0, 32], sizes = [16, 32], strides = [1, 1]} : vector<16x128xbf16> to vector<16x32xbf16>
    %cst_113 = arith.constant dense<0.000000e+00> : vector<1x16xf32>
    %245 = tpu.matmul %243, %244, %cst_113 {dimension_numbers = #tpu.dot_dimension_numbers<[1], [1], [0], [0], [0, 0, 1, 0], [], []>} : vector<1x32xbf16>, vector<16x32xbf16>, vector<1x16xf32> -> vector<1x16xf32>
    %cst_114 = arith.constant 0.176776692 : f32
    %246 = vector.broadcast %cst_114 : f32 to vector<1x16xf32>
    %247 = arith.mulf %245, %246 : vector<1x16xf32>
    %248 = arith.addf %247, %17 : vector<1x16xf32>
    %cst_115 = arith.constant dense<0xFF800000> : vector<1xf32>
    %249 = vector.multi_reduction <maximumf>, %248, %cst_115 [1] : vector<1x16xf32> to vector<1xf32>
    %250 = vector.shape_cast %249 : vector<1xf32> to vector<1x1xf32>
    %251 = vector.broadcast %250 : vector<1x1xf32> to vector<1x16xf32>
    %252 = arith.subf %248, %251 : vector<1x16xf32>
    %253 = math.exp %252 : vector<1x16xf32>
    %cst_116 = arith.constant dense<0.000000e+00> : vector<1xf32>
    %254 = vector.multi_reduction <add>, %253, %cst_116 [1] : vector<1x16xf32> to vector<1xf32>
    %255 = vector.shape_cast %254 : vector<1xf32> to vector<1x1xf32>
    %256 = vector.broadcast %255 : vector<1x1xf32> to vector<1x16xf32>
    %257 = arith.divf %253, %256 : vector<1x16xf32>
    %258 = arith.truncf %257 : vector<1x16xf32> to vector<1x16xbf16>
    %259 = vector.extract_strided_slice %222 {offsets = [0, 32], sizes = [16, 32], strides = [1, 1]} : vector<16x128xbf16> to vector<16x32xbf16>
    %cst_117 = arith.constant dense<0.000000e+00> : vector<1x32xf32>
    %260 = tpu.matmul %258, %259, %cst_117 {dimension_numbers = #tpu.dot_dimension_numbers<[1], [0], [0], [1], [0, 0, 1, 1], [], []>} : vector<1x16xbf16>, vector<16x32xbf16>, vector<1x32xf32> -> vector<1x32xf32>
    %261 = vector.extract_strided_slice %201 {offsets = [0, 64], sizes = [1, 32], strides = [1, 1]} : vector<1x128xf32> to vector<1x32xf32>
    %262 = arith.truncf %261 : vector<1x32xf32> to vector<1x32xbf16>
    %263 = vector.extract_strided_slice %220 {offsets = [0, 64], sizes = [16, 32], strides = [1, 1]} : vector<16x128xbf16> to vector<16x32xbf16>
    %cst_118 = arith.constant dense<0.000000e+00> : vector<1x16xf32>
    %264 = tpu.matmul %262, %263, %cst_118 {dimension_numbers = #tpu.dot_dimension_numbers<[1], [1], [0], [0], [0, 0, 1, 0], [], []>} : vector<1x32xbf16>, vector<16x32xbf16>, vector<1x16xf32> -> vector<1x16xf32>
    %cst_119 = arith.constant 0.176776692 : f32
    %265 = vector.broadcast %cst_119 : f32 to vector<1x16xf32>
    %266 = arith.mulf %264, %265 : vector<1x16xf32>
    %267 = arith.addf %266, %17 : vector<1x16xf32>
    %cst_120 = arith.constant dense<0xFF800000> : vector<1xf32>
    %268 = vector.multi_reduction <maximumf>, %267, %cst_120 [1] : vector<1x16xf32> to vector<1xf32>
    %269 = vector.shape_cast %268 : vector<1xf32> to vector<1x1xf32>
    %270 = vector.broadcast %269 : vector<1x1xf32> to vector<1x16xf32>
    %271 = arith.subf %267, %270 : vector<1x16xf32>
    %272 = math.exp %271 : vector<1x16xf32>
    %cst_121 = arith.constant dense<0.000000e+00> : vector<1xf32>
    %273 = vector.multi_reduction <add>, %272, %cst_121 [1] : vector<1x16xf32> to vector<1xf32>
    %274 = vector.shape_cast %273 : vector<1xf32> to vector<1x1xf32>
    %275 = vector.broadcast %274 : vector<1x1xf32> to vector<1x16xf32>
    %276 = arith.divf %272, %275 : vector<1x16xf32>
    %277 = arith.truncf %276 : vector<1x16xf32> to vector<1x16xbf16>
    %278 = vector.extract_strided_slice %222 {offsets = [0, 64], sizes = [16, 32], strides = [1, 1]} : vector<16x128xbf16> to vector<16x32xbf16>
    %cst_122 = arith.constant dense<0.000000e+00> : vector<1x32xf32>
    %279 = tpu.matmul %277, %278, %cst_122 {dimension_numbers = #tpu.dot_dimension_numbers<[1], [0], [0], [1], [0, 0, 1, 1], [], []>} : vector<1x16xbf16>, vector<16x32xbf16>, vector<1x32xf32> -> vector<1x32xf32>
    %280 = vector.extract_strided_slice %201 {offsets = [0, 96], sizes = [1, 32], strides = [1, 1]} : vector<1x128xf32> to vector<1x32xf32>
    %281 = arith.truncf %280 : vector<1x32xf32> to vector<1x32xbf16>
    %282 = vector.extract_strided_slice %220 {offsets = [0, 96], sizes = [16, 32], strides = [1, 1]} : vector<16x128xbf16> to vector<16x32xbf16>
    %cst_123 = arith.constant dense<0.000000e+00> : vector<1x16xf32>
    %283 = tpu.matmul %281, %282, %cst_123 {dimension_numbers = #tpu.dot_dimension_numbers<[1], [1], [0], [0], [0, 0, 1, 0], [], []>} : vector<1x32xbf16>, vector<16x32xbf16>, vector<1x16xf32> -> vector<1x16xf32>
    %cst_124 = arith.constant 0.176776692 : f32
    %284 = vector.broadcast %cst_124 : f32 to vector<1x16xf32>
    %285 = arith.mulf %283, %284 : vector<1x16xf32>
    %286 = arith.addf %285, %17 : vector<1x16xf32>
    %cst_125 = arith.constant dense<0xFF800000> : vector<1xf32>
    %287 = vector.multi_reduction <maximumf>, %286, %cst_125 [1] : vector<1x16xf32> to vector<1xf32>
    %288 = vector.shape_cast %287 : vector<1xf32> to vector<1x1xf32>
    %289 = vector.broadcast %288 : vector<1x1xf32> to vector<1x16xf32>
    %290 = arith.subf %286, %289 : vector<1x16xf32>
    %291 = math.exp %290 : vector<1x16xf32>
    %cst_126 = arith.constant dense<0.000000e+00> : vector<1xf32>
    %292 = vector.multi_reduction <add>, %291, %cst_126 [1] : vector<1x16xf32> to vector<1xf32>
    %293 = vector.shape_cast %292 : vector<1xf32> to vector<1x1xf32>
    %294 = vector.broadcast %293 : vector<1x1xf32> to vector<1x16xf32>
    %295 = arith.divf %291, %294 : vector<1x16xf32>
    %296 = arith.truncf %295 : vector<1x16xf32> to vector<1x16xbf16>
    %297 = vector.extract_strided_slice %222 {offsets = [0, 96], sizes = [16, 32], strides = [1, 1]} : vector<16x128xbf16> to vector<16x32xbf16>
    %cst_127 = arith.constant dense<0.000000e+00> : vector<1x32xf32>
    %298 = tpu.matmul %296, %297, %cst_127 {dimension_numbers = #tpu.dot_dimension_numbers<[1], [0], [0], [1], [0, 0, 1, 1], [], []>} : vector<1x16xbf16>, vector<16x32xbf16>, vector<1x32xf32> -> vector<1x32xf32>
    %299 = tpu.concatenate %241, %260, %279, %298 in 1 : vector<1x32xf32>, vector<1x32xf32>, vector<1x32xf32>, vector<1x32xf32> -> vector<1x128xf32>
    %300 = arith.truncf %299 : vector<1x128xf32> to vector<1x128xbf16>
    %c1_128 = arith.constant 1 : index
    %c0_129 = arith.constant 0 : index
    %c0_130 = arith.constant 0 : index
    %301 = vector.load %arg4[%c1_128, %c0_129, %c0_130] : memref<2x128x128xbf16, #tpu.memory_space<vmem>>, vector<1x128x128xbf16>
    %302 = vector.shape_cast %301 : vector<1x128x128xbf16> to vector<128x128xbf16>
    %cst_131 = arith.constant dense<0.000000e+00> : vector<1x128xf32>
    %303 = tpu.matmul %300, %302, %cst_131 {dimension_numbers = #tpu.dot_dimension_numbers<[1], [0], [0], [1], [0, 0, 1, 1], [], []>} : vector<1x128xbf16>, vector<128x128xbf16>, vector<1x128xf32> -> vector<1x128xf32>
    %304 = arith.addf %176, %303 : vector<1x128xf32>
    %305 = arith.mulf %304, %304 : vector<1x128xf32>
    %cst_132 = arith.constant dense<0.000000e+00> : vector<1xf32>
    %306 = vector.multi_reduction <add>, %305, %cst_132 [1] : vector<1x128xf32> to vector<1xf32>
    %307 = vector.shape_cast %306 : vector<1xf32> to vector<1x1xf32>
    %cst_133 = arith.constant 1.280000e+02 : f32
    %308 = vector.broadcast %cst_133 : f32 to vector<1x1xf32>
    %309 = arith.divf %307, %308 : vector<1x1xf32>
    %cst_134 = arith.constant 9.99999997E-7 : f32
    %310 = vector.broadcast %cst_134 : f32 to vector<1x1xf32>
    %311 = arith.addf %309, %310 : vector<1x1xf32>
    %312 = math.rsqrt %311 : vector<1x1xf32>
    %313 = vector.broadcast %312 : vector<1x1xf32> to vector<1x128xf32>
    %314 = arith.mulf %304, %313 : vector<1x128xf32>
    %c1_135 = arith.constant 1 : index
    %c0_136 = arith.constant 0 : index
    %c0_137 = arith.constant 0 : index
    %315 = vector.load %arg5[%c1_135, %c0_136, %c0_137] : memref<2x1x128xf32, #tpu.memory_space<vmem>>, vector<1x1x128xf32>
    %316 = vector.shape_cast %315 : vector<1x1x128xf32> to vector<1x128xf32>
    %317 = arith.mulf %314, %316 : vector<1x128xf32>
    %318 = arith.truncf %317 : vector<1x128xf32> to vector<1x128xbf16>
    %c1_138 = arith.constant 1 : index
    %c0_139 = arith.constant 0 : index
    %c0_140 = arith.constant 0 : index
    %319 = vector.load %arg6[%c1_138, %c0_139, %c0_140] : memref<2x128x512xbf16, #tpu.memory_space<vmem>>, vector<1x128x512xbf16>
    %320 = vector.shape_cast %319 : vector<1x128x512xbf16> to vector<128x512xbf16>
    %cst_141 = arith.constant dense<0.000000e+00> : vector<1x512xf32>
    %321 = tpu.matmul %318, %320, %cst_141 {dimension_numbers = #tpu.dot_dimension_numbers<[1], [0], [0], [1], [0, 0, 1, 1], [], []>} : vector<1x128xbf16>, vector<128x512xbf16>, vector<1x512xf32> -> vector<1x512xf32>
    %322 = vector.extract_strided_slice %321 {offsets = [0, 0], sizes = [1, 256], strides = [1, 1]} : vector<1x512xf32> to vector<1x256xf32>
    %323 = vector.extract_strided_slice %321 {offsets = [0, 256], sizes = [1, 256], strides = [1, 1]} : vector<1x512xf32> to vector<1x256xf32>
    %324 = arith.negf %322 : vector<1x256xf32>
    %325 = math.exp %324 : vector<1x256xf32>
    %cst_142 = arith.constant 1.000000e+00 : f32
    %326 = vector.broadcast %cst_142 : f32 to vector<1x256xf32>
    %327 = arith.addf %326, %325 : vector<1x256xf32>
    %328 = arith.divf %326, %327 : vector<1x256xf32>
    %329 = arith.mulf %322, %328 : vector<1x256xf32>
    %330 = arith.mulf %329, %323 : vector<1x256xf32>
    %331 = arith.truncf %330 : vector<1x256xf32> to vector<1x256xbf16>
    %c1_143 = arith.constant 1 : index
    %c0_144 = arith.constant 0 : index
    %c0_145 = arith.constant 0 : index
    %332 = vector.load %arg7[%c1_143, %c0_144, %c0_145] : memref<2x256x128xbf16, #tpu.memory_space<vmem>>, vector<1x256x128xbf16>
    %333 = vector.shape_cast %332 : vector<1x256x128xbf16> to vector<256x128xbf16>
    %cst_146 = arith.constant dense<0.000000e+00> : vector<1x128xf32>
    %334 = tpu.matmul %331, %333, %cst_146 {dimension_numbers = #tpu.dot_dimension_numbers<[1], [0], [0], [1], [0, 0, 1, 1], [], []>} : vector<1x256xbf16>, vector<256x128xbf16>, vector<1x128xf32> -> vector<1x128xf32>
    %335 = arith.addf %304, %334 : vector<1x128xf32>
    %336 = arith.mulf %335, %335 : vector<1x128xf32>
    %cst_147 = arith.constant dense<0.000000e+00> : vector<1xf32>
    %337 = vector.multi_reduction <add>, %336, %cst_147 [1] : vector<1x128xf32> to vector<1xf32>
    %338 = vector.shape_cast %337 : vector<1xf32> to vector<1x1xf32>
    %cst_148 = arith.constant 1.280000e+02 : f32
    %339 = vector.broadcast %cst_148 : f32 to vector<1x1xf32>
    %340 = arith.divf %338, %339 : vector<1x1xf32>
    %cst_149 = arith.constant 9.99999997E-7 : f32
    %341 = vector.broadcast %cst_149 : f32 to vector<1x1xf32>
    %342 = arith.addf %340, %341 : vector<1x1xf32>
    %343 = math.rsqrt %342 : vector<1x1xf32>
    %344 = vector.broadcast %343 : vector<1x1xf32> to vector<1x128xf32>
    %345 = arith.mulf %335, %344 : vector<1x128xf32>
    %c0_150 = arith.constant 0 : index
    %c0_151 = arith.constant 0 : index
    %346 = vector.load %arg8[%c0_150, %c0_151] : memref<1x128xf32, #tpu.memory_space<vmem>>, vector<1x128xf32>
    %347 = arith.mulf %345, %346 : vector<1x128xf32>
    %348 = arith.truncf %347 : vector<1x128xf32> to vector<1x128xbf16>
    %c0_152 = arith.constant 0 : index
    %c0_153 = arith.constant 0 : index
    %349 = vector.load %arg9[%c0_152, %c0_153] : memref<128x256xbf16, #tpu.memory_space<vmem>>, vector<128x256xbf16>
    %cst_154 = arith.constant dense<0.000000e+00> : vector<1x256xf32>
    %350 = tpu.matmul %348, %349, %cst_154 {dimension_numbers = #tpu.dot_dimension_numbers<[1], [0], [0], [1], [0, 0, 1, 1], [], []>} : vector<1x128xbf16>, vector<128x256xbf16>, vector<1x256xf32> -> vector<1x256xf32>
    %c0_155 = arith.constant 0 : index
    %c0_156 = arith.constant 0 : index
    %351 = vector.load %arg15[%c0_155, %c0_156] : memref<1x256xf32, #tpu.memory_space<vmem>>, vector<1x256xf32>
    tpu.vector_store %arg15[%c0_155, %c0_156], %350 {strides = array<i32>} : memref<1x256xf32, #tpu.memory_space<vmem>>, vector<1x256xf32>,
    %cst_157 = arith.constant dense<0xFF800000> : vector<1xf32>
    %352 = vector.multi_reduction <maximumf>, %350, %cst_157 [1] : vector<1x256xf32> to vector<1xf32>
    %353 = vector.shape_cast %352 : vector<1xf32> to vector<1x1xf32>
    %354 = tpu.iota {dimensions = array<i32: 1>} : vector<1x256xi32>
    %355 = vector.broadcast %353 : vector<1x1xf32> to vector<1x256xf32>
    %356 = arith.cmpf oeq, %350, %355 : vector<1x256xf32>
    %c256_i32 = arith.constant 256 : i32
    %357 = vector.broadcast %c256_i32 : i32 to vector<1x256xi32>
    %358 = arith.select %356, %354, %357 : vector<1x256xi1>, vector<1x256xi32>
    %cst_158 = arith.constant dense<2147483647> : vector<1xi32>
    %359 = vector.multi_reduction <minsi>, %358, %cst_158 [1] : vector<1x256xi32> to vector<1xi32>
    %360 = vector.shape_cast %359 : vector<1xi32> to vector<1x1xi32>
    %c0_159 = arith.constant 0 : index
    %c0_160 = arith.constant 0 : index
    %361 = vector.load %arg16[%c0_159, %c0_160] : memref<1x1xi32, #tpu.memory_space<vmem>>, vector<1x1xi32>
    tpu.vector_store %arg16[%c0_159, %c0_160], %360 {strides = array<i32>} : memref<1x1xi32, #tpu.memory_space<vmem>>, vector<1x1xi32>,
    return
  }
}

</mosaic_0001>

<bundles_post_ra>
// kernel: tile.34
= control target key start
LH: loop header
LB: loop body
LE: loop exit
PB: predicated region body
PF: predicated region fallthrough
CT: control target
= control target key end

     0   :  { %vm42_vm0 = vcmask 1047556   ;;  %vm44_vm1 = vcmask 261120   ;;  %s93_s22 = smov 32   ;;  %s94_s25 = smov 64   ;;  %vm54_vm2 = vcmask 1048320   ;;  %vm64_vm3 = vcmask 785920   ;;  %s146_s0 = inlined_call_operand.vmem [shape: f32[8,4,32], index: 0, kind: input, shape index: {}]   ;;  %s147_s1 = inlined_call_operand.vmem [shape: f32[8,128], index: 1, kind: output, shape index: {}]  }
   0x1   :  { %v82_v0 = vld [vmem:[%s146_s0 + $0x1c] sm:$0xf]  ;;  %v83_v1 = vld [vmem:[%s146_s0 + $0x18] sm:$0xf]  ;;  %v84_v2 = vld [vmem:[%s146_s0 + $0x14] sm:$0xf] }
   0x2   :  { %8 = vst [vmem:[#allocation0 + $0x38] sm:$0xf] %v82_v0  ;;  %13 = vst [vmem:[#allocation0 + $0x30] sm:$0xf] %v83_v1  ;;  %v85_v3 = vld [vmem:[%s146_s0 + $0x10] sm:$0xf] }
   0x3   :  { %18 = vst [vmem:[#allocation0 + $0x28] sm:$0xf] %v84_v2  ;;  %v86_v4 = vld [vmem:[%s146_s0 + $0xc] sm:$0xf]  ;;  %v87_v5 = vld [vmem:[%s146_s0 + $0x8] sm:$0xf] }
   0x4   :  { %23 = vst [vmem:[#allocation0 + $0x20] sm:$0xf] %v85_v3  ;;  %28 = vst [vmem:[#allocation0 + $0x18] sm:$0xf] %v86_v4  ;;  %v88_v6 = vld [vmem:[%s146_s0 + $0x4] sm:$0xf] }
   0x5   :  { %33 = vst [vmem:[#allocation0 + $0x10] sm:$0xf] %v87_v5  ;;  %v38_v7 = vld [vmem:[%s146_s0] sm:$0xf]  ;;  %37 = vst [vmem:[#allocation0 + $0x8] sm:$0xf] %v88_v6 }
   0x6   :  { %39 = vst [vmem:[#allocation0] sm:$0xf] %v38_v7  ;;  %s92_s0 = smov 96   ;;  %vm74_vm4 = vcmask 523520  }
   0xb   :  { %v49_v8 = vld [vmem:[#allocation0 + $0x3] ss:$8 sm:$0xf0]   ;;  %v59_v9 = vld [vmem:[#allocation0 + $0x2] ss:$8 sm:$0xf0]  }
   0xc   :  { %v69_v14 = vld [vmem:[#allocation0 + $0x1] ss:$8 sm:$0xf0]   ;;  %v41_v17 = vld [vmem:[#allocation0] ss:$8 sm:$0xf0]  }
   0xd   :  { %v47_v10 = vld [vmem:[#allocation0 + $0x3] ss:$8 sm:$0xf]   ;;  %v57_v11 = vld [vmem:[#allocation0 + $0x2] ss:$8 sm:$0xf]  }
   0xe   :  { %v51_v12 = vsel %vm42_vm0, %v49_v8, %v47_v10  ;;  %v67_v13 = vld [vmem:[#allocation0 + $0x1] ss:$8 sm:$0xf]   ;;  %v40_v16 = vld [vmem:[#allocation0] ss:$8 sm:$0xf]   ;;  %v61_v18 = vsel %vm42_vm0, %v59_v9, %v57_v11 }
   0xf   :  { %52 = vrot.lane.b32.xlu0 %v51_v12, %s92_s0  ;;  %v71_v15 = vsel %vm42_vm0, %v69_v14, %v67_v13  ;;  %v43_v19 = vsel %vm42_vm0, %v41_v17, %v40_v16 }
  0x10   :  { %72 = vrot.lane.b32.xlu1 %v71_v15, %s93_s22  ;;  %45 = vst.msk [vmem:[%s147_s1] sm:$0xff] %vm44_vm1, %v43_v19  }
  0x13   :  { %62 = vrot.lane.b32.xlu0 %v61_v18, %s94_s25 }
  0x81   :  { %v53_v20 = vpop.permute.xlu0 %52  }
  0x82   :  { %55 = vst.msk [vmem:[%s147_s1] sm:$0xff] %vm54_vm2, %v53_v20   ;;  %v73_v21 = vpop.permute.xlu1 %72  }
  0x85   :  { %v63_v22 = vpop.permute.xlu0 %62  }
  0x86   :  { %65 = vst.msk [vmem:[%s147_s1] sm:$0xff] %vm64_vm3, %v63_v22  }
  0x87   :  { %75 = vst.msk [vmem:[%s147_s1] sm:$0xff] %vm74_vm4, %v73_v21  }

// kernel: combined_forward.3
= control target key start
LH: loop header
LB: loop body
LE: loop exit
PB: predicated region body
PF: predicated region fallthrough
CT: control target
= control target key end

     0   :  { %s5000_s0 = inlined_call_operand.<no memory space> [shape: s32[1,1], index: 0, kind: input, shape index: {}]   ;;  %s5001_s1 = inlined_call_operand.vmem [shape: f32[256,128], index: 1, kind: input, shape index: {}]   ;;  %s5002_s2 = inlined_call_operand.vmem [shape: f32[2,1,128], index: 2, kind: input, shape index: {}, may-alias: {2,5}]   ;;  %s5003_s3 = inlined_call_operand.vmem [shape: bf16[2,128,384], index: 3, kind: input, shape index: {}]   ;;  %s5004_s4 = inlined_call_operand.vmem [shape: bf16[2,128,128], index: 4, kind: input, shape index: {}]   ;;  %s5005_s5 = inlined_call_operand.vmem [shape: f32[2,1,128], index: 5, kind: input, shape index: {}, may-alias: {2,5}]   ;;  %s5006_s6 = inlined_call_operand.vmem [shape: bf16[2,128,512], index: 6, kind: input, shape index: {}]   ;;  %s5007_s7 = inlined_call_operand.vmem [shape: bf16[2,256,128], index: 7, kind: input, shape index: {}]   ;;  %s5008_s8 = inlined_call_operand.vmem [shape: f32[1,128], index: 8, kind: input, shape index: {}]   ;;  %s5009_s9 = inlined_call_operand.vmem [shape: bf16[128,256], index: 9, kind: input, shape index: {}]   ;;  %s5010_s10 = inlined_call_operand.vmem [shape: f32[1,128], index: 10, kind: input, shape index: {}]   ;;  %s5011_s11 = inlined_call_operand.vmem [shape: f32[1,128], index: 11, kind: input, shape index: {}]   ;;  %s5012_s12 = inlined_call_operand.vmem [shape: f32[1,128], index: 12, kind: input, shape index: {}]   ;;  %s5013_s13 = inlined_call_operand.vmem [shape: bf16[2,16,128], index: 13, kind: input, shape index: {}, may-alias: {13,17}]   ;;  %s5014_s14 = inlined_call_operand.vmem [shape: bf16[2,16,128], index: 14, kind: input, shape index: {}, may-alias: {14,18}]   ;;  %s5015_s15 = inlined_call_operand.hbm [shape: f32[1,256], index: 15, kind: output, shape index: {0}]   ;;  %s5016_s16 = inlined_call_operand.hbm [shape: s32[1,1], index: 16, kind: output, shape index: {1}]   ;;  %s5017_s17 = inlined_call_operand.vmem [shape: bf16[2,16,128], index: 17, kind: output, shape index: {2}, may-alias: {13,17}]   ;;  %s5018_s18 = inlined_call_operand.vmem [shape: bf16[2,16,128], index: 18, kind: output, shape index: {3}, may-alias: {14,18}]  }
   0x1   :  { %5020 = sst [smem:[#allocation9_spill]] %s5000_s0 }
   0x2   :  { %5021 = sst [smem:[#allocation10_spill]] %s5001_s1 }
   0x3   :  { %5022 = sst [smem:[#allocation11_spill]] %s5002_s2 }
   0x4   :  { %5023 = sst [smem:[#allocation12_spill]] %s5008_s8 }
   0x5   :  { %25 = vsyncpa [#allocation4], 0  ;;  %s5024_s29 = sld [smem:[#allocation9_spill]]  ;;  %s5025_s8 = sld [smem:[#allocation10_spill]]  ;;  %vm88_vm0 = vcmask 1040384   ;;  %v3950_v2 = vmov 0.0  }
   0x6   :  { %v3607_v0 = vld [vmem:[%s5003_s3 + $0x4] ss:$12 sps:$4 sm:$0xff]   ;;  %3419 = vmatprep.subr.bf16.mxu1 %v3950_v2  ;;  %v3609_v3 = vld [vmem:[%s5003_s3] ss:$12 sps:$4 sm:$0xff]   ;;  %v3610_v5 = vld [vmem:[%s5003_s3 + $0x8] ss:$12 sps:$4 sm:$0xff]  }
   0x7   :  { %260 = vmatprep.subr.bf16.mxu0 %v3607_v0  ;;  %v3611_v6 = vld [vmem:[%s5003_s3 + $0x1c] ss:$12 sps:$4 sm:$0xff]   ;;  %v3613_v7 = vld [vmem:[%s5003_s3 + $0x18] ss:$12 sps:$4 sm:$0xff]   ;;  %3420 = vmatpush3.bf16.msra.mxu1 %v3610_v5  ;;  %v3614_v9 = vld [vmem:[%s5003_s3 + $0x20] ss:$12 sps:$4 sm:$0xff]  }
   0x8   :  { %261 = vmatpush1.bf16.msra.mxu0 %v3609_v3  ;;  %v3615_v10 = vld [vmem:[%s5003_s3 + $0x34] ss:$12 sps:$4 sm:$0xff]   ;;  %3421 = vmatprep.subr.bf16.mxu1 %v3950_v2  ;;  %v3617_v11 = vld [vmem:[%s5003_s3 + $0x30] ss:$12 sps:$4 sm:$0xff]   ;;  %v3618_v12 = vld [vmem:[%s5003_s3 + $0x38] ss:$12 sps:$4 sm:$0xff]  }
   0x9   :  { %262 = vmatprep.subr.bf16.mxu0 %v3611_v6  ;;  %v3619_v13 = vld [vmem:[%s5003_s3 + $0x4c] ss:$12 sps:$4 sm:$0xff]   ;;  %v3621_v14 = vld [vmem:[%s5003_s3 + $0x48] ss:$12 sps:$4 sm:$0xff]   ;;  %v3622_v15 = vld [vmem:[%s5003_s3 + $0x50] ss:$12 sps:$4 sm:$0xff]  }
   0xa   :  { %v3623_v16 = vld [vmem:[%s5003_s3 + $0x64] ss:$12 sps:$4 sm:$0xff]   ;;  %v3625_v17 = vld [vmem:[%s5003_s3 + $0x60] ss:$12 sps:$4 sm:$0xff]   ;;  %v3626_v18 = vld [vmem:[%s5003_s3 + $0x68] ss:$12 sps:$4 sm:$0xff]  }
   0xb   :  { %s4063_s19 = scalar_lea.vmem %s5025_s8, %s5024_s29  ;;  %3422 = vmatpush3.bf16.msra.mxu1 %v3614_v9  ;;  %v3627_v19 = vld [vmem:[%s5003_s3 + $0x7c] ss:$12 sps:$4 sm:$0xff]   ;;  %v3629_v20 = vld [vmem:[%s5003_s3 + $0x78] ss:$12 sps:$4 sm:$0xff]   ;;  %v3630_v21 = vld [vmem:[%s5003_s3 + $0x80] ss:$12 sps:$4 sm:$0xff]  }
   0xc   :  { %v4069_v1 = vld [vmem:[%s4063_s19] sm:$0x1]  ;;  %263 = vmatpush1.bf16.msra.mxu0 %v3613_v7  ;;  %3423 = vmatprep.subr.bf16.mxu1 %v3950_v2  ;;  %v3633_v23 = vld [vmem:[%s5003_s3 + $0x90] ss:$12 sps:$4 sm:$0xff]   ;;  %v3634_v24 = vld [vmem:[%s5003_s3 + $0x98] ss:$12 sps:$4 sm:$0xff]  }
   0xd   :  { %v87_v4 = vmul.f32 %v4069_v1, %v4069_v1  ;;  %264 = vmatprep.subr.bf16.mxu0 %v3615_v10  ;;  %v3631_v22 = vld [vmem:[%s5003_s3 + $0x94] ss:$12 sps:$4 sm:$0xff]   ;;  %v3951_v25 = vmov 0   ;;  %vm3952_vm1 = vmmov 0   ;;  %v3635_v26 = vld [vmem:[%s5003_s3 + $0xac] ss:$12 sps:$4 sm:$0xff]  }
   0xe   :  { %292 = vmatprep.mubr.bf16.mxu0 %v3951_v25  ;;  %3435 = vmatprep.mubr.msk.bf16.mxu1 %vm3952_vm1, %v3950_v2  ;;  %v3637_v27 = vld [vmem:[%s5003_s3 + $0xa8] ss:$12 sps:$4 sm:$0xff]   ;;  %v3638_v28 = vld [vmem:[%s5003_s3 + $0xb0] ss:$12 sps:$4 sm:$0xff]  }
   0xf   :  { %v89_v8 = vsel %vm88_vm0, %v87_v4, 0.0  ;;  %3424 = vmatpush3.bf16.msra.mxu1 %v3618_v12 }
  0x10   :  { %90 = vadd.xlane.f32.xlu0 %v89_v8  ;;  %265 = vmatpush1.bf16.msra.mxu0 %v3617_v11 }
  0x11   :  { %3425 = vmatprep.subr.bf16.mxu1 %v3950_v2  ;;  %266 = vmatprep.subr.bf16.mxu0 %v3619_v13 }
  0x13   :  { %3426 = vmatpush3.bf16.msra.mxu1 %v3622_v15 }
  0x14   :  { %267 = vmatpush1.bf16.msra.mxu0 %v3621_v14  ;;  %3427 = vmatprep.subr.bf16.mxu1 %v3950_v2 }
  0x15   :  { %268 = vmatprep.subr.bf16.mxu0 %v3623_v16 }
  0x17   :  { %3428 = vmatpush3.bf16.msra.mxu1 %v3626_v18 }
  0x18   :  { %269 = vmatpush1.bf16.msra.mxu0 %v3625_v17  ;;  %3429 = vmatprep.subr.bf16.mxu1 %v3950_v2 }
  0x19   :  { %270 = vmatprep.subr.bf16.mxu0 %v3627_v19 }
  0x1b   :  { %3430 = vmatpush3.bf16.msra.mxu1 %v3630_v21 }
  0x1c   :  { %271 = vmatpush1.bf16.msra.mxu0 %v3629_v20  ;;  %3431 = vmatprep.subr.bf16.mxu1 %v3950_v2 }
  0x1d   :  { %272 = vmatprep.subr.bf16.mxu0 %v3631_v22 }
  0x1f   :  { %3432 = vmatpush3.bf16.msra.mxu1 %v3634_v24 }
  0x20   :  { %273 = vmatpush1.bf16.msra.mxu0 %v3633_v23  ;;  %3433 = vmatprep.subr.bf16.mxu1 %v3950_v2 }
  0x21   :  { %274 = vmatprep.subr.bf16.mxu0 %v3635_v26 }
  0x23   :  { %3434 = vmatpush3.bf16.msra.mxu1 %v3638_v28 }
  0x24   :  { %275 = vmatpush1.bf16.msra.mxu0 %v3637_v27  ;;  %3439 = vmatprep.subr.bf16.mxu1 %v3950_v2 }
  0x25   :  { %3463 = vmatprep.subr.bf16.mxu0 %v3950_v2 }
  0x26   :  { %26 = vsyncpa [#allocation6], 0  ;;  %s5026_s2 = sld [smem:[#allocation11_spill]]  ;;  %v70_v37 = vld [vmem:[%s5014_s14 + $0x4] sm:$0xf]  ;;  %s3953_s27 = smov 16   ;;  %v80_v14 = vlaneseq }
  0x27   :  { %74 = vst [vmem:[%s5018_s18 + $0x4] sm:$0xf] %v70_v37  ;;  %v62_v39 = vld [vmem:[%s5013_s13 + $0x4] sm:$0xf]  ;;  %vm361_vm2 = vsmask.f32 256 }
  0x28   :  { %66 = vst [vmem:[%s5017_s17 + $0x4] sm:$0xf] %v62_v39  ;;  %vm4189_vm3 = vmand %vm88_vm0, %vm361_vm2  ;;  %s3954_s28 = smov 112   ;;  %v4208_v53 = vld [vmem:[%s5010_s10] sm:$0x1]  ;;  %vm380_vm4 = vcmask 261120  }
  0x29   :  { %v4213_v54 = vld [vmem:[%s5011_s11] sm:$0x1]  ;;  %v4250_v15 = vshrl.u32 %v80_v14, 7  ;;  %v4254_v17 = vand.u32 127, %v80_v14  ;;  %v3955_v19 = vmov -1e+30  }
  0x2a   :  { %v4218_v55 = vld [vmem:[%s5012_s12] sm:$0x1]  ;;  %vm429_vm6 = vcmask 122880   ;;  %s3956_s30 = smov 96   ;;  %s3957_s0 = smov 64   ;;  %vm448_vm7 = vcmask 130048  }
  0x2b   :  { %v82_v16 = vadd.s32 8, %v4250_v15  ;;  %s3958_s1 = smov 32   ;;  %vm836_vm8 = vcmask 523264   ;;  %vm838_vm9 = vcmask 785408   ;;  %vm2915_vm10 = vcmp.lt.s32.totalorder %v80_v14, 256 }
  0x2c   :  { %v97_v33 = vld [vmem:[%s5026_s2] sm:$0x1] }
  0x2d   :  { %vm85_vm5 = vcmp.le.s32.totalorder %v4254_v17, %v82_v16 }
  0x2e   :  { %v69_v38 = vld [vmem:[%s5014_s14] sm:$0xf]  ;;  %v367_v44 = vld [vmem:[%s5018_s18 + $0x4] sm:$0x1]  ;;  %v4257_v20 = vsel %vm85_vm5, 0.0, %v3955_v19 }
  0x2f   :  { %73 = vst [vmem:[%s5018_s18] sm:$0xf] %v69_v38  ;;  %v61_v40 = vld [vmem:[%s5013_s13] sm:$0xf]  ;;  %v363_v63 = vld [vmem:[%s5017_s17 + $0x4] sm:$0x1] }
  0x30   :  { %65 = vst [vmem:[%s5017_s17] sm:$0xf] %v61_v40 }
  0x9d   :  { %v91_v29 = vpop.xlane.xlu0 %90 }
  0x9e   :  { %v93_v30 = vmul.f32 0.0078125, %v91_v29 }
  0xa0   :  { %v94_v31 = vadd.f32 1e-06, %v93_v30 }
  0xa2   :  { %3843 = vrsqrt.f32 %v94_v31 }
  0xac   :  { %v3844_v32 = vpop.eup %3843 }
  0xad   :  { %v96_v34 = vmul.f32 %v3844_v32, %v4069_v1 }
  0xaf   :  { %v98_v35 = vmul.f32 %v97_v33, %v96_v34 }
  0xb1   :  { %v99_v36 = vpack.c.bf16 %v98_v35, %v98_v35 }
  0xb3   :  { %293 = vmatmul.mubr.bf16.vlgmr.msra.gmra.mrb[0].mxu0 %v99_v36  ;;  %3436 = vmatmul.mubr.bf16.vlgmr.msra.gmra.mrb[0].mxu1 %v99_v36 }
  0xb4   :  { %3441 = vmatprep.mubr.msk.bf16.mxu1 %vm3952_vm1, %v3950_v2  ;;  %3465 = vmatprep.mubr.msk.bf16.mxu0 %vm3952_vm1, %v3950_v2 }
 0x186   :  { %v294_v41 = vpop.f32.mrb[0].mxu0  ;;  %v335_v42 = vpop.f32.mrb[0].mxu1 }
 0x187   :  { %v366_v45 = vpack.c.bf16 %v335_v42, %v335_v42  ;;  %v296_v46 = vpop.f32.mrb[1].mxu0  ;;  %v3437_v47 = vpop.f32.mrb[1].mxu1  ;;  %v341_v6 = vmul.f32 %v294_v41, %v4208_v53 }
 0x188   :  { %v338_v48 = vpop.f32.mrb[2].mxu1  ;;  %355 = vrot.lane.b32.xlu1 %v296_v46, %s3953_s27  ;;  %351 = vrot.lane.b32.xlu0 %v296_v46, %s3954_s28  ;;  %v298_v49 = vpop.f32.mrb[2].mxu0  ;;  %v350_v58 = vmul.f32 %v296_v46, %v4208_v53 }
 0x189   :  { %v368_v50 = vsel %vm4189_vm3, %v366_v45, %v367_v44  ;;  %v299_v51 = vpop.f32.mrb[3].mxu0  ;;  %v3438_v52 = vpop.f32.mrb[3].mxu1 }
 0x18a   :  { %369 = vst [vmem:[%s5018_s18 + $0x4] sm:$0x1] %v368_v50 }
 0x18c   :  { %342 = vrot.lane.b32.xlu1 %v294_v41, %s3954_s28 }
 0x190   :  { %346 = vrot.lane.b32.xlu1 %v294_v41, %s3953_s27 }
 0x191   :  { %v4242_v13 = vld [vmem:[%s5018_s18] sm:$0xff]  }
 0x1fa   :  { %v356_v56 = vpop.permute.xlu1 %355  ;;  %v352_v57 = vpop.permute.xlu0 %351 }
 0x1fb   :  { %v353_v59 = vmul.f32 %v352_v57, %v4213_v54  ;;  %v357_v60 = vmul.f32 %v356_v56, %v4218_v55 }
 0x1fd   :  { %v354_v61 = vadd.f32 %v353_v59, %v350_v58 }
 0x1fe   :  { %v343_v1 = vpop.permute.xlu1 %342 }
 0x1ff   :  { %v358_v62 = vadd.f32 %v357_v60, %v354_v61  ;;  %v344_v5 = vmul.f32 %v343_v1, %v4213_v54 }
 0x201   :  { %v359_v0 = vpack.c.bf16 %v358_v62, %v358_v62  ;;  %v345_v9 = vadd.f32 %v344_v5, %v341_v6 }
 0x202   :  { %v347_v4 = vpop.permute.xlu1 %346 }
 0x203   :  { %v364_v3 = vsel %vm4189_vm3, %v359_v0, %v363_v63  ;;  %v348_v7 = vmul.f32 %v347_v4, %v4218_v55 }
 0x204   :  { %365 = vst [vmem:[%s5017_s17 + $0x4] sm:$0x1] %v364_v3 }
 0x205   :  { %v349_v11 = vadd.f32 %v348_v7, %v345_v9 }
 0x207   :  { %v374_v12 = vpack.c.bf16 %v349_v11, %v349_v11 }
 0x20b   :  { %v3639_v8 = vld [vmem:[%s5017_s17] sm:$0xff]  }
 0x20c   :  { %v385_v10 = vsel %vm380_vm4, %v3639_v8, 0 }
 0x20d   :  { %3440 = vmatpush3.bf16.xpose.msra.mxu1 %v385_v10 }
 0x20e   :  { %3445 = vmatprep.subr.bf16.mxu1 %v3950_v2 }
 0x214   :  { %3442 = vmatmul.mubr.msk.bf16.vlgmr.msra.gmra.mrb[4].mxu1 %vm380_vm4, %v374_v12 }
 0x215   :  { %3446 = vmatpush3.bf16.msra.mxu1 %v4242_v13  ;;  %3447 = vmatprep.mubr.msk.bf16.mxu1 %vm3952_vm1, %v3950_v2 }
 0x216   :  { %3451 = vmatprep.subr.bf16.mxu1 %v3950_v2 }
 0x2e7   :  { %v421_v18 = vpop.f32.mrb[4].mxu1 }
 0x2e8   :  { %v427_v21 = vmul.f32 0.17677669, %v421_v18  ;;  %v3443_v22 = vpop.f32.mrb[5].mxu1 }
 0x2e9   :  { %v424_v23 = vpop.f32.mrb[6].mxu1 }
 0x2ea   :  { %v3444_v24 = vpop.f32.mrb[7].mxu1  ;;  %v428_v26 = vadd.f32 %v427_v21, %v4257_v20 }
 0x2ec   :  { %v430_v27 = vsel %vm429_vm6, %v428_v26, -inf }
 0x2ed   :  { %431 = vmax.xlane.f32.xlu1 %v430_v27 }
 0x2fe   :  { %495 = vrot.lane.b32.xlu1 %v3639_v8, %s3956_s30 }
 0x302   :  { %605 = vrot.lane.b32.xlu1 %v3639_v8, %s3957_s0 }
 0x306   :  { %603 = vrot.lane.b32.xlu1 %v374_v12, %s3957_s0 }
 0x30a   :  { %715 = vrot.lane.b32.xlu1 %v3639_v8, %s3958_s1 }
 0x30e   :  { %713 = vrot.lane.b32.xlu1 %v374_v12, %s3958_s1 }
 0x37a   :  { %v432_v28 = vpop.xlane.xlu1 %431 }
 0x37b   :  { %v433_v29 = vsub.f32 %v428_v26, %v432_v28 }
 0x37d   :  { %v434_v30 = vmul.f32 1.442695, %v433_v29 }
 0x37e   :  { %v496_v31 = vpop.permute.xlu1 %495 }
 0x37f   :  { %3845 = vpow2.f32 %v434_v30  ;;  %v501_v45 = vsel %vm380_vm4, %v496_v31, 0 }
 0x382   :  { %v606_v32 = vpop.permute.xlu1 %605 }
 0x383   :  { %v611_v33 = vsel %vm380_vm4, %v606_v32, 0 }
 0x384   :  { %3464 = vmatpush3.bf16.xpose.msra.mxu0 %v611_v33 }
 0x385   :  { %3475 = vmatprep.subr.bf16.mxu0 %v3950_v2 }
 0x386   :  { %v604_v34 = vpop.permute.xlu1 %603 }
 0x389   :  { %v3846_v35 = vpop.eup %3845 }
 0x38a   :  { %v716_v36 = vpop.permute.xlu1 %715  ;;  %v436_v37 = vsel %vm429_vm6, %v3846_v35, 0.0 }
 0x38b   :  { %v721_v38 = vsel %vm380_vm4, %v716_v36, 0  ;;  %437 = vadd.xlane.f32.xlu0 %v436_v37  ;;  %3466 = vmatmul.mubr.msk.bf16.vlgmr.msra.gmra.mrb[4].mxu0 %vm380_vm4, %v604_v34 }
 0x38c   :  { %3476 = vmatpush3.bf16.xpose.msra.mxu0 %v721_v38  ;;  %3477 = vmatprep.mubr.msk.bf16.mxu0 %vm3952_vm1, %v3950_v2 }
 0x38d   :  { %3487 = vmatprep.subr.bf16.mxu0 %v3950_v2 }
 0x38e   :  { %v714_v39 = vpop.permute.xlu1 %713 }
 0x393   :  { %3478 = vmatmul.mubr.msk.bf16.vlgmr.msra.gmra.mrb[8].mxu0 %vm380_vm4, %v714_v39 }
 0x394   :  { %3503 = vmatprep.mubr.msk.bf16.mxu0 %vm3952_vm1, %v3950_v2 }
 0x3a1   :  { %493 = vrot.lane.b32.xlu0 %v374_v12, %s3956_s30 }
 0x418   :  { %v438_v40 = vpop.xlane.xlu0 %437 }
 0x419   :  { %3847 = vrcp.f32 %v438_v40 }
 0x41c   :  { %v494_v46 = vpop.permute.xlu0 %493 }
 0x423   :  { %v3848_v41 = vpop.eup %3847 }
 0x424   :  { %v440_v42 = vmul.f32 %v3848_v41, %v3846_v35 }
 0x426   :  { %v441_v44 = vpack.c.bf16 %v440_v42, %v440_v42 }
 0x428   :  { %3448 = vmatmul.mubr.msk.bf16.vlgmr.msra.gmra.mrb[8].mxu1 %vm448_vm7, %v441_v44 }
 0x429   :  { %3452 = vmatpush3.bf16.xpose.msra.mxu1 %v501_v45  ;;  %3453 = vmatprep.mubr.msk.bf16.mxu1 %vm3952_vm1, %v3950_v2 }
 0x42a   :  { %3457 = vmatprep.subr.bf16.mxu1 %v3950_v2 }
 0x430   :  { %3454 = vmatmul.mubr.msk.bf16.vlgmr.msra.gmra.mrb[12].mxu1 %vm380_vm4, %v494_v46 }
 0x431   :  { %3459 = vmatprep.mubr.msk.bf16.mxu1 %vm3952_vm1, %v3950_v2 }
 0x45e   :  { %v647_v47 = vpop.f32.mrb[4].mxu0 }
 0x45f   :  { %v653_v48 = vmul.f32 0.17677669, %v647_v47  ;;  %v3467_v49 = vpop.f32.mrb[5].mxu0 }
 0x460   :  { %v650_v50 = vpop.f32.mrb[6].mxu0  ;;  %v3642_v49 = vld [vmem:[%s5004_s4 + $0x8] sm:$0xff]  }
 0x461   :  { %v3468_v51 = vpop.f32.mrb[7].mxu0  ;;  %v654_v52 = vadd.f32 %v653_v48, %v4257_v20  ;;  %v3641_v48 = vld [vmem:[%s5004_s4] sm:$0xff]   ;;  %v3643_v50 = vld [vmem:[%s5004_s4 + $0x10] sm:$0xff]  }
 0x462   :  { %3488 = vmatpush3.bf16.msra.mxu0 %v3641_v48  ;;  %v3644_v51 = vld [vmem:[%s5004_s4 + $0x18] sm:$0xff]  }
 0x463   :  { %v655_v56 = vsel %vm429_vm6, %v654_v52, -inf  ;;  %3489 = vmatprep.subr.bf16.mxu0 %v3950_v2  ;;  %v3678_v48 = vld [vmem:[%s5006_s6 + $0x8c] ss:$16 sps:$4 sm:$0xff]  }
 0x464   :  { %656 = vmax.xlane.f32.xlu1 %v655_v56  ;;  %v3646_v56 = vld [vmem:[%s5004_s4 + $0x28] sm:$0xff]  }
 0x466   :  { %v757_v57 = vpop.f32.mrb[8].mxu0  ;;  %3490 = vmatpush3.bf16.msra.mxu0 %v3642_v49  ;;  %v3681_v49 = vld [vmem:[%s5006_s6 + $0xa4] ss:$16 sps:$4 sm:$0xff]  }
 0x467   :  { %v3479_v58 = vpop.f32.mrb[9].mxu0  ;;  %v763_v8 = vmul.f32 0.17677669, %v757_v57  ;;  %3491 = vmatprep.subr.bf16.mxu0 %v3950_v2  ;;  %v3647_v57 = vld [vmem:[%s5004_s4 + $0x30] sm:$0xff]  }
 0x468   :  { %v760_v59 = vpop.f32.mrb[10].mxu0 }
 0x469   :  { %v3480_v60 = vpop.f32.mrb[11].mxu0  ;;  %v764_v19 = vadd.f32 %v763_v8, %v4257_v20 }
 0x46a   :  { %3492 = vmatpush3.bf16.msra.mxu0 %v3643_v50  ;;  %v3684_v50 = vld [vmem:[%s5006_s6 + $0xac] ss:$16 sps:$4 sm:$0xff]  }
 0x46b   :  { %v765_v21 = vsel %vm429_vm6, %v764_v19, -inf  ;;  %3493 = vmatprep.subr.bf16.mxu0 %v3950_v2 }
 0x46e   :  { %3494 = vmatpush3.bf16.msra.mxu0 %v3644_v51  ;;  %v3679_v51 = vld [vmem:[%s5006_s6 + $0xa0] ss:$16 sps:$4 sm:$0xff]  }
 0x46f   :  { %3495 = vmatprep.subr.bf16.mxu0 %v3950_v2 }
 0x4f1   :  { %v657_v61 = vpop.xlane.xlu1 %656 }
 0x4f2   :  { %v658_v62 = vsub.f32 %v654_v52, %v657_v61  ;;  %v3645_v52 = vld [vmem:[%s5004_s4 + $0x20] sm:$0xff]  }
 0x4f3   :  { %3496 = vmatpush3.bf16.msra.mxu0 %v3645_v52  ;;  %v3682_v52 = vld [vmem:[%s5006_s6 + $0xa8] ss:$16 sps:$4 sm:$0xff]  }
 0x4f4   :  { %v659_v63 = vmul.f32 1.442695, %v658_v62  ;;  %3497 = vmatprep.subr.bf16.mxu0 %v3950_v2  ;;  %v3648_v62 = vld [vmem:[%s5004_s4 + $0x38] sm:$0xff]  }
 0x4f6   :  { %3849 = vpow2.f32 %v659_v63 }
 0x4f7   :  { %3498 = vmatpush3.bf16.msra.mxu0 %v3646_v56  ;;  %v3687_v56 = vld [vmem:[%s5006_s6 + $0xc4] ss:$16 sps:$4 sm:$0xff]  }
 0x4f8   :  { %3499 = vmatprep.subr.bf16.mxu0 %v3950_v2 }
 0x4fb   :  { %v4288_v0 = vpop.f32.mrb[8].mxu1  ;;  %3500 = vmatpush3.bf16.msra.mxu0 %v3647_v57  ;;  %v3690_v57 = vld [vmem:[%s5006_s6 + $0xcc] ss:$16 sps:$4 sm:$0xff]  }
 0x4fc   :  { %v3449_v1 = vpop.f32.mrb[9].mxu1  ;;  %3501 = vmatprep.subr.bf16.mxu0 %v3950_v2 }
 0x4fd   :  { %v489_v3 = vpop.f32.mrb[10].mxu1 }
 0x4fe   :  { %v3450_v4 = vpop.f32.mrb[11].mxu1 }
 0x4ff   :  { %3502 = vmatpush3.bf16.msra.mxu0 %v3648_v62  ;;  %v3691_v62 = vld [vmem:[%s5006_s6 + $0xe0] ss:$16 sps:$4 sm:$0xff]  }
 0x500   :  { %v3850_v5 = vpop.eup %3849 }
 0x501   :  { %v661_v6 = vsel %vm429_vm6, %v3850_v5, 0.0 }
 0x502   :  { %662 = vadd.xlane.f32.xlu1 %v661_v6 }
 0x503   :  { %v537_v7 = vpop.f32.mrb[12].mxu1 }
 0x504   :  { %v543_v9 = vmul.f32 0.17677669, %v537_v7  ;;  %v3455_v10 = vpop.f32.mrb[13].mxu1 }
 0x505   :  { %v540_v11 = vpop.f32.mrb[14].mxu1 }
 0x506   :  { %v3456_v12 = vpop.f32.mrb[15].mxu1  ;;  %v544_v16 = vadd.f32 %v543_v9, %v4257_v20 }
 0x508   :  { %v545_v18 = vsel %vm429_vm6, %v544_v16, -inf }
 0x509   :  { %546 = vmax.xlane.f32.xlu0 %v545_v18 }
 0x50d   :  { %766 = vmax.xlane.f32.xlu0 %v765_v21  ;;  %v3649_v21 = vld [vmem:[%s5006_s6] ss:$16 sps:$4 sm:$0xff]  }
 0x513   :  { %557 = vrot.lane.b32.xlu1 %v4242_v13, %s3956_s30 }
 0x517   :  { %777 = vrot.lane.b32.xlu1 %v4242_v13, %s3958_s1 }
 0x58f   :  { %v663_v22 = vpop.xlane.xlu1 %662 }
 0x593   :  { %v558_v23 = vpop.permute.xlu1 %557 }
 0x594   :  { %3458 = vmatpush3.bf16.msra.mxu1 %v558_v23  ;;  %v3654_v23 = vld [vmem:[%s5006_s6 + $0xc] ss:$16 sps:$4 sm:$0xff]  }
 0x595   :  { %3469 = vmatprep.subr.bf16.mxu1 %v3950_v2  ;;  %1190 = vmatprep.subr.bf16.mxu0 %v3654_v23  ;;  %v3706_v23 = vld [vmem:[%s5007_s7 + $0x20] sm:$0xff]  }
 0x596   :  { %v547_v24 = vpop.xlane.xlu0 %546 }
 0x597   :  { %v548_v26 = vsub.f32 %v544_v16, %v547_v24  ;;  %v778_v45 = vpop.permute.xlu1 %777  ;;  %v3657_v24 = vld [vmem:[%s5006_s6 + $0x24] ss:$16 sps:$4 sm:$0xff]  }
 0x599   :  { %v549_v27 = vmul.f32 1.442695, %v548_v26  ;;  %v3660_v26 = vld [vmem:[%s5006_s6 + $0x2c] ss:$16 sps:$4 sm:$0xff]  }
 0x59a   :  { %v767_v28 = vpop.xlane.xlu0 %766 }
 0x59b   :  { %3851 = vpow2.f32 %v549_v27  ;;  %v768_v29 = vsub.f32 %v764_v19, %v767_v28  ;;  %v3655_v27 = vld [vmem:[%s5006_s6 + $0x20] ss:$16 sps:$4 sm:$0xff]   ;;  %v3658_v28 = vld [vmem:[%s5006_s6 + $0x28] ss:$16 sps:$4 sm:$0xff]  }
 0x59d   :  { %v769_v30 = vmul.f32 1.442695, %v768_v29  ;;  %v3663_v29 = vld [vmem:[%s5006_s6 + $0x44] ss:$16 sps:$4 sm:$0xff]  }
 0x59f   :  { %3853 = vpow2.f32 %v769_v30  ;;  %v3666_v30 = vld [vmem:[%s5006_s6 + $0x4c] ss:$16 sps:$4 sm:$0xff]  }
 0x5a5   :  { %v3852_v31 = vpop.eup %3851 }
 0x5a6   :  { %v551_v32 = vsel %vm429_vm6, %v3852_v31, 0.0 }
 0x5a7   :  { %552 = vadd.xlane.f32.xlu0 %v551_v32  ;;  %v3664_v32 = vld [vmem:[%s5006_s6 + $0x48] ss:$16 sps:$4 sm:$0xff]  }
 0x5a9   :  { %v3854_v33 = vpop.eup %3853 }
 0x5aa   :  { %v771_v34 = vsel %vm429_vm6, %v3854_v33, 0.0 }
 0x5ab   :  { %772 = vadd.xlane.f32.xlu0 %v771_v34  ;;  %v3901_v34 = vld [vmem:[%s4063_s19] sm:$0x1] }
 0x5c1   :  { %667 = vrot.lane.b32.xlu0 %v4242_v13, %s3957_s0 }
 0x634   :  { %v553_v35 = vpop.xlane.xlu0 %552 }
 0x635   :  { %3855 = vrcp.f32 %v553_v35 }
 0x636   :  { %3857 = vrcp.f32 %v663_v22  ;;  %v3651_v22 = vld [vmem:[%s5006_s6 + $0x4] ss:$16 sps:$4 sm:$0xff]  }
 0x638   :  { %v773_v36 = vpop.xlane.xlu0 %772 }
 0x639   :  { %3859 = vrcp.f32 %v773_v36 }
 0x63c   :  { %v668_v41 = vpop.permute.xlu0 %667 }
 0x63f   :  { %v3856_v37 = vpop.eup %3855 }
 0x640   :  { %v555_v38 = vmul.f32 %v3856_v37, %v3852_v31  ;;  %v3858_v40 = vpop.eup %3857  ;;  %v3661_v31 = vld [vmem:[%s5006_s6 + $0x40] ss:$16 sps:$4 sm:$0xff]  }
 0x641   :  { %v665_v42 = vmul.f32 %v3858_v40, %v3850_v5 }
 0x642   :  { %v556_v39 = vpack.c.bf16 %v555_v38, %v555_v38 }
 0x643   :  { %v666_v13 = vpack.c.bf16 %v665_v42, %v665_v42  ;;  %v3860_v44 = vpop.eup %3859  ;;  %v3672_v42 = vld [vmem:[%s5006_s6 + $0x6c] ss:$16 sps:$4 sm:$0xff]  }
 0x644   :  { %3460 = vmatmul.mubr.msk.bf16.vlgmr.msra.gmra.mrb[16].mxu1 %vm448_vm7, %v556_v39  ;;  %v775_v46 = vmul.f32 %v3860_v44, %v3854_v33  ;;  %v3670_v44 = vld [vmem:[%s5006_s6 + $0x68] ss:$16 sps:$4 sm:$0xff]  }
 0x645   :  { %3470 = vmatpush3.bf16.msra.mxu1 %v668_v41  ;;  %3471 = vmatprep.mubr.msk.bf16.mxu1 %vm3952_vm1, %v3950_v2  ;;  %v3669_v41 = vld [vmem:[%s5006_s6 + $0x64] ss:$16 sps:$4 sm:$0xff]  }
 0x646   :  { %3481 = vmatprep.subr.bf16.mxu1 %v3950_v2  ;;  %v776_v47 = vpack.c.bf16 %v775_v46, %v775_v46  ;;  %v3675_v46 = vld [vmem:[%s5006_s6 + $0x84] ss:$16 sps:$4 sm:$0xff]  }
 0x64c   :  { %3472 = vmatmul.mubr.msk.bf16.vlgmr.msra.gmra.mrb[20].mxu1 %vm448_vm7, %v666_v13  ;;  %v3667_v13 = vld [vmem:[%s5006_s6 + $0x60] ss:$16 sps:$4 sm:$0xff]  }
 0x64d   :  { %3482 = vmatpush3.bf16.msra.mxu1 %v778_v45  ;;  %3483 = vmatprep.mubr.msk.bf16.mxu1 %vm3952_vm1, %v3950_v2  ;;  %v3673_v45 = vld [vmem:[%s5006_s6 + $0x80] ss:$16 sps:$4 sm:$0xff]  }
 0x64e   :  { %1149 = vmatprep.subr.bf16.mxu1 %v3651_v22  ;;  %v3704_v22 = vld [vmem:[%s5007_s7 + $0x18] sm:$0xff]  }
 0x654   :  { %3484 = vmatmul.mubr.msk.bf16.vlgmr.msra.gmra.mrb[24].mxu1 %vm448_vm7, %v776_v47  ;;  %v3676_v47 = vld [vmem:[%s5006_s6 + $0x88] ss:$16 sps:$4 sm:$0xff]  }
 0x655   :  { %1181 = vmatprep.mubr.bf16.mxu1 %v3951_v25  ;;  %1150 = vmatpush1.bf16.msra.mxu1 %v3649_v21  ;;  %v3703_v21 = vld [vmem:[%s5007_s7 + $0x58] sm:$0xff]  }
 0x656   :  { %1151 = vmatprep.subr.bf16.mxu1 %v3657_v24  ;;  %v3707_v24 = vld [vmem:[%s5007_s7 + $0x68] sm:$0xff]  }
 0x659   :  { %1152 = vmatpush1.bf16.msra.mxu1 %v3655_v27  ;;  %v3709_v27 = vld [vmem:[%s5007_s7 + $0x70] sm:$0xff]  }
 0x65a   :  { %1153 = vmatprep.subr.bf16.mxu1 %v3663_v29  ;;  %v3711_v29 = vld [vmem:[%s5007_s7 + $0x78] sm:$0xff]  }
 0x65d   :  { %1154 = vmatpush1.bf16.msra.mxu1 %v3661_v31 }
 0x65e   :  { %1155 = vmatprep.subr.bf16.mxu1 %v3669_v41 }
 0x661   :  { %1156 = vmatpush1.bf16.msra.mxu1 %v3667_v13 }
 0x662   :  { %1157 = vmatprep.subr.bf16.mxu1 %v3675_v46 }
 0x665   :  { %1158 = vmatpush1.bf16.msra.mxu1 %v3673_v45 }
 0x666   :  { %1159 = vmatprep.subr.bf16.mxu1 %v3681_v49 }
 0x669   :  { %1160 = vmatpush1.bf16.msra.mxu1 %v3679_v51 }
 0x66a   :  { %1161 = vmatprep.subr.bf16.mxu1 %v3687_v56 }
 0x717   :  { %v597_v58 = vpop.f32.mrb[16].mxu1 }
 0x718   :  { %824 = vrot.lane.b32.xlu1 %v597_v58, %s3958_s1  ;;  %v3461_v59 = vpop.f32.mrb[17].mxu1  ;;  %v3685_v58 = vld [vmem:[%s5006_s6 + $0xc0] ss:$16 sps:$4 sm:$0xff]  }
 0x719   :  { %v600_v60 = vpop.f32.mrb[18].mxu1  ;;  %v3688_v59 = vld [vmem:[%s5006_s6 + $0xc8] ss:$16 sps:$4 sm:$0xff]   ;;  %1162 = vmatpush1.bf16.msra.mxu1 %v3685_v58  ;;  %v3715_v58 = vld [vmem:[%s5003_s3 + $0xc4] ss:$12 sps:$4 sm:$0xff]  }
 0x71a   :  { %v3462_v61 = vpop.f32.mrb[19].mxu1  ;;  %v3693_v60 = vld [vmem:[%s5006_s6 + $0xe4] ss:$16 sps:$4 sm:$0xff]  }
 0x71b   :  { %v3696_v61 = vld [vmem:[%s5006_s6 + $0xec] ss:$16 sps:$4 sm:$0xff]   ;;  %1163 = vmatprep.subr.bf16.mxu1 %v3693_v60 }
 0x71c   :  { %v3719_v60 = vld [vmem:[%s5003_s3 + $0xdc] ss:$12 sps:$4 sm:$0xff]  }
 0x71d   :  { %1164 = vmatpush1.bf16.msra.mxu1 %v3691_v62  ;;  %v3717_v62 = vld [vmem:[%s5003_s3 + $0xd8] ss:$12 sps:$4 sm:$0xff]  }
 0x71f   :  { %v707_v63 = vpop.f32.mrb[20].mxu1 }
 0x720   :  { %828 = vrot.lane.b32.xlu0 %v707_v63, %s3957_s0  ;;  %v3473_v1 = vpop.f32.mrb[21].mxu1  ;;  %v3694_v63 = vld [vmem:[%s5006_s6 + $0xe8] ss:$16 sps:$4 sm:$0xff]  }
 0x721   :  { %v710_v3 = vpop.f32.mrb[22].mxu1 }
 0x722   :  { %v3474_v4 = vpop.f32.mrb[23].mxu1 }
 0x727   :  { %v817_v5 = vpop.f32.mrb[24].mxu1 }
 0x728   :  { %832 = vrot.lane.b32.xlu1 %v817_v5, %s3956_s30  ;;  %v3485_v6 = vpop.f32.mrb[25].mxu1 }
 0x729   :  { %v820_v7 = vpop.f32.mrb[26].mxu1  ;;  %v954_v6 = vld [vmem:[%s5005_s5] sm:$0x1] }
 0x72a   :  { %v3486_v8 = vpop.f32.mrb[27].mxu1 }
 0x78a   :  { %v825_v9 = vpop.permute.xlu1 %824 }
 0x78b   :  { %v835_v11 = vsel %vm380_vm4, %v4288_v0, %v825_v9  ;;  %v3652_v0 = vld [vmem:[%s5006_s6 + $0x8] ss:$16 sps:$4 sm:$0xff]  }
 0x792   :  { %v829_v10 = vpop.permute.xlu0 %828 }
 0x793   :  { %v837_v12 = vsel %vm836_vm8, %v835_v11, %v829_v10  ;;  %v3697_v10 = vld [vmem:[%s5007_s7 + $0x40] sm:$0xff]  }
 0x794   :  { %v3698_v11 = vld [vmem:[%s5007_s7] sm:$0xff]   ;;  %3341 = vmatprep.subr.bf16.mxu1 %v3697_v10 }
 0x79a   :  { %v833_v16 = vpop.permute.xlu1 %832 }
 0x79b   :  { %v839_v18 = vsel %vm838_vm9, %v837_v12, %v833_v16  ;;  %v3699_v12 = vld [vmem:[%s5007_s7 + $0x48] sm:$0xff]  }
 0x79c   :  { %v840_v19 = vpack.c.bf16 %v839_v18, %v839_v18  ;;  %v3700_v16 = vld [vmem:[%s5007_s7 + $0x8] sm:$0xff]   ;;  %v3701_v18 = vld [vmem:[%s5007_s7 + $0x50] sm:$0xff]  }
 0x79e   :  { %3504 = vmatmul.mubr.bf16.vlgmr.msra.gmra.mrb[12].mxu0 %v840_v19  ;;  %v3702_v19 = vld [vmem:[%s5007_s7 + $0x10] sm:$0xff]  }
 0x79f   :  { %1222 = vmatprep.mubr.bf16.mxu0 %v3951_v25  ;;  %1191 = vmatpush1.bf16.msra.mxu0 %v3652_v0  ;;  %v3705_v0 = vld [vmem:[%s5007_s7 + $0x60] sm:$0xff]  }
 0x7a0   :  { %1192 = vmatprep.subr.bf16.mxu0 %v3660_v26  ;;  %v3708_v26 = vld [vmem:[%s5007_s7 + $0x28] sm:$0xff]  }
 0x7a3   :  { %1193 = vmatpush1.bf16.msra.mxu0 %v3658_v28  ;;  %v3710_v28 = vld [vmem:[%s5007_s7 + $0x30] sm:$0xff]  }
 0x7a4   :  { %1194 = vmatprep.subr.bf16.mxu0 %v3666_v30  ;;  %v3712_v30 = vld [vmem:[%s5007_s7 + $0x38] sm:$0xff]  }
 0x7a7   :  { %1195 = vmatpush1.bf16.msra.mxu0 %v3664_v32 }
 0x7a8   :  { %1196 = vmatprep.subr.bf16.mxu0 %v3672_v42 }
 0x7ab   :  { %1197 = vmatpush1.bf16.msra.mxu0 %v3670_v44 }
 0x7ac   :  { %1198 = vmatprep.subr.bf16.mxu0 %v3678_v48 }
 0x7af   :  { %1199 = vmatpush1.bf16.msra.mxu0 %v3676_v47 }
 0x7b0   :  { %1200 = vmatprep.subr.bf16.mxu0 %v3684_v50 }
 0x7b3   :  { %1201 = vmatpush1.bf16.msra.mxu0 %v3682_v52 }
 0x7b4   :  { %1202 = vmatprep.subr.bf16.mxu0 %v3690_v57  ;;  %v3713_v57 = vld [vmem:[%s5003_s3 + $0xc0] ss:$12 sps:$4 sm:$0xff]  }
 0x7b7   :  { %1203 = vmatpush1.bf16.msra.mxu0 %v3688_v59  ;;  %v3716_v59 = vld [vmem:[%s5003_s3 + $0xc8] ss:$12 sps:$4 sm:$0xff]  }
 0x7b8   :  { %1204 = vmatprep.subr.bf16.mxu0 %v3696_v61  ;;  %v3720_v61 = vld [vmem:[%s5003_s3 + $0xe0] ss:$12 sps:$4 sm:$0xff]  }
 0x7bb   :  { %1205 = vmatpush1.bf16.msra.mxu0 %v3694_v63  ;;  %v3723_v63 = vld [vmem:[%s5003_s3 + $0xf4] ss:$12 sps:$4 sm:$0xff]  }
 0x7bc   :  { %1591 = vmatprep.subr.bf16.mxu0 %v3715_v58 }
 0x871   :  { %v939_v33 = vpop.f32.mrb[12].mxu0 }
 0x872   :  { %v4389_v35 = vadd.f32 %v3901_v34, %v939_v33  ;;  %v3505_v36 = vpop.f32.mrb[13].mxu0 }
 0x873   :  { %v942_v37 = vpop.f32.mrb[14].mxu0 }
 0x874   :  { %v3506_v38 = vpop.f32.mrb[15].mxu0  ;;  %v946_v39 = vmul.f32 %v4389_v35, %v4389_v35 }
 0x876   :  { %v947_v40 = vsel %vm88_vm0, %v946_v39, 0.0 }
 0x877   :  { %948 = vadd.xlane.f32.xlu0 %v947_v40 }
 0x904   :  { %v949_v1 = vpop.xlane.xlu0 %948 }
 0x905   :  { %v950_v3 = vmul.f32 0.0078125, %v949_v1  ;;  %v3724_v1 = vld [vmem:[%s5003_s3 + $0xf8] ss:$12 sps:$4 sm:$0xff]  }
 0x907   :  { %v951_v4 = vadd.f32 1e-06, %v950_v3  ;;  %v3721_v3 = vld [vmem:[%s5003_s3 + $0xf0] ss:$12 sps:$4 sm:$0xff]  }
 0x909   :  { %3861 = vrsqrt.f32 %v951_v4 }
 0x913   :  { %v3862_v5 = vpop.eup %3861 }
 0x914   :  { %v953_v7 = vmul.f32 %v3862_v5, %v4389_v35 }
 0x916   :  { %v955_v8 = vmul.f32 %v954_v6, %v953_v7 }
 0x918   :  { %v956_v9 = vpack.c.bf16 %v955_v8, %v955_v8 }
 0x91a   :  { %1182 = vmatmul.mubr.bf16.vlgmr.msra.gmra.mrb[28].mxu1 %v956_v9  ;;  %1223 = vmatmul.mubr.bf16.vlgmr.msra.gmra.mrb[16].mxu0 %v956_v9 }
 0x91b   :  { %1623 = vmatprep.mubr.bf16.mxu0 %v3951_v25  ;;  %3342 = vmatpush3.bf16.msra.mxu1 %v3698_v11 }
 0x91c   :  { %3343 = vmatprep.subr.bf16.mxu1 %v3699_v12  ;;  %1592 = vmatpush1.bf16.msra.mxu0 %v3713_v57  ;;  %v3727_v12 = vld [vmem:[%s5003_s3 + $0x10c] ss:$12 sps:$4 sm:$0xff]  }
 0x91d   :  { %1593 = vmatprep.subr.bf16.mxu0 %v3719_v60 }
 0x91f   :  { %3344 = vmatpush3.bf16.msra.mxu1 %v3700_v16  ;;  %v3725_v16 = vld [vmem:[%s5003_s3 + $0x108] ss:$12 sps:$4 sm:$0xff]  }
 0x920   :  { %3345 = vmatprep.subr.bf16.mxu1 %v3701_v18  ;;  %1594 = vmatpush1.bf16.msra.mxu0 %v3717_v62  ;;  %v3728_v18 = vld [vmem:[%s5003_s3 + $0x110] ss:$12 sps:$4 sm:$0xff]  }
 0x921   :  { %1595 = vmatprep.subr.bf16.mxu0 %v3723_v63 }
 0x923   :  { %3346 = vmatpush3.bf16.msra.mxu1 %v3702_v19  ;;  %v3731_v19 = vld [vmem:[%s5003_s3 + $0x124] ss:$12 sps:$4 sm:$0xff]  }
 0x924   :  { %3347 = vmatprep.subr.bf16.mxu1 %v3703_v21  ;;  %1596 = vmatpush1.bf16.msra.mxu0 %v3721_v3  ;;  %v3732_v21 = vld [vmem:[%s5003_s3 + $0x128] ss:$12 sps:$4 sm:$0xff]  }
 0x925   :  { %1597 = vmatprep.subr.bf16.mxu0 %v3727_v12 }
 0x927   :  { %3348 = vmatpush3.bf16.msra.mxu1 %v3704_v22  ;;  %v3735_v22 = vld [vmem:[%s5003_s3 + $0x13c] ss:$12 sps:$4 sm:$0xff]  }
 0x928   :  { %3349 = vmatprep.subr.bf16.mxu1 %v3705_v0  ;;  %1598 = vmatpush1.bf16.msra.mxu0 %v3725_v16  ;;  %v3733_v0 = vld [vmem:[%s5003_s3 + $0x138] ss:$12 sps:$4 sm:$0xff]  }
 0x929   :  { %1599 = vmatprep.subr.bf16.mxu0 %v3731_v19 }
 0x92b   :  { %3350 = vmatpush3.bf16.msra.mxu1 %v3706_v23  ;;  %v3736_v23 = vld [vmem:[%s5003_s3 + $0x140] ss:$12 sps:$4 sm:$0xff]  }
 0x92c   :  { %3351 = vmatprep.subr.bf16.mxu1 %v3707_v24  ;;  %v3739_v24 = vld [vmem:[%s5003_s3 + $0x154] ss:$12 sps:$4 sm:$0xff]  }
 0x92f   :  { %3352 = vmatpush3.bf16.msra.mxu1 %v3708_v26  ;;  %v3737_v26 = vld [vmem:[%s5003_s3 + $0x150] ss:$12 sps:$4 sm:$0xff]  }
 0x930   :  { %3353 = vmatprep.subr.bf16.mxu1 %v3709_v27  ;;  %v3740_v27 = vld [vmem:[%s5003_s3 + $0x158] ss:$12 sps:$4 sm:$0xff]  }
 0x933   :  { %3354 = vmatpush3.bf16.msra.mxu1 %v3710_v28  ;;  %v3743_v28 = vld [vmem:[%s5003_s3 + $0x16c] ss:$12 sps:$4 sm:$0xff]  }
 0x934   :  { %3355 = vmatprep.subr.bf16.mxu1 %v3711_v29  ;;  %v3741_v29 = vld [vmem:[%s5003_s3 + $0x168] ss:$12 sps:$4 sm:$0xff]  }
 0x937   :  { %3356 = vmatpush3.bf16.msra.mxu1 %v3712_v30  ;;  %v3744_v30 = vld [vmem:[%s5003_s3 + $0x170] ss:$12 sps:$4 sm:$0xff]  }
 0x938   :  { %3507 = vmatprep.subr.bf16.mxu1 %v3950_v2 }
 0x9ed   :  { %v1183_v31 = vpop.f32.mrb[28].mxu1  ;;  %v1224_v32 = vpop.f32.mrb[16].mxu0 }
 0x9ee   :  { %v3059_v33 = vmul.f32 -1.442695, %v1183_v31  ;;  %v1185_v34 = vpop.f32.mrb[29].mxu1  ;;  %v1226_v36 = vpop.f32.mrb[17].mxu0 }
 0x9ef   :  { %v3060_v37 = vmul.f32 -1.442695, %v1185_v34  ;;  %v1187_v38 = vpop.f32.mrb[30].mxu1  ;;  %v1228_v39 = vpop.f32.mrb[18].mxu0 }
 0x9f0   :  { %3863 = vpow2.f32 %v3059_v33  ;;  %v1188_v40 = vpop.f32.mrb[31].mxu1  ;;  %v1229_v41 = vpop.f32.mrb[19].mxu0 }
 0x9f1   :  { %3865 = vpow2.f32 %v3060_v37  ;;  %v72_v40 = vld [vmem:[%s5014_s14 + $0xc] sm:$0xf] }
 0x9f2   :  { %76 = vst [vmem:[%s5018_s18 + $0xc] sm:$0xf] %v72_v40 }
 0x9f9   :  { %v71_v41 = vld [vmem:[%s5014_s14 + $0x8] sm:$0xf] }
 0x9fa   :  { %v3864_v42 = vpop.eup %3863  ;;  %75 = vst [vmem:[%s5018_s18 + $0x8] sm:$0xf] %v71_v41 }
 0x9fb   :  { %v3866_v13 = vpop.eup %3865  ;;  %v1237_v44 = vadd.f32 1.0, %v3864_v42  ;;  %v64_v42 = vld [vmem:[%s5013_s13 + $0xc] sm:$0xf] }
 0x9fc   :  { %v1238_v45 = vadd.f32 1.0, %v3866_v13  ;;  %68 = vst [vmem:[%s5017_s17 + $0xc] sm:$0xf] %v64_v42 }
 0x9fd   :  { %3867 = vrcp.f32 %v1237_v44 }
 0x9fe   :  { %3869 = vrcp.f32 %v1238_v45 }
 0xa03   :  { %v63_v13 = vld [vmem:[%s5013_s13 + $0x8] sm:$0xf] }
 0xa04   :  { %67 = vst [vmem:[%s5017_s17 + $0x8] sm:$0xf] %v63_v13 }
 0xa07   :  { %v3868_v46 = vpop.eup %3867 }
 0xa08   :  { %v3870_v47 = vpop.eup %3869  ;;  %v1243_v48 = vmul.f32 %v3868_v46, %v1183_v31  ;;  %v3136_v46 = vld [vmem:[%s5018_s18 + $0xc] sm:$0x1] }
 0xa09   :  { %v1244_v49 = vmul.f32 %v3870_v47, %v1185_v34 }
 0xa0a   :  { %v1245_v50 = vmul.f32 %v1243_v48, %v1224_v32 }
 0xa0b   :  { %v1246_v51 = vmul.f32 %v1244_v49, %v1226_v36  ;;  %v3077_v36 = vld [vmem:[%s5026_s2 + $0x1] sm:$0x1] }
 0xa0c   :  { %v1247_v56 = vpack.c.bf16 %v1245_v50, %v1245_v50 }
 0xa0d   :  { %v1248_v52 = vpack.c.bf16 %v1246_v51, %v1246_v51 }
 0xa0f   :  { %1409 = vmatprep.mubr.bf16.mxu1 %v1248_v52 }
 0xa10   :  { %1410 = vmatmul.mubr.bf16.vlgmr.msra.gmra.mrb[32].mxu1 %v1247_v56 }
 0xa11   :  { %3523 = vmatprep.mubr.msk.bf16.mxu1 %vm3952_vm1, %v3950_v2  ;;  %3508 = vmatpush3.bf16.msra.mxu1 %v3716_v59 }
 0xa12   :  { %3509 = vmatprep.subr.bf16.mxu1 %v3950_v2 }
 0xa15   :  { %3510 = vmatpush3.bf16.msra.mxu1 %v3720_v61 }
 0xa16   :  { %3511 = vmatprep.subr.bf16.mxu1 %v3950_v2 }
 0xa19   :  { %3512 = vmatpush3.bf16.msra.mxu1 %v3724_v1 }
 0xa1a   :  { %3513 = vmatprep.subr.bf16.mxu1 %v3950_v2 }
 0xa1d   :  { %3514 = vmatpush3.bf16.msra.mxu1 %v3728_v18 }
 0xa1e   :  { %3515 = vmatprep.subr.bf16.mxu1 %v3950_v2 }
 0xa21   :  { %3516 = vmatpush3.bf16.msra.mxu1 %v3732_v21 }
 0xa22   :  { %3517 = vmatprep.subr.bf16.mxu1 %v3950_v2 }
 0xa25   :  { %3518 = vmatpush3.bf16.msra.mxu1 %v3736_v23 }
 0xa26   :  { %3519 = vmatprep.subr.bf16.mxu1 %v3950_v2 }
 0xa29   :  { %3520 = vmatpush3.bf16.msra.mxu1 %v3740_v27 }
 0xa2a   :  { %3521 = vmatprep.subr.bf16.mxu1 %v3950_v2 }
 0xa2d   :  { %3522 = vmatpush3.bf16.msra.mxu1 %v3744_v30 }
 0xa2e   :  { %3533 = vmatprep.subr.bf16.mxu1 %v3950_v2 }
 0xae3   :  { %v3357_v4 = vpop.f32.mrb[32].mxu1 }
 0xae4   :  { %v3358_v5 = vpop.f32.mrb[33].mxu1 }
 0xae5   :  { %v3359_v6 = vadd.f32 %v3358_v5, %v3357_v4  ;;  %v3360_v7 = vpop.f32.mrb[34].mxu1 }
 0xae6   :  { %v3361_v8 = vpop.f32.mrb[35].mxu1 }
 0xae7   :  { %v4541_v9 = vadd.f32 %v3359_v6, %v4389_v35  ;;  %v3729_v35 = vld [vmem:[%s5003_s3 + $0x120] ss:$12 sps:$4 sm:$0xff]  }
 0xae8   :  { %1600 = vmatpush1.bf16.msra.mxu0 %v3729_v35  ;;  %v3134_v8 = vld [vmem:[%s5017_s17 + $0xc] sm:$0x1] }
 0xae9   :  { %v1418_v10 = vmul.f32 %v4541_v9, %v4541_v9  ;;  %1601 = vmatprep.subr.bf16.mxu0 %v3735_v22 }
 0xaeb   :  { %v1419_v11 = vsel %vm88_vm0, %v1418_v10, 0.0 }
 0xaec   :  { %1420 = vadd.xlane.f32.xlu1 %v1419_v11  ;;  %1602 = vmatpush1.bf16.msra.mxu0 %v3733_v0 }
 0xaed   :  { %1603 = vmatprep.subr.bf16.mxu0 %v3739_v24 }
 0xaf0   :  { %1604 = vmatpush1.bf16.msra.mxu0 %v3737_v26 }
 0xaf1   :  { %1605 = vmatprep.subr.bf16.mxu0 %v3743_v28 }
 0xaf4   :  { %1606 = vmatpush1.bf16.msra.mxu0 %v3741_v29 }
 0xaf5   :  { %3527 = vmatprep.subr.bf16.mxu0 %v3950_v2 }
 0xb79   :  { %v1421_v31 = vpop.xlane.xlu1 %1420 }
 0xb7a   :  { %v1422_v32 = vmul.f32 0.0078125, %v1421_v31 }
 0xb7c   :  { %v1423_v33 = vadd.f32 1e-06, %v1422_v32 }
 0xb7e   :  { %3871 = vrsqrt.f32 %v1423_v33 }
 0xb88   :  { %v3872_v34 = vpop.eup %3871 }
 0xb89   :  { %v1425_v37 = vmul.f32 %v3872_v34, %v4541_v9 }
 0xb8b   :  { %v1428_v38 = vmul.f32 %v3077_v36, %v1425_v37 }
 0xb8d   :  { %v1429_v39 = vpack.c.bf16 %v1428_v38, %v1428_v38 }
 0xb8f   :  { %1624 = vmatmul.mubr.bf16.vlgmr.msra.gmra.mrb[20].mxu0 %v1429_v39  ;;  %3524 = vmatmul.mubr.bf16.vlgmr.msra.gmra.mrb[36].mxu1 %v1429_v39 }
 0xb90   :  { %3529 = vmatprep.mubr.msk.bf16.mxu0 %vm3952_vm1, %v3950_v2  ;;  %3535 = vmatprep.mubr.msk.bf16.mxu1 %vm3952_vm1, %v3950_v2 }
 0xc62   :  { %v1625_v44 = vpop.f32.mrb[20].mxu0  ;;  %v1666_v45 = vpop.f32.mrb[36].mxu1 }
 0xc63   :  { %v1695_v47 = vpack.c.bf16 %v1666_v45, %v1666_v45  ;;  %v1627_v48 = vpop.f32.mrb[21].mxu0  ;;  %v3525_v49 = vpop.f32.mrb[37].mxu1  ;;  %v1672_v5 = vmul.f32 %v1625_v44, %v4208_v53 }
 0xc64   :  { %v1669_v50 = vpop.f32.mrb[38].mxu1  ;;  %1686 = vrot.lane.b32.xlu1 %v1627_v48, %s3953_s27  ;;  %1682 = vrot.lane.b32.xlu0 %v1627_v48, %s3954_s28  ;;  %v1629_v51 = vpop.f32.mrb[22].mxu0  ;;  %v1681_v61 = vmul.f32 %v1627_v48, %v4208_v53 }
 0xc65   :  { %v1698_v52 = vsel %vm4189_vm3, %v1695_v47, %v3136_v46  ;;  %v1630_v56 = vpop.f32.mrb[23].mxu0  ;;  %v3526_v57 = vpop.f32.mrb[39].mxu1 }
 0xc66   :  { %3137 = vst [vmem:[%s5018_s18 + $0xc] sm:$0x1] %v1698_v52 }
 0xc68   :  { %1677 = vrot.lane.b32.xlu1 %v1625_v44, %s3953_s27  ;;  %1673 = vrot.lane.b32.xlu0 %v1625_v44, %s3954_s28 }
 0xc6d   :  { %v4644_v58 = vld [vmem:[%s5018_s18 + $0x8] sm:$0xff]   ;;  %s5029_s18 = sld [smem:[#allocation12_spill]] }
 0xc6e   :  { %3534 = vmatpush3.bf16.msra.mxu1 %v4644_v58 }
 0xc6f   :  { %3545 = vmatprep.subr.bf16.mxu1 %v3950_v2 }
 0xcd6   :  { %v1687_v59 = vpop.permute.xlu1 %1686  ;;  %v1683_v60 = vpop.permute.xlu0 %1682 }
 0xcd7   :  { %v1684_v62 = vmul.f32 %v1683_v60, %v4213_v54  ;;  %v1688_v63 = vmul.f32 %v1687_v59, %v4218_v55 }
 0xcd9   :  { %v1685_v1 = vadd.f32 %v1684_v62, %v1681_v61 }
 0xcda   :  { %v1678_v3 = vpop.permute.xlu1 %1677  ;;  %v1674_v4 = vpop.permute.xlu0 %1673 }
 0xcdb   :  { %v1689_v6 = vadd.f32 %v1688_v63, %v1685_v1  ;;  %v1675_v7 = vmul.f32 %v1674_v4, %v4213_v54  ;;  %v1679_v11 = vmul.f32 %v1678_v3, %v4218_v55 }
 0xcdd   :  { %v1690_v10 = vpack.c.bf16 %v1689_v6, %v1689_v6  ;;  %v1676_v12 = vadd.f32 %v1675_v7, %v1672_v5 }
 0xcdf   :  { %v1693_v16 = vsel %vm4189_vm3, %v1690_v10, %v3134_v8  ;;  %v1680_v18 = vadd.f32 %v1679_v11, %v1676_v12 }
 0xce0   :  { %3135 = vst [vmem:[%s5017_s17 + $0xc] sm:$0x1] %v1693_v16 }
 0xce1   :  { %v1704_v53 = vpack.c.bf16 %v1680_v18, %v1680_v18 }
 0xce3   :  { %1820 = vrot.lane.b32.xlu1 %v1704_v53, %s3956_s30 }
 0xce7   :  { %1930 = vrot.lane.b32.xlu1 %v1704_v53, %s3957_s0  ;;  %v3746_v54 = vld [vmem:[%s5017_s17 + $0x8] sm:$0xff]  }
 0xce8   :  { %1822 = vrot.lane.b32.xlu0 %v3746_v54, %s3956_s30  ;;  %v1714_v55 = vsel %vm380_vm4, %v3746_v54, 0 }
 0xce9   :  { %3528 = vmatpush3.bf16.xpose.msra.mxu0 %v1714_v55 }
 0xcea   :  { %3539 = vmatprep.subr.bf16.mxu0 %v3950_v2 }
 0xceb   :  { %2040 = vrot.lane.b32.xlu1 %v1704_v53, %s3958_s1 }
 0xcec   :  { %1932 = vrot.lane.b32.xlu0 %v3746_v54, %s3957_s0 }
 0xcf0   :  { %2042 = vrot.lane.b32.xlu0 %v3746_v54, %s3958_s1  ;;  %3530 = vmatmul.mubr.msk.bf16.vlgmr.msra.gmra.mrb[24].mxu0 %vm380_vm4, %v1704_v53 }
 0xcf1   :  { %3541 = vmatprep.mubr.msk.bf16.mxu0 %vm3952_vm1, %v3950_v2 }
 0xd55   :  { %v1821_v21 = vpop.permute.xlu1 %1820 }
 0xd59   :  { %v1931_v23 = vpop.permute.xlu1 %1930 }
 0xd5a   :  { %v1823_v43 = vpop.permute.xlu0 %1822 }
 0xd5b   :  { %v1828_v35 = vsel %vm380_vm4, %v1823_v43, 0 }
 0xd5c   :  { %3540 = vmatpush3.bf16.xpose.msra.mxu0 %v1828_v35 }
 0xd5d   :  { %3551 = vmatprep.subr.bf16.mxu0 %v3950_v2  ;;  %v2041_v26 = vpop.permute.xlu1 %2040 }
 0xd5e   :  { %v1933_v19 = vpop.permute.xlu0 %1932 }
 0xd5f   :  { %v1938_v22 = vsel %vm380_vm4, %v1933_v19, 0 }
 0xd62   :  { %v2043_v0 = vpop.permute.xlu0 %2042 }
 0xd63   :  { %3542 = vmatmul.mubr.msk.bf16.vlgmr.msra.gmra.mrb[28].mxu0 %vm380_vm4, %v1821_v21  ;;  %v2048_v24 = vsel %vm380_vm4, %v2043_v0, 0 }
 0xd64   :  { %3552 = vmatpush3.bf16.xpose.msra.mxu0 %v1938_v22  ;;  %3553 = vmatprep.mubr.msk.bf16.mxu0 %vm3952_vm1, %v3950_v2 }
 0xd65   :  { %3563 = vmatprep.subr.bf16.mxu0 %v3950_v2 }
 0xd6b   :  { %3554 = vmatmul.mubr.msk.bf16.vlgmr.msra.gmra.mrb[32].mxu0 %vm380_vm4, %v1931_v23 }
 0xd6c   :  { %3564 = vmatpush3.bf16.xpose.msra.mxu0 %v2048_v24  ;;  %3565 = vmatprep.mubr.msk.bf16.mxu0 %vm3952_vm1, %v3950_v2 }
 0xd6d   :  { %3575 = vmatprep.subr.bf16.mxu0 %v3950_v2 }
 0xd73   :  { %3566 = vmatmul.mubr.msk.bf16.vlgmr.msra.gmra.mrb[36].mxu0 %vm380_vm4, %v2041_v26 }
 0xd74   :  { %3591 = vmatprep.mubr.msk.bf16.mxu0 %vm3952_vm1, %v3950_v2 }
 0xdc3   :  { %v1750_v27 = vpop.f32.mrb[24].mxu0 }
 0xdc4   :  { %v1756_v28 = vmul.f32 0.17677669, %v1750_v27  ;;  %v3531_v29 = vpop.f32.mrb[25].mxu0 }
 0xdc5   :  { %v1753_v30 = vpop.f32.mrb[26].mxu0 }
 0xdc6   :  { %v3532_v31 = vpop.f32.mrb[27].mxu0  ;;  %v1757_v32 = vadd.f32 %v1756_v28, %v4257_v20 }
 0xdc8   :  { %v1758_v33 = vsel %vm429_vm6, %v1757_v32, -inf }
 0xdc9   :  { %1759 = vmax.xlane.f32.xlu0 %v1758_v33 }
 0xe36   :  { %v1864_v34 = vpop.f32.mrb[28].mxu0 }
 0xe37   :  { %v1870_v36 = vmul.f32 0.17677669, %v1864_v34  ;;  %v3543_v37 = vpop.f32.mrb[29].mxu0 }
 0xe38   :  { %v1867_v38 = vpop.f32.mrb[30].mxu0 }
 0xe39   :  { %v3544_v39 = vpop.f32.mrb[31].mxu0  ;;  %v1871_v40 = vadd.f32 %v1870_v36, %v4257_v20 }
 0xe3b   :  { %v1872_v41 = vsel %vm429_vm6, %v1871_v40, -inf }
 0xe3c   :  { %1873 = vmax.xlane.f32.xlu1 %v1872_v41  ;;  %v3747_v41 = vld [vmem:[%s5004_s4 + $0x40] sm:$0xff]  }
 0xe3d   :  { %3576 = vmatpush3.bf16.msra.mxu0 %v3747_v41  ;;  %v3791_v41 = vld [vmem:[%s5006_s6 + $0x1c0] ss:$16 sps:$4 sm:$0xff]  }
 0xe3e   :  { %v1974_v42 = vpop.f32.mrb[32].mxu0  ;;  %3577 = vmatprep.subr.bf16.mxu0 %v3950_v2 }
 0xe3f   :  { %v1980_v13 = vmul.f32 0.17677669, %v1974_v42  ;;  %v3555_v44 = vpop.f32.mrb[33].mxu0  ;;  %v3748_v42 = vld [vmem:[%s5004_s4 + $0x48] sm:$0xff]  }
 0xe40   :  { %v1977_v45 = vpop.f32.mrb[34].mxu0  ;;  %v3750_v44 = vld [vmem:[%s5004_s4 + $0x58] sm:$0xff]  }
 0xe41   :  { %v3556_v46 = vpop.f32.mrb[35].mxu0  ;;  %v1981_v47 = vadd.f32 %v1980_v13, %v4257_v20  ;;  %3578 = vmatpush3.bf16.msra.mxu0 %v3748_v42  ;;  %v3749_v13 = vld [vmem:[%s5004_s4 + $0x50] sm:$0xff]   ;;  %v3751_v45 = vld [vmem:[%s5004_s4 + $0x60] sm:$0xff]   ;;  %v3794_v42 = vld [vmem:[%s5006_s6 + $0x1c8] ss:$16 sps:$4 sm:$0xff]  }
 0xe42   :  { %3579 = vmatprep.subr.bf16.mxu0 %v3950_v2  ;;  %v3752_v46 = vld [vmem:[%s5004_s4 + $0x68] sm:$0xff]  }
 0xe43   :  { %v1982_v48 = vsel %vm429_vm6, %v1981_v47, -inf }
 0xe44   :  { %1983 = vmax.xlane.f32.xlu0 %v1982_v48 }
 0xe45   :  { %3580 = vmatpush3.bf16.msra.mxu0 %v3749_v13  ;;  %v3799_v13 = vld [vmem:[%s5006_s6 + $0x1e4] ss:$16 sps:$4 sm:$0xff]  }
 0xe46   :  { %v2084_v49 = vpop.f32.mrb[36].mxu0  ;;  %3581 = vmatprep.subr.bf16.mxu0 %v3950_v2 }
 0xe47   :  { %v2090_v50 = vmul.f32 0.17677669, %v2084_v49  ;;  %v3567_v51 = vpop.f32.mrb[37].mxu0 }
 0xe48   :  { %v2087_v52 = vpop.f32.mrb[38].mxu0 }
 0xe49   :  { %v3568_v56 = vpop.f32.mrb[39].mxu0  ;;  %v2091_v57 = vadd.f32 %v2090_v50, %v4257_v20  ;;  %3582 = vmatpush3.bf16.msra.mxu0 %v3750_v44  ;;  %v3754_v52 = vld [vmem:[%s5004_s4 + $0x78] sm:$0xff]  }
 0xe4a   :  { %3583 = vmatprep.subr.bf16.mxu0 %v3950_v2  ;;  %v3802_v44 = vld [vmem:[%s5006_s6 + $0x1ec] ss:$16 sps:$4 sm:$0xff]  }
 0xe4b   :  { %v2092_v59 = vsel %vm429_vm6, %v2091_v57, -inf }
 0xe4c   :  { %2093 = vmax.xlane.f32.xlu0 %v2092_v59 }
 0xe4d   :  { %3584 = vmatpush3.bf16.msra.mxu0 %v3751_v45  ;;  %v3797_v45 = vld [vmem:[%s5006_s6 + $0x1e0] ss:$16 sps:$4 sm:$0xff]  }
 0xe4e   :  { %3585 = vmatprep.subr.bf16.mxu0 %v3950_v2 }
 0xe51   :  { %3586 = vmatpush3.bf16.msra.mxu0 %v3752_v46  ;;  %v3800_v46 = vld [vmem:[%s5006_s6 + $0x1e8] ss:$16 sps:$4 sm:$0xff]  }
 0xe52   :  { %3587 = vmatprep.subr.bf16.mxu0 %v3950_v2 }
 0xe56   :  { %v1760_v60 = vpop.xlane.xlu0 %1759 }
 0xe57   :  { %v1761_v61 = vsub.f32 %v1757_v32, %v1760_v60 }
 0xe59   :  { %v1762_v62 = vmul.f32 1.442695, %v1761_v61 }
 0xe5b   :  { %3873 = vpow2.f32 %v1762_v62 }
 0xe65   :  { %v3874_v63 = vpop.eup %3873 }
 0xe66   :  { %v1764_v1 = vsel %vm429_vm6, %v3874_v63, 0.0 }
 0xe67   :  { %1765 = vadd.xlane.f32.xlu1 %v1764_v1 }
 0xe78   :  { %1884 = vrot.lane.b32.xlu1 %v4644_v58, %s3956_s30 }
 0xec9   :  { %v1874_v3 = vpop.xlane.xlu1 %1873 }
 0xeca   :  { %v1875_v4 = vsub.f32 %v1871_v40, %v1874_v3 }
 0xecc   :  { %v1876_v5 = vmul.f32 1.442695, %v1875_v4 }
 0xece   :  { %3875 = vpow2.f32 %v1876_v5 }
 0xed1   :  { %v1984_v6 = vpop.xlane.xlu0 %1983 }
 0xed2   :  { %v1985_v20 = vsub.f32 %v1981_v47, %v1984_v6  ;;  %v3753_v47 = vld [vmem:[%s5004_s4 + $0x70] sm:$0xff]  }
 0xed3   :  { %3588 = vmatpush3.bf16.msra.mxu0 %v3753_v47 }
 0xed4   :  { %v1986_v7 = vmul.f32 1.442695, %v1985_v20  ;;  %3589 = vmatprep.subr.bf16.mxu0 %v3950_v2 }
 0xed6   :  { %3877 = vpow2.f32 %v1986_v7 }
 0xed7   :  { %3590 = vmatpush3.bf16.msra.mxu0 %v3754_v52 }
 0xed8   :  { %v3876_v8 = vpop.eup %3875 }
 0xed9   :  { %v2094_v10 = vpop.xlane.xlu0 %2093  ;;  %v1878_v11 = vsel %vm429_vm6, %v3876_v8, 0.0 }
 0xeda   :  { %v2095_v12 = vsub.f32 %v2091_v57, %v2094_v10  ;;  %1879 = vadd.xlane.f32.xlu0 %v1878_v11  ;;  %v3757_v10 = vld [vmem:[%s5006_s6 + $0x104] ss:$16 sps:$4 sm:$0xff]   ;;  %v3758_v11 = vld [vmem:[%s5006_s6 + $0x108] ss:$16 sps:$4 sm:$0xff]  }
 0xedc   :  { %v2096_v16 = vmul.f32 1.442695, %v2095_v12  ;;  %v3760_v12 = vld [vmem:[%s5006_s6 + $0x10c] ss:$16 sps:$4 sm:$0xff]  }
 0xedd   :  { %2518 = vmatprep.subr.bf16.mxu0 %v3760_v12 }
 0xede   :  { %3879 = vpow2.f32 %v2096_v16  ;;  %v3763_v16 = vld [vmem:[%s5006_s6 + $0x124] ss:$16 sps:$4 sm:$0xff]  }
 0xee0   :  { %v3878_v18 = vpop.eup %3877 }
 0xee1   :  { %v1988_v53 = vsel %vm429_vm6, %v3878_v18, 0.0 }
 0xee2   :  { %1989 = vadd.xlane.f32.xlu1 %v1988_v53  ;;  %v3761_v53 = vld [vmem:[%s5006_s6 + $0x120] ss:$16 sps:$4 sm:$0xff]  }
 0xee8   :  { %v3880_v54 = vpop.eup %3879 }
 0xee9   :  { %v2098_v55 = vsel %vm429_vm6, %v3880_v54, 0.0 }
 0xeea   :  { %2099 = vadd.xlane.f32.xlu0 %v2098_v55  ;;  %v3769_v55 = vld [vmem:[%s5006_s6 + $0x144] ss:$16 sps:$4 sm:$0xff]  }
 0xef3   :  { %2104 = vrot.lane.b32.xlu1 %v4644_v58, %s3958_s1 }
 0xef4   :  { %v1766_v43 = vpop.xlane.xlu1 %1765 }
 0xef5   :  { %3881 = vrcp.f32 %v1766_v43  ;;  %v3772_v43 = vld [vmem:[%s5006_s6 + $0x14c] ss:$16 sps:$4 sm:$0xff]  }
 0xef8   :  { %v1885_v22 = vpop.permute.xlu1 %1884 }
 0xeff   :  { %v3882_v35 = vpop.eup %3881 }
 0xf00   :  { %v1768_v19 = vmul.f32 %v3882_v35, %v3874_v63  ;;  %1994 = vrot.lane.b32.xlu0 %v4644_v58, %s3957_s0  ;;  %v3767_v35 = vld [vmem:[%s5006_s6 + $0x140] ss:$16 sps:$4 sm:$0xff]  }
 0xf02   :  { %v1769_v21 = vpack.c.bf16 %v1768_v19, %v1768_v19  ;;  %v3770_v19 = vld [vmem:[%s5006_s6 + $0x148] ss:$16 sps:$4 sm:$0xff]  }
 0xf04   :  { %3536 = vmatmul.mubr.msk.bf16.vlgmr.msra.gmra.mrb[40].mxu1 %vm448_vm7, %v1769_v21 }
 0xf05   :  { %3546 = vmatpush3.bf16.msra.mxu1 %v1885_v22  ;;  %3547 = vmatprep.mubr.msk.bf16.mxu1 %vm3952_vm1, %v3950_v2 }
 0xf06   :  { %3557 = vmatprep.subr.bf16.mxu1 %v3950_v2 }
 0xf67   :  { %v1880_v0 = vpop.xlane.xlu0 %1879 }
 0xf68   :  { %3883 = vrcp.f32 %v1880_v0 }
 0xf6f   :  { %v1990_v23 = vpop.xlane.xlu1 %1989 }
 0xf70   :  { %3885 = vrcp.f32 %v1990_v23 }
 0xf72   :  { %v3884_v24 = vpop.eup %3883 }
 0xf73   :  { %v1882_v26 = vmul.f32 %v3884_v24, %v3876_v8  ;;  %v2105_v32 = vpop.permute.xlu1 %2104  ;;  %v3755_v8 = vld [vmem:[%s5006_s6 + $0x100] ss:$16 sps:$4 sm:$0xff]  }
 0xf75   :  { %v1883_v27 = vpack.c.bf16 %v1882_v26, %v1882_v26 }
 0xf77   :  { %3548 = vmatmul.mubr.msk.bf16.vlgmr.msra.gmra.mrb[44].mxu1 %vm448_vm7, %v1883_v27  ;;  %v2100_v58 = vpop.xlane.xlu0 %2099 }
 0xf78   :  { %3887 = vrcp.f32 %v2100_v58  ;;  %3559 = vmatprep.mubr.msk.bf16.mxu1 %vm3952_vm1, %v3950_v2  ;;  %v3775_v58 = vld [vmem:[%s5006_s6 + $0x164] ss:$16 sps:$4 sm:$0xff]  }
 0xf7a   :  { %v3886_v28 = vpop.eup %3885 }
 0xf7b   :  { %v1992_v29 = vmul.f32 %v3886_v28, %v3878_v18  ;;  %v1995_v30 = vpop.permute.xlu0 %1994  ;;  %v3766_v18 = vld [vmem:[%s5006_s6 + $0x12c] ss:$16 sps:$4 sm:$0xff]  }
 0xf7c   :  { %3558 = vmatpush3.bf16.msra.mxu1 %v1995_v30  ;;  %v3778_v28 = vld [vmem:[%s5006_s6 + $0x16c] ss:$16 sps:$4 sm:$0xff]   ;;  %v3779_v30 = vld [vmem:[%s5006_s6 + $0x180] ss:$16 sps:$4 sm:$0xff]  }
 0xf7d   :  { %v1993_v31 = vpack.c.bf16 %v1992_v29, %v1992_v29  ;;  %3569 = vmatprep.subr.bf16.mxu1 %v3950_v2  ;;  %v3776_v29 = vld [vmem:[%s5006_s6 + $0x168] ss:$16 sps:$4 sm:$0xff]  }
 0xf7f   :  { %3560 = vmatmul.mubr.msk.bf16.vlgmr.msra.gmra.mrb[48].mxu1 %vm448_vm7, %v1993_v31  ;;  %v3781_v31 = vld [vmem:[%s5006_s6 + $0x184] ss:$16 sps:$4 sm:$0xff]  }
 0xf80   :  { %3570 = vmatpush3.bf16.msra.mxu1 %v2105_v32  ;;  %3571 = vmatprep.mubr.msk.bf16.mxu1 %vm3952_vm1, %v3950_v2  ;;  %v3782_v32 = vld [vmem:[%s5006_s6 + $0x188] ss:$16 sps:$4 sm:$0xff]  }
 0xf81   :  { %2477 = vmatprep.subr.bf16.mxu1 %v3757_v10  ;;  %v3818_v10 = vld [vmem:[%s5007_s7 + $0xb8] sm:$0xff]  }
 0xf82   :  { %v3888_v33 = vpop.eup %3887 }
 0xf83   :  { %v2102_v34 = vmul.f32 %v3888_v33, %v3880_v54  ;;  %v3764_v54 = vld [vmem:[%s5006_s6 + $0x128] ss:$16 sps:$4 sm:$0xff]   ;;  %v3784_v33 = vld [vmem:[%s5006_s6 + $0x18c] ss:$16 sps:$4 sm:$0xff]  }
 0xf85   :  { %v2103_v36 = vpack.c.bf16 %v2102_v34, %v2102_v34  ;;  %v3787_v34 = vld [vmem:[%s5006_s6 + $0x1a4] ss:$16 sps:$4 sm:$0xff]  }
 0xf87   :  { %3572 = vmatmul.mubr.msk.bf16.vlgmr.msra.gmra.mrb[52].mxu1 %vm448_vm7, %v2103_v36  ;;  %v3790_v36 = vld [vmem:[%s5006_s6 + $0x1ac] ss:$16 sps:$4 sm:$0xff]  }
 0xf88   :  { %2509 = vmatprep.mubr.bf16.mxu1 %v3951_v25  ;;  %2478 = vmatpush1.bf16.msra.mxu1 %v3755_v8  ;;  %v3817_v8 = vld [vmem:[%s5007_s7 + $0xf8] sm:$0xff]  }
 0xf89   :  { %2479 = vmatprep.subr.bf16.mxu1 %v3763_v16 }
 0xf8c   :  { %2480 = vmatpush1.bf16.msra.mxu1 %v3761_v53 }
 0xf8d   :  { %2481 = vmatprep.subr.bf16.mxu1 %v3769_v55 }
 0xf90   :  { %2482 = vmatpush1.bf16.msra.mxu1 %v3767_v35 }
 0xf91   :  { %2483 = vmatprep.subr.bf16.mxu1 %v3775_v58 }
 0xfd7   :  { %v1813_v37 = vpop.f32.mrb[40].mxu1 }
 0xfd8   :  { %v3537_v38 = vpop.f32.mrb[41].mxu1 }
 0xfd9   :  { %v1816_v39 = vpop.f32.mrb[42].mxu1  ;;  %v3788_v38 = vld [vmem:[%s5006_s6 + $0x1a8] ss:$16 sps:$4 sm:$0xff]  }
 0xfda   :  { %v3538_v40 = vpop.f32.mrb[43].mxu1  ;;  %v3793_v39 = vld [vmem:[%s5006_s6 + $0x1c4] ss:$16 sps:$4 sm:$0xff]  }
 0xfdb   :  { %v3796_v40 = vld [vmem:[%s5006_s6 + $0x1cc] ss:$16 sps:$4 sm:$0xff]  }
0x104a   :  { %v1924_v48 = vpop.f32.mrb[44].mxu1 }
0x104b   :  { %2151 = vrot.lane.b32.xlu1 %v1924_v48, %s3958_s1  ;;  %v3549_v49 = vpop.f32.mrb[45].mxu1 }
0x104c   :  { %v1927_v50 = vpop.f32.mrb[46].mxu1 }
0x104d   :  { %v3550_v51 = vpop.f32.mrb[47].mxu1 }
0x104e   :  { %v3176_v51 = vld [vmem:[%s5005_s5 + $0x1] sm:$0x1] }
0x1052   :  { %v2034_v56 = vpop.f32.mrb[48].mxu1 }
0x1053   :  { %2155 = vrot.lane.b32.xlu0 %v2034_v56, %s3957_s0  ;;  %v3561_v57 = vpop.f32.mrb[49].mxu1 }
0x1054   :  { %v2037_v59 = vpop.f32.mrb[50].mxu1 }
0x1055   :  { %v3562_v60 = vpop.f32.mrb[51].mxu1  ;;  %v3803_v59 = vld [vmem:[%s5007_s7 + $0xc0] sm:$0xff]  }
0x1056   :  { %v3804_v60 = vld [vmem:[%s5007_s7 + $0x80] sm:$0xff]  }
0x105a   :  { %v2144_v61 = vpop.f32.mrb[52].mxu1 }
0x105b   :  { %2159 = vrot.lane.b32.xlu1 %v2144_v61, %s3956_s30  ;;  %v3573_v62 = vpop.f32.mrb[53].mxu1  ;;  %v3805_v61 = vld [vmem:[%s5007_s7 + $0xc8] sm:$0xff]  }
0x105c   :  { %v2147_v63 = vpop.f32.mrb[54].mxu1  ;;  %v3806_v62 = vld [vmem:[%s5007_s7 + $0x88] sm:$0xff]  }
0x105d   :  { %v3574_v1 = vpop.f32.mrb[55].mxu1  ;;  %v3808_v63 = vld [vmem:[%s5007_s7 + $0x90] sm:$0xff]  }
0x105e   :  { %v3809_v1 = vld [vmem:[%s5007_s7 + $0xd8] sm:$0xff]  }
0x10bd   :  { %v2152_v3 = vpop.permute.xlu1 %2151 }
0x10be   :  { %v2162_v4 = vsel %vm380_vm4, %v1813_v37, %v2152_v3  ;;  %v3785_v37 = vld [vmem:[%s5006_s6 + $0x1a0] ss:$16 sps:$4 sm:$0xff]   ;;  %v3810_v3 = vld [vmem:[%s5007_s7 + $0x98] sm:$0xff]  }
0x10c5   :  { %v2156_v2 = vpop.permute.xlu0 %2155 }
0x10c6   :  { %v2163_v5 = vsel %vm836_vm8, %v2162_v4, %v2156_v2  ;;  %v3811_v2 = vld [vmem:[%s5007_s7 + $0xe0] sm:$0xff]  }
0x10c7   :  { %v3812_v4 = vld [vmem:[%s5007_s7 + $0xa0] sm:$0xff]  }
0x10cd   :  { %v2160_v6 = vpop.permute.xlu1 %2159 }
0x10ce   :  { %v2164_v20 = vsel %vm838_vm9, %v2163_v5, %v2160_v6  ;;  %v3813_v5 = vld [vmem:[%s5007_s7 + $0xe8] sm:$0xff]  }
0x10cf   :  { %v2165_v7 = vpack.c.bf16 %v2164_v20, %v2164_v20  ;;  %v3814_v6 = vld [vmem:[%s5007_s7 + $0xa8] sm:$0xff]   ;;  %v3815_v20 = vld [vmem:[%s5007_s7 + $0xf0] sm:$0xff]  }
0x10d1   :  { %3592 = vmatmul.mubr.bf16.vlgmr.msra.gmra.mrb[40].mxu0 %v2165_v7  ;;  %v3816_v7 = vld [vmem:[%s5007_s7 + $0xb0] sm:$0xff]  }
0x10d2   :  { %2550 = vmatprep.mubr.bf16.mxu0 %v3951_v25  ;;  %2519 = vmatpush1.bf16.msra.mxu0 %v3758_v11 }
0x10d3   :  { %2520 = vmatprep.subr.bf16.mxu0 %v3766_v18 }
0x10d6   :  { %2521 = vmatpush1.bf16.msra.mxu0 %v3764_v54 }
0x10d7   :  { %2522 = vmatprep.subr.bf16.mxu0 %v3772_v43 }
0x10da   :  { %2523 = vmatpush1.bf16.msra.mxu0 %v3770_v19 }
0x10db   :  { %2524 = vmatprep.subr.bf16.mxu0 %v3778_v28 }
0x10de   :  { %2525 = vmatpush1.bf16.msra.mxu0 %v3776_v29 }
0x10df   :  { %2526 = vmatprep.subr.bf16.mxu0 %v3784_v33  ;;  %v3821_v33 = vld [vmem:[%s5009_s9 + $0x4] ss:$8 sps:$4 sm:$0xff]  }
0x10e2   :  { %2527 = vmatpush1.bf16.msra.mxu0 %v3782_v32  ;;  %v3819_v32 = vld [vmem:[%s5009_s9] ss:$8 sps:$4 sm:$0xff]  }
0x10e3   :  { %2528 = vmatprep.subr.bf16.mxu0 %v3790_v36  ;;  %v3822_v36 = vld [vmem:[%s5009_s9 + $0x10] ss:$8 sps:$4 sm:$0xff]  }
0x10e6   :  { %2529 = vmatpush1.bf16.msra.mxu0 %v3788_v38  ;;  %v3825_v38 = vld [vmem:[%s5009_s9 + $0x20] ss:$8 sps:$4 sm:$0xff]  }
0x10e7   :  { %2530 = vmatprep.subr.bf16.mxu0 %v3796_v40 }
0x10ea   :  { %2531 = vmatpush1.bf16.msra.mxu0 %v3794_v42 }
0x10eb   :  { %2532 = vmatprep.subr.bf16.mxu0 %v3802_v44 }
0x10ee   :  { %2533 = vmatpush1.bf16.msra.mxu0 %v3800_v46 }
0x10ef   :  { %2854 = vmatprep.subr.bf16.mxu0 %v3821_v33 }
0x11a4   :  { %v2265_v21 = vpop.f32.mrb[40].mxu0 }
0x11a5   :  { %v4797_v22 = vadd.f32 %v2265_v21, %v4541_v9  ;;  %v3593_v0 = vpop.f32.mrb[41].mxu0  ;;  %v3773_v9 = vld [vmem:[%s5006_s6 + $0x160] ss:$16 sps:$4 sm:$0xff]  }
0x11a6   :  { %v2268_v23 = vpop.f32.mrb[42].mxu0  ;;  %2484 = vmatpush1.bf16.msra.mxu1 %v3773_v9 }
0x11a7   :  { %v3594_v24 = vpop.f32.mrb[43].mxu0  ;;  %v2272_v26 = vmul.f32 %v4797_v22, %v4797_v22  ;;  %2485 = vmatprep.subr.bf16.mxu1 %v3781_v31 }
0x11a9   :  { %v2273_v27 = vsel %vm88_vm0, %v2272_v26, 0.0 }
0x11aa   :  { %2274 = vadd.xlane.f32.xlu0 %v2273_v27  ;;  %2486 = vmatpush1.bf16.msra.mxu1 %v3779_v30 }
0x11ab   :  { %2487 = vmatprep.subr.bf16.mxu1 %v3787_v34  ;;  %v3824_v34 = vld [vmem:[%s5009_s9 + $0x14] ss:$8 sps:$4 sm:$0xff]  }
0x11ae   :  { %2488 = vmatpush1.bf16.msra.mxu1 %v3785_v37  ;;  %v3827_v37 = vld [vmem:[%s5009_s9 + $0x24] ss:$8 sps:$4 sm:$0xff]  }
0x11af   :  { %2489 = vmatprep.subr.bf16.mxu1 %v3793_v39 }
0x11b2   :  { %2490 = vmatpush1.bf16.msra.mxu1 %v3791_v41 }
0x11b3   :  { %2491 = vmatprep.subr.bf16.mxu1 %v3799_v13 }
0x11b6   :  { %2492 = vmatpush1.bf16.msra.mxu1 %v3797_v45 }
0x11b7   :  { %3397 = vmatprep.subr.bf16.mxu1 %v3803_v59  ;;  %v3840_v59 = vld [vmem:[%s5009_s9 + $0x70] ss:$8 sps:$4 sm:$0xff]  }
0x1237   :  { %v2275_v47 = vpop.xlane.xlu0 %2274 }
0x1238   :  { %v2276_v48 = vmul.f32 0.0078125, %v2275_v47  ;;  %v3830_v47 = vld [vmem:[%s5009_s9 + $0x34] ss:$8 sps:$4 sm:$0xff]  }
0x123a   :  { %v2277_v49 = vadd.f32 1e-06, %v2276_v48  ;;  %v3828_v48 = vld [vmem:[%s5009_s9 + $0x30] ss:$8 sps:$4 sm:$0xff]  }
0x123c   :  { %3889 = vrsqrt.f32 %v2277_v49  ;;  %v3831_v49 = vld [vmem:[%s5009_s9 + $0x40] ss:$8 sps:$4 sm:$0xff]  }
0x1246   :  { %v3890_v50 = vpop.eup %3889 }
0x1247   :  { %v2279_v52 = vmul.f32 %v3890_v50, %v4797_v22  ;;  %v3836_v50 = vld [vmem:[%s5009_s9 + $0x54] ss:$8 sps:$4 sm:$0xff]  }
0x1249   :  { %v2282_v56 = vmul.f32 %v3176_v51, %v2279_v52  ;;  %v3834_v51 = vld [vmem:[%s5009_s9 + $0x50] ss:$8 sps:$4 sm:$0xff]   ;;  %v3839_v52 = vld [vmem:[%s5009_s9 + $0x64] ss:$8 sps:$4 sm:$0xff]  }
0x124b   :  { %v2283_v57 = vpack.c.bf16 %v2282_v56, %v2282_v56  ;;  %v3837_v56 = vld [vmem:[%s5009_s9 + $0x60] ss:$8 sps:$4 sm:$0xff]  }
0x124d   :  { %2510 = vmatmul.mubr.bf16.vlgmr.msra.gmra.mrb[56].mxu1 %v2283_v57  ;;  %2551 = vmatmul.mubr.bf16.vlgmr.msra.gmra.mrb[44].mxu0 %v2283_v57  ;;  %v3842_v57 = vld [vmem:[%s5009_s9 + $0x74] ss:$8 sps:$4 sm:$0xff]  }
0x124e   :  { %2886 = vmatprep.mubr.bf16.mxu0 %v3951_v25  ;;  %3398 = vmatpush3.bf16.msra.mxu1 %v3804_v60  ;;  %v3807_v25 = vld [vmem:[%s5007_s7 + $0xd0] sm:$0xff]  }
0x124f   :  { %3399 = vmatprep.subr.bf16.mxu1 %v3805_v61  ;;  %2855 = vmatpush1.bf16.msra.mxu0 %v3819_v32 }
0x1250   :  { %2856 = vmatprep.subr.bf16.mxu0 %v3824_v34 }
0x1252   :  { %3400 = vmatpush3.bf16.msra.mxu1 %v3806_v62 }
0x1253   :  { %3401 = vmatprep.subr.bf16.mxu1 %v3807_v25  ;;  %2857 = vmatpush1.bf16.msra.mxu0 %v3822_v36 }
0x1254   :  { %2858 = vmatprep.subr.bf16.mxu0 %v3827_v37 }
0x1256   :  { %3402 = vmatpush3.bf16.msra.mxu1 %v3808_v63  ;;  %v2755_v63 = vld [vmem:[%s5029_s18] sm:$0x1] }
0x1257   :  { %3403 = vmatprep.subr.bf16.mxu1 %v3809_v1  ;;  %2859 = vmatpush1.bf16.msra.mxu0 %v3825_v38 }
0x1258   :  { %2860 = vmatprep.subr.bf16.mxu0 %v3830_v47 }
0x125a   :  { %3404 = vmatpush3.bf16.msra.mxu1 %v3810_v3 }
0x125b   :  { %3405 = vmatprep.subr.bf16.mxu1 %v3811_v2  ;;  %2861 = vmatpush1.bf16.msra.mxu0 %v3828_v48 }
0x125e   :  { %3406 = vmatpush3.bf16.msra.mxu1 %v3812_v4  ;;  %v3959_v4 = vmov 1966171168  }
0x125f   :  { %3407 = vmatprep.subr.bf16.mxu1 %v3813_v5  ;;  %v2899_v5 = vunpack.c.l.s4 %v3959_v4 }
0x1262   :  { %3408 = vmatpush3.bf16.msra.mxu1 %v3814_v6  ;;  %v2900_v6 = vunpack.c.0.s8 %v2899_v5 }
0x1263   :  { %3409 = vmatprep.subr.bf16.mxu1 %v3815_v20 }
0x1266   :  { %3410 = vmatpush3.bf16.msra.mxu1 %v3816_v7  ;;  %v2903_v7 = vsub.s32 %v2900_v6, %v4250_v15 }
0x1267   :  { %3411 = vmatprep.subr.bf16.mxu1 %v3817_v8 }
0x126a   :  { %3412 = vmatpush3.bf16.msra.mxu1 %v3818_v10 }
0x1320   :  { %v2511_v11 = vpop.f32.mrb[56].mxu1  ;;  %v2552_v12 = vpop.f32.mrb[44].mxu0 }
0x1321   :  { %v3241_v16 = vmul.f32 -1.442695, %v2511_v11  ;;  %v2513_v18 = vpop.f32.mrb[57].mxu1  ;;  %v2554_v53 = vpop.f32.mrb[45].mxu0 }
0x1322   :  { %v3242_v54 = vmul.f32 -1.442695, %v2513_v18  ;;  %v2515_v55 = vpop.f32.mrb[58].mxu1  ;;  %v2556_v43 = vpop.f32.mrb[46].mxu0 }
0x1323   :  { %3891 = vpow2.f32 %v3241_v16  ;;  %v2516_v35 = vpop.f32.mrb[59].mxu1  ;;  %v2557_v19 = vpop.f32.mrb[47].mxu0  ;;  %v2923_v43 = vadd.s32 128, %v4254_v17 }
0x1324   :  { %3893 = vpow2.f32 %v3242_v54 }
0x132d   :  { %v3892_v21 = vpop.eup %3891 }
0x132e   :  { %v3894_v0 = vpop.eup %3893  ;;  %v2565_v23 = vadd.f32 1.0, %v3892_v21 }
0x132f   :  { %v2566_v24 = vadd.f32 1.0, %v3894_v0 }
0x1330   :  { %3895 = vrcp.f32 %v2565_v23 }
0x1331   :  { %3897 = vrcp.f32 %v2566_v24 }
0x133a   :  { %v3896_v26 = vpop.eup %3895 }
0x133b   :  { %v3898_v27 = vpop.eup %3897  ;;  %v2571_v58 = vmul.f32 %v3896_v26, %v2511_v11 }
0x133c   :  { %v2572_v28 = vmul.f32 %v3898_v27, %v2513_v18 }
0x133d   :  { %v2573_v9 = vmul.f32 %v2571_v58, %v2552_v12 }
0x133e   :  { %v2574_v29 = vmul.f32 %v2572_v28, %v2554_v53 }
0x133f   :  { %v2575_v31 = vpack.c.bf16 %v2573_v9, %v2573_v9 }
0x1340   :  { %v2576_v30 = vpack.c.bf16 %v2574_v29, %v2574_v29 }
0x1342   :  { %2738 = vmatprep.mubr.bf16.mxu1 %v2576_v30 }
0x1343   :  { %2739 = vmatmul.mubr.bf16.vlgmr.msra.gmra.mrb[60].mxu1 %v2575_v31 }
0x1416   :  { %v3413_v39 = vpop.f32.mrb[60].mxu1 }
0x1417   :  { %v3414_v40 = vpop.f32.mrb[61].mxu1 }
0x1418   :  { %v3415_v41 = vadd.f32 %v3414_v40, %v3413_v39  ;;  %v3416_v42 = vpop.f32.mrb[62].mxu1 }
0x1419   :  { %v3417_v13 = vpop.f32.mrb[63].mxu1 }
0x141a   :  { %v2746_v44 = vadd.f32 %v3415_v41, %v4797_v22  ;;  %v3833_v22 = vld [vmem:[%s5009_s9 + $0x44] ss:$8 sps:$4 sm:$0xff]   ;;  %s3960_s9 = smov [#allocation3]  }
0x141b   :  { %2862 = vmatprep.subr.bf16.mxu0 %v3833_v22  ;;  %s2954_s4 = sshll.u32 %s3960_s9, 4  ;;  %s2955_s4 = int_to_ptr.vmem [resolvable:$true] %s2954_s4 }
0x141c   :  { %v2747_v45 = vmul.f32 %v2746_v44, %v2746_v44  ;;  %2863 = vmatpush1.bf16.msra.mxu0 %v3831_v49  ;;  %s3902_s0 = scalar_lea.vmem %s2955_s4, 32  ;;  %p3907_p1 = scmp.lt.s32.totalorder %s2955_s4, %s2955_s4 }
0x141d   :  { %2864 = vmatprep.subr.bf16.mxu0 %v3836_v50  ;;  %p3903_p0 = scmp.ne.s32.totalorder %s2955_s4, %s3902_s0  ;;  %p3908_p2 = scmp.lt.s32.totalorder %s3902_s0, %s3902_s0 }
0x141e   :  { %v2748_v46 = vsel %vm88_vm0, %v2747_v45, 0.0 }
0x141f   :  { %2749 = vadd.xlane.f32.xlu1 %v2748_v46  ;;  %p3909_p3 = por %p3908_p2, %p3907_p1 }
0x1420   :  { %2865 = vmatpush1.bf16.msra.mxu0 %v3834_v51 }
0x1421   :  { %2866 = vmatprep.subr.bf16.mxu0 %v3839_v52  ;;  %p3910_p4 = pnand %p3909_p3, %p3903_p0 }
0x1424   :  { %2867 = vmatpush1.bf16.msra.mxu0 %v3837_v56 }
0x1425   :  { %2868 = vmatprep.subr.bf16.mxu0 %v3842_v57 }
0x1428   :  { %2869 = vmatpush1.bf16.msra.mxu0 %v3840_v59 }
0x14ac   :  { %v2750_v60 = vpop.xlane.xlu1 %2749 }
0x14ad   :  { %v2751_v61 = vmul.f32 0.0078125, %v2750_v60 }
0x14af   :  { %v2752_v62 = vadd.f32 1e-06, %v2751_v61 }
0x14b1   :  { %3899 = vrsqrt.f32 %v2752_v62 }
0x14bb   :  { %v3900_v25 = vpop.eup %3899 }
0x14bc   :  { %v2754_v1 = vmul.f32 %v3900_v25, %v2746_v44 }
0x14be   :  { %v2756_v3 = vmul.f32 %v2755_v63, %v2754_v1 }
0x14c0   :  { %v2757_v2 = vpack.c.bf16 %v2756_v3, %v2756_v3 }
0x14c2   :  { %2887 = vmatmul.mubr.bf16.vlgmr.msra.gmra.mrb[48].mxu0 %v2757_v2 }
0x1595   :  { %v2888_v20 = vpop.f32.mrb[48].mxu0 }
0x1596   :  { %v2890_v8 = vpop.f32.mrb[49].mxu0  ;;  %v2918_v10 = vsel %vm88_vm0, %v2888_v20, -inf }
0x1597   :  { %v2897_v11 = vcombine.low %v2888_v20, %v2890_v8  ;;  %v2892_v12 = vpop.f32.mrb[50].mxu0  ;;  %v2919_v16 = vsel %vm88_vm0, %v2890_v8, -inf }
0x1598   :  { %v2893_v18 = vpop.f32.mrb[51].mxu0  ;;  %v2920_v53 = vmax.f32 %v2918_v10, %v2919_v16 }
0x1599   :  { %v2904_v54 = vrot.slane %v2897_v11, %v2903_v7 }
0x159a   :  { %2921 = vmax.xlane.f32.xlu0 %v2920_v53 }
0x159b   :  { %v2911_v55 = vrot.slane %v2904_v54, %v2903_v7 }
0x159d   :  { %2917 = vst.msk [vmem:[#allocation3] sm:$0x3] %vm2915_vm10, %v2911_v55 }
0x1627   :  { %v2922_v35 = vpop.xlane.xlu0 %2921 }
0x1628   :  { %vm2924_vm11 = vcmp.eq.f32.partialorder %v2888_v20, %v2922_v35  ;;  %vm2925_vm12 = vcmp.eq.f32.partialorder %v2890_v8, %v2922_v35 }
0x1629   :  { %v2926_v15 = vsel %vm2924_vm11, %v4254_v17, 256  ;;  %v2927_v19 = vsel %vm2925_vm12, %v2923_v43, 256 }
0x162a   :  { %v2928_v21 = vsel %vm88_vm0, %v2926_v15, 2147483647  ;;  %v2929_v0 = vsel %vm88_vm0, %v2927_v19, 2147483647 }
0x162b   :  { %vm2930_vm13 = vcmp.lt.s32.totalorder %v2928_v21, %v2929_v0 }
0x162c   :  { %v2931_v23 = vsel %vm2930_vm13, %v2928_v21, %v2929_v0 }
0x162d   :  { %v2933_v24 = vshra.s32 %v2931_v23, 16  ;;  %v2932_v14 = vand.u32 65535, %v2931_v23 }
0x162f   :  { %v2935_v26 = vcvt.s32.f32 %v2933_v24  ;;  %v2934_v58 = vcvt.s32.f32 %v2932_v14 }
0x1631   :  { %2936 = vmin.xlane.f32.xlu0 %v2935_v26 }
0x16be   :  { %v2937_v27 = vpop.xlane.xlu0 %2936 }
0x16bf   :  { %vm2938_vm14 = vcmp.eq.f32.partialorder %v2935_v26, %v2937_v27 }
0x16c0   :  { %v2939_v28 = vsel %vm2938_vm14, %v2934_v58, inf }
0x16c1   :  { %2940 = vmin.xlane.f32.xlu1 %v2939_v28 }
0x16c2   :  { %3913 = shalt.err (!%p3910_p4)
}
0x16c3   :  { %s3914_s27 = scalar_lea.hbm %s5015_s15, 32 }
0x16c4   :  { %p3915_p5 = scmp.ne.s32.totalorder %s5015_s15, %s3914_s27  ;;  %p3918_p6 = scmp.lt.u32.totalorder %s3914_s27, %s5015_s15 }
0x16c6   :  { %p3920_p7 = pnand %p3918_p6, %p3915_p5 }
0x16c8   :  { %3923 = shalt.err (!%p3920_p7)
}
0x16c9   :  { %2957 = dma.vmem_to_hbm [thread:$0]  %s2955_s4, 32, %s5015_s15, [#allocation4]   ;;  %v2943_v17 = vcvt.f32.s32 %v2937_v27  ;;  %vm2946_vm15 = vcmask 0  }
0x16ca   :  { %s3961_s23 = smov [#allocation5]  }
0x16cb   :  { %s2964_s11 = sshll.u32 %s3961_s23, 4  ;;  %v2944_v29 = vshll.u32 %v2943_v17, 16  ;;  %s2965_s11 = int_to_ptr.vmem [resolvable:$true] %s2964_s11 }
0x16cc   :  { %s3924_s12 = scalar_lea.vmem %s2965_s11, 16  ;;  %s3928_s19 = scalar_lea.vmem %s2965_s11, 32 }
0x16cd   :  { %p3925_p8 = scmp.ne.s32.totalorder %s2965_s11, %s3924_s12  ;;  %p3929_p9 = scmp.lt.s32.totalorder %s2965_s11, %s2965_s11 }
0x16ce   :  { %p3930_p10 = scmp.lt.s32.totalorder %s3928_s19, %s3924_s12 }
0x16d0   :  { %p3931_p11 = por %p3930_p10, %p3929_p9 }
0x16d2   :  { %p3932_p12 = pnand %p3931_p11, %p3925_p8 }
0x174e   :  { %v2941_v9 = vpop.xlane.xlu1 %2940 }
0x174f   :  { %v2942_v30 = vcvt.f32.s32 %v2941_v9 }
0x1751   :  { %v2945_v31 = vadd.s32 %v2944_v29, %v2942_v30 }
0x1753   :  { %2947 = vst.msk [vmem:[#allocation5] sm:$0x1] %vm2946_vm15, %v2945_v31 }
0x1754   :  { %3935 = shalt.err (!%p3932_p12)
}
0x1755   :  { %s3936_s6 = scalar_lea.hbm %s5016_s16, 16 }
0x1756   :  { %p3937_p13 = scmp.ne.s32.totalorder %s5016_s16, %s3936_s6  ;;  %p3940_p0 = scmp.lt.u32.totalorder %s3936_s6, %s5016_s16 }
0x1758   :  { %p3942_p1 = pnand %p3940_p0, %p3937_p13 }
0x175a   :  { %3945 = shalt.err (!%p3942_p1)
}
0x175b   :  { %2967 = dma.vmem_to_hbm [thread:$0]  %s2965_s11, 16, %s5016_s16, [#allocation6]  }
0x175c   :  { %3946 = dma.done.wait [#allocation4], 32  }
0x175d   :  { %3947 = vsyncadd [#allocation4], 4294967264 }
0x175e   :  { %3948 = dma.done.wait [#allocation6], 16  }
0x175f   :  { %3949 = vsyncadd [#allocation6], 4294967280 }
0x1760   :  { %2982 = vsyncpa [#allocation4], 1 }
0x1761   :  { %2983 = vsyncpa [#allocation6], 1 }

// kernel: combined_forward.2
= control target key start
LH: loop header
LB: loop body
LE: loop exit
PB: predicated region body
PF: predicated region fallthrough
CT: control target
= control target key end

     0   :  { %s5125_s0 = inlined_call_operand.vmem [shape: s32[1,8], index: 0, kind: input, shape index: {}]   ;;  %s5126_s1 = inlined_call_operand.vmem [shape: f32[256,128], index: 1, kind: input, shape index: {}]   ;;  %s5127_s2 = inlined_call_operand.vmem [shape: f32[2,1,128], index: 2, kind: input, shape index: {}, may-alias: {2,5}]   ;;  %s5128_s3 = inlined_call_operand.vmem [shape: bf16[2,128,384], index: 3, kind: input, shape index: {}]   ;;  %s5129_s4 = inlined_call_operand.vmem [shape: bf16[2,128,128], index: 4, kind: input, shape index: {}]   ;;  %s5130_s5 = inlined_call_operand.vmem [shape: f32[2,1,128], index: 5, kind: input, shape index: {}, may-alias: {2,5}]   ;;  %s5131_s6 = inlined_call_operand.vmem [shape: bf16[2,128,512], index: 6, kind: input, shape index: {}]   ;;  %s5132_s7 = inlined_call_operand.vmem [shape: bf16[2,256,128], index: 7, kind: input, shape index: {}]   ;;  %s5133_s8 = inlined_call_operand.vmem [shape: f32[1,128], index: 8, kind: input, shape index: {}]   ;;  %s5134_s9 = inlined_call_operand.vmem [shape: bf16[128,256], index: 9, kind: input, shape index: {}]   ;;  %s5135_s10 = inlined_call_operand.vmem [shape: f32[8,128], index: 10, kind: input, shape index: {}]   ;;  %s5136_s11 = inlined_call_operand.vmem [shape: f32[8,128], index: 11, kind: input, shape index: {}]   ;;  %s5137_s12 = inlined_call_operand.vmem [shape: f32[8,128], index: 12, kind: input, shape index: {}]   ;;  %s5138_s13 = inlined_call_operand.vmem [shape: bf16[2,16,128], index: 13, kind: input, shape index: {}, may-alias: {13,17}]   ;;  %s5139_s14 = inlined_call_operand.vmem [shape: bf16[2,16,128], index: 14, kind: input, shape index: {}, may-alias: {14,18}]   ;;  %s5140_s15 = inlined_call_operand.hbm [shape: f32[1,256], index: 15, kind: output, shape index: {0}]   ;;  %s5141_s16 = inlined_call_operand.hbm [shape: s32[1,1], index: 16, kind: output, shape index: {1}]   ;;  %s5142_s17 = inlined_call_operand.vmem [shape: bf16[2,16,128], index: 17, kind: output, shape index: {2}, may-alias: {13,17}]   ;;  %s5143_s18 = inlined_call_operand.vmem [shape: bf16[2,16,128], index: 18, kind: output, shape index: {3}, may-alias: {14,18}]  }
   0x1   :  { %5150 = sst [smem:[#allocation11_spill]] %s5125_s0 }
   0x2   :  { %5151 = sst [smem:[#allocation12_spill]] %s5126_s1 }
   0x3   :  { %5152 = sst [smem:[#allocation13_spill]] %s5127_s2 }
   0x4   :  { %5153 = sst [smem:[#allocation14_spill]] %s5132_s7 }
   0x5   :  { %5154 = sst [smem:[#allocation15_spill]] %s5133_s8 }
   0x6   :  { %5155 = sst [smem:[#allocation16_spill]] %s5134_s9 }
   0x7   :  { %5156 = sst [smem:[#allocation17_spill]] %s5140_s15 }
   0x8   :  { %5157 = sst [smem:[#allocation18_spill]] %s5141_s16 }
   0x9   :  { %24 = vsyncpa [#allocation4], 0 }
   0xa   :  { %25 = vsyncpa [#allocation3], 0 }
   0xb   :  { %26 = vsyncpa [#allocation7], 0  ;;  %s5158_s29 = sld [smem:[#allocation11_spill]] }
  0x11   :  { %s33_s30 = sshll.u32 %s5158_s29, 4  ;;  %s34_s30 = int_to_ptr.vmem [resolvable:$true] %s33_s30 }
  0x12   :  { %s4006_s0 = scalar_lea.vmem %s34_s30, 16  ;;  %p4011_p1 = scmp.lt.s32.totalorder %s34_s30, %s34_s30 }
  0x13   :  { %p4007_p0 = scmp.ne.s32.totalorder %s34_s30, %s4006_s0  ;;  %p4012_p2 = scmp.lt.s32.totalorder %s4006_s0, %s4006_s0 }
  0x15   :  { %p4013_p3 = por %p4012_p2, %p4011_p1 }
  0x17   :  { %p4014_p4 = pnand %p4013_p3, %p4007_p0 }
  0x19   :  { %4017 = shalt.err (!%p4014_p4)
}
  0x1a   :  { %s4068_s19 = smov [#allocation2]  }
  0x1b   :  { %36 = dma.vmem_to_smem %s34_s30, 16, %s4068_s19, [#allocation4]  }
  0x1c   :  { %4062 = dma.done.wait [#allocation4], 16  }
  0x1d   :  { %4063 = vsyncadd [#allocation4], 4294967280 }
  0x1e   :  { %68 = sfence }
  0x1f   :  { %s70_s1 = sld [smem:[#allocation2]]  ;;  %s3079_s20 = sld [smem:[#allocation2 + $0x1]]  ;;  %vm115_vm0 = vcmask 1040384   ;;  %vm117_vm1 = vcmask 1041408   ;;  %vm119_vm2 = vcmask 1042432   ;;  %vm121_vm3 = vcmask 1043456  }
  0x20   :  { %s3080_s21 = sld [smem:[#allocation2 + $0x2]]  ;;  %s3081_s22 = sld [smem:[#allocation2 + $0x3]]  ;;  %v3712_v0 = vld [vmem:[%s5128_s3 + $0x4] ss:$12 sps:$4 sm:$0xff]   ;;  %v3714_v1 = vld [vmem:[%s5128_s3] ss:$12 sps:$4 sm:$0xff]  }
  0x21   :  { %s4179_s2 = sld [smem:[#allocation2 + $0x4]]  ;;  %s4181_s23 = sld [smem:[#allocation2 + $0x5]]  ;;  %v4069_v2 = vmov 0.0   ;;  %v3715_v3 = vld [vmem:[%s5128_s3 + $0x8] ss:$12 sps:$4 sm:$0xff]   ;;  %vm123_vm4 = vcmask 1044480   ;;  %331 = vmatprep.subr.bf16.mxu0 %v3712_v0 }
  0x22   :  { %s4183_s24 = sld [smem:[#allocation2 + $0x6]]  ;;  %s4185_s25 = sld [smem:[#allocation2 + $0x7]]  ;;  %3523 = vmatprep.subr.bf16.mxu1 %v4069_v2  ;;  %vm125_vm5 = vcmask 1045504   ;;  %v3716_v4 = vld [vmem:[%s5128_s3 + $0x1c] ss:$12 sps:$4 sm:$0xff]   ;;  %332 = vmatpush1.bf16.msra.mxu0 %v3714_v1  ;;  %vm127_vm6 = vcmask 1046528  }
  0x23   :  { %s5159_s15 = sld [smem:[#allocation12_spill]]  ;;  %3524 = vmatpush3.bf16.msra.mxu1 %v3715_v3  ;;  %v3718_v7 = vld [vmem:[%s5128_s3 + $0x18] ss:$12 sps:$4 sm:$0xff]   ;;  %333 = vmatprep.subr.bf16.mxu0 %v3716_v4  ;;  %v3719_v24 = vld [vmem:[%s5128_s3 + $0x20] ss:$12 sps:$4 sm:$0xff]   ;;  %v4070_v45 = vmov 0  }
  0x24   :  { %3525 = vmatprep.subr.bf16.mxu1 %v4069_v2  ;;  %v3720_v25 = vld [vmem:[%s5128_s3 + $0x34] ss:$12 sps:$4 sm:$0xff]   ;;  %v3722_v27 = vld [vmem:[%s5128_s3 + $0x30] ss:$12 sps:$4 sm:$0xff]   ;;  %v3723_v29 = vld [vmem:[%s5128_s3 + $0x38] ss:$12 sps:$4 sm:$0xff]   ;;  %363 = vmatprep.mubr.bf16.mxu0 %v4070_v45 }
  0x25   :  { %v3724_v33 = vld [vmem:[%s5128_s3 + $0x4c] ss:$12 sps:$4 sm:$0xff]   ;;  %v3726_v34 = vld [vmem:[%s5128_s3 + $0x48] ss:$12 sps:$4 sm:$0xff]   ;;  %v3727_v35 = vld [vmem:[%s5128_s3 + $0x50] ss:$12 sps:$4 sm:$0xff]  }
  0x26   :  { %334 = vmatpush1.bf16.msra.mxu0 %v3718_v7  ;;  %v3728_v36 = vld [vmem:[%s5128_s3 + $0x64] ss:$12 sps:$4 sm:$0xff]   ;;  %v3730_v37 = vld [vmem:[%s5128_s3 + $0x60] ss:$12 sps:$4 sm:$0xff]   ;;  %v3731_v38 = vld [vmem:[%s5128_s3 + $0x68] ss:$12 sps:$4 sm:$0xff]  }
  0x27   :  { %3526 = vmatpush3.bf16.msra.mxu1 %v3719_v24  ;;  %335 = vmatprep.subr.bf16.mxu0 %v3720_v25  ;;  %v3732_v39 = vld [vmem:[%s5128_s3 + $0x7c] ss:$12 sps:$4 sm:$0xff]   ;;  %v3734_v40 = vld [vmem:[%s5128_s3 + $0x78] ss:$12 sps:$4 sm:$0xff]   ;;  %v3735_v41 = vld [vmem:[%s5128_s3 + $0x80] ss:$12 sps:$4 sm:$0xff]  }
  0x28   :  { %3527 = vmatprep.subr.bf16.mxu1 %v4069_v2  ;;  %v3736_v42 = vld [vmem:[%s5128_s3 + $0x94] ss:$12 sps:$4 sm:$0xff]   ;;  %v3738_v43 = vld [vmem:[%s5128_s3 + $0x90] ss:$12 sps:$4 sm:$0xff]   ;;  %v3739_v44 = vld [vmem:[%s5128_s3 + $0x98] ss:$12 sps:$4 sm:$0xff]  }
  0x29   :  { %s71_s8 = scalar_lea.vmem %s5159_s15, %s70_s1  ;;  %s74_s26 = scalar_lea.vmem %s5159_s15, %s3079_s20  ;;  %vm4071_vm7 = vmmov 0   ;;  %v3740_v46 = vld [vmem:[%s5128_s3 + $0xac] ss:$12 sps:$4 sm:$0xff]   ;;  %v3742_v47 = vld [vmem:[%s5128_s3 + $0xa8] ss:$12 sps:$4 sm:$0xff]   ;;  %v4352_v7 = vld [vmem:[%s5135_s10] sm:$0xff] }
  0x2a   :  { %v72_v5 = vld [vmem:[%s71_s8] sm:$0x1]  ;;  %s77_s16 = scalar_lea.vmem %s5159_s15, %s3080_s21  ;;  %s80_s7 = scalar_lea.vmem %s5159_s15, %s3081_s22  ;;  %336 = vmatpush1.bf16.msra.mxu0 %v3722_v27  ;;  %3539 = vmatprep.mubr.msk.bf16.mxu1 %vm4071_vm7, %v4069_v2  ;;  %v3743_v48 = vld [vmem:[%s5128_s3 + $0xb0] ss:$12 sps:$4 sm:$0xff]   ;;  %vm444_vm8 = vcmask 261120   ;;  %vm493_vm10 = vcmask 130048  }
  0x2b   :  { %v75_v6 = vld [vmem:[%s74_s26] sm:$0x1]  ;;  %s83_s26 = scalar_lea.vmem %s5159_s15, %s4179_s2  ;;  %s86_s21 = scalar_lea.vmem %s5159_s15, %s4181_s23  ;;  %3528 = vmatpush3.bf16.msra.mxu1 %v3723_v29  ;;  %337 = vmatprep.subr.bf16.mxu0 %v3724_v33  ;;  %v148_v29 = vlaneseq  ;;  %vm899_vm11 = vcmask 523264   ;;  %vm901_vm12 = vcmask 785408   ;;  %vm2822_vm13 = vcmask 1047559  }
  0x2c   :  { %v78_v8 = vld [vmem:[%s77_s16] sm:$0x1]  ;;  %v95_v10 = vrot.slane %v75_v6, 7  ;;  %s89_s30 = scalar_lea.vmem %s5159_s15, %s4183_s24  ;;  %s92_s0 = scalar_lea.vmem %s5159_s15, %s4185_s25  ;;  %3529 = vmatprep.subr.bf16.mxu1 %v4069_v2 }
  0x2d   :  { %v81_v9 = vld [vmem:[%s80_s7] sm:$0x1]  ;;  %v98_v13 = vrot.slane %v78_v8, 6  ;;  %s5160_s2 = sld [smem:[#allocation13_spill]]  ;;  %s4072_s16 = smov 16   ;;  %vm3001_vm14 = vcmp.lt.s32.totalorder %v148_v29, 256 }
  0x2e   :  { %v84_v11 = vld [vmem:[%s83_s26] sm:$0x1]  ;;  %v101_v14 = vrot.slane %v81_v9, 5  ;;  %v116_v19 = vsel %vm115_vm0, %v72_v5, %v95_v10  ;;  %338 = vmatpush1.bf16.msra.mxu0 %v3726_v34  ;;  %s4073_s1 = smov 112   ;;  %v4074_v34 = vmov -1e+30  }
  0x2f   :  { %v87_v12 = vld [vmem:[%s86_s21] sm:$0x1]  ;;  %v104_v17 = vrot.slane %v84_v11, 4  ;;  %v118_v21 = vsel %vm117_vm1, %v116_v19, %v98_v13  ;;  %3530 = vmatpush3.bf16.msra.mxu1 %v3727_v35  ;;  %339 = vmatprep.subr.bf16.mxu0 %v3728_v36  ;;  %s4075_s27 = smov 96   ;;  %s4076_s28 = smov 64  }
  0x30   :  { %v90_v15 = vld [vmem:[%s89_s30] sm:$0x1]  ;;  %v107_v18 = vrot.slane %v87_v12, 3  ;;  %v120_v23 = vsel %vm119_vm2, %v118_v21, %v101_v14  ;;  %3531 = vmatprep.subr.bf16.mxu1 %v4069_v2  ;;  %s4077_s21 = smov 32   ;;  %s5161_s26 = sld [smem:[#allocation14_spill]] }
  0x31   :  { %v93_v16 = vld [vmem:[%s92_s0] sm:$0x1]  ;;  %v110_v20 = vrot.slane %v90_v15, 2  ;;  %v122_v26 = vsel %vm121_vm3, %v120_v23, %v104_v17  ;;  %s5163_s29 = sld [smem:[#allocation15_spill]] }
  0x32   :  { %v113_v22 = vrot.slane %v93_v16, 1  ;;  %v124_v28 = vsel %vm123_vm4, %v122_v26, %v107_v18  ;;  %340 = vmatpush1.bf16.msra.mxu0 %v3730_v37  ;;  %v137_v57 = vld [vmem:[%s5139_s14] sm:$0xf] }
  0x33   :  { %v126_v30 = vsel %vm125_vm5, %v124_v28, %v110_v20  ;;  %3532 = vmatpush3.bf16.msra.mxu1 %v3731_v38  ;;  %341 = vmatprep.subr.bf16.mxu0 %v3732_v39  ;;  %v3086_v53 = vld [vmem:[%s5160_s2] ss:$0 sm:$0xff]  ;;  %141 = vst [vmem:[%s5143_s18] sm:$0xf] %v137_v57 }
  0x34   :  { %v4251_v31 = vsel %vm127_vm6, %v126_v30, %v113_v22  ;;  %3533 = vmatprep.subr.bf16.mxu1 %v4069_v2  ;;  %v129_v59 = vld [vmem:[%s5138_s13] sm:$0xf]  ;;  %v4389_v30 = vshrl.u32 %v148_v29, 7 }
  0x35   :  { %v154_v32 = vmul.f32 %v4251_v31, %v4251_v31  ;;  %133 = vst [vmem:[%s5142_s17] sm:$0xf] %v129_v59  ;;  %v4357_v8 = vld [vmem:[%s5136_s11] sm:$0xff] }
  0x36   :  { %342 = vmatpush1.bf16.msra.mxu0 %v3734_v40  ;;  %v4362_v9 = vld [vmem:[%s5137_s12] sm:$0xff] }
  0x37   :  { %155 = vadd.xlane.f32.xlu0 %v154_v32  ;;  %3534 = vmatpush3.bf16.msra.mxu1 %v3735_v41  ;;  %v4392_v32 = vand.u32 127, %v148_v29 }
  0x38   :  { %343 = vmatprep.subr.bf16.mxu0 %v3736_v42  ;;  %3535 = vmatprep.subr.bf16.mxu1 %v4069_v2 }
  0x39   :  { %vm152_vm9 = vcmp.le.s32.totalorder %v4392_v32, %v4389_v30 }
  0x3a   :  { %344 = vmatpush1.bf16.msra.mxu0 %v3738_v43  ;;  %v138_v58 = vld [vmem:[%s5139_s14 + $0x4] sm:$0xf]  ;;  %v4396_v35 = vsel %vm152_vm9, 0.0, %v4074_v34 }
  0x3b   :  { %3536 = vmatpush3.bf16.msra.mxu1 %v3739_v44  ;;  %345 = vmatprep.subr.bf16.mxu0 %v3740_v46  ;;  %142 = vst [vmem:[%s5143_s18 + $0x4] sm:$0xf] %v138_v58 }
  0x3c   :  { %3537 = vmatprep.subr.bf16.mxu1 %v4069_v2  ;;  %v130_v60 = vld [vmem:[%s5138_s13 + $0x4] sm:$0xf] }
  0x3d   :  { %134 = vst [vmem:[%s5142_s17 + $0x4] sm:$0xf] %v130_v60 }
  0x3e   :  { %346 = vmatpush1.bf16.msra.mxu0 %v3742_v47 }
  0x3f   :  { %3538 = vmatpush3.bf16.msra.mxu1 %v3743_v48  ;;  %3567 = vmatprep.subr.bf16.mxu0 %v4069_v2 }
  0x40   :  { %3543 = vmatprep.subr.bf16.mxu1 %v4069_v2 }
  0xc4   :  { %v156_v49 = vpop.xlane.xlu0 %155 }
  0xc5   :  { %v158_v50 = vmul.f32 0.0078125, %v156_v49 }
  0xc7   :  { %v159_v51 = vadd.f32 1e-06, %v158_v50 }
  0xc9   :  { %3948 = vrsqrt.f32 %v159_v51 }
  0xd3   :  { %v3949_v52 = vpop.eup %3948 }
  0xd4   :  { %v161_v54 = vmul.f32 %v3949_v52, %v4251_v31 }
  0xd6   :  { %v169_v55 = vmul.f32 %v3086_v53, %v161_v54 }
  0xd8   :  { %v170_v56 = vpack.c.bf16 %v169_v55, %v169_v55 }
  0xda   :  { %364 = vmatmul.mubr.bf16.vlgmr.msra.gmra.mrb[0].mxu0 %v170_v56  ;;  %3540 = vmatmul.mubr.bf16.vlgmr.msra.gmra.mrb[0].mxu1 %v170_v56 }
  0xdb   :  { %3545 = vmatprep.mubr.msk.bf16.mxu1 %vm4071_vm7, %v4069_v2  ;;  %3569 = vmatprep.mubr.msk.bf16.mxu0 %vm4071_vm7, %v4069_v2 }
 0x1ad   :  { %v365_v61 = vpop.f32.mrb[0].mxu0  ;;  %v406_v62 = vpop.f32.mrb[0].mxu1 }
 0x1ae   :  { %v432_v63 = vpack.c.bf16 %v406_v62, %v406_v62  ;;  %v367_v0 = vpop.f32.mrb[1].mxu0  ;;  %v3541_v1 = vpop.f32.mrb[1].mxu1  ;;  %v412_v21 = vmul.f32 %v365_v61, %v4352_v7 }
 0x1af   :  { %v409_v3 = vpop.f32.mrb[2].mxu1  ;;  %426 = vrot.lane.b32.xlu1 %v367_v0, %s4072_s16  ;;  %422 = vrot.lane.b32.xlu0 %v367_v0, %s4073_s1  ;;  %v369_v4 = vpop.f32.mrb[2].mxu0  ;;  %v421_v12 = vmul.f32 %v367_v0, %v4352_v7 }
 0x1b0   :  { %433 = vst [vmem:[%s5143_s18] sm:$0xf] %v432_v63  ;;  %v370_v5 = vpop.f32.mrb[3].mxu0  ;;  %v3542_v6 = vpop.f32.mrb[3].mxu1 }
 0x1b3   :  { %413 = vrot.lane.b32.xlu1 %v365_v61, %s4073_s1 }
 0x1b7   :  { %417 = vrot.lane.b32.xlu1 %v365_v61, %s4072_s16  ;;  %v4381_v28 = vld [vmem:[%s5143_s18] sm:$0xff]  }
 0x221   :  { %v427_v10 = vpop.permute.xlu1 %426  ;;  %v423_v11 = vpop.permute.xlu0 %422 }
 0x222   :  { %v424_v13 = vmul.f32 %v423_v11, %v4357_v8  ;;  %v428_v14 = vmul.f32 %v427_v10, %v4362_v9 }
 0x224   :  { %v425_v15 = vadd.f32 %v424_v13, %v421_v12 }
 0x225   :  { %v414_v18 = vpop.permute.xlu1 %413 }
 0x226   :  { %v429_v16 = vadd.f32 %v428_v14, %v425_v15  ;;  %v415_v20 = vmul.f32 %v414_v18, %v4357_v8 }
 0x228   :  { %v430_v17 = vpack.c.bf16 %v429_v16, %v429_v16  ;;  %v416_v24 = vadd.f32 %v415_v20, %v412_v21 }
 0x229   :  { %v418_v19 = vpop.permute.xlu1 %417 }
 0x22a   :  { %431 = vst [vmem:[%s5142_s17] sm:$0xf] %v430_v17  ;;  %v419_v22 = vmul.f32 %v418_v19, %v4362_v9 }
 0x22c   :  { %v420_v26 = vadd.f32 %v419_v22, %v416_v24 }
 0x22e   :  { %v438_v27 = vpack.c.bf16 %v420_v26, %v420_v26 }
 0x231   :  { %v3744_v23 = vld [vmem:[%s5142_s17] sm:$0xff]  }
 0x232   :  { %v449_v25 = vsel %vm444_vm8, %v3744_v23, 0 }
 0x233   :  { %3544 = vmatpush3.bf16.xpose.msra.mxu1 %v449_v25 }
 0x234   :  { %3549 = vmatprep.subr.bf16.mxu1 %v4069_v2 }
 0x23a   :  { %3546 = vmatmul.mubr.msk.bf16.vlgmr.msra.gmra.mrb[4].mxu1 %vm444_vm8, %v438_v27 }
 0x23b   :  { %3550 = vmatpush3.bf16.msra.mxu1 %v4381_v28  ;;  %3551 = vmatprep.mubr.msk.bf16.mxu1 %vm4071_vm7, %v4069_v2 }
 0x23c   :  { %3555 = vmatprep.subr.bf16.mxu1 %v4069_v2 }
 0x30d   :  { %v485_v33 = vpop.f32.mrb[4].mxu1 }
 0x30e   :  { %v491_v36 = vmul.f32 0.17677669, %v485_v33  ;;  %v3547_v37 = vpop.f32.mrb[5].mxu1 }
 0x30f   :  { %v488_v38 = vpop.f32.mrb[6].mxu1 }
 0x310   :  { %v3548_v39 = vpop.f32.mrb[7].mxu1  ;;  %v492_v40 = vadd.f32 %v491_v36, %v4396_v35 }
 0x312   :  { %v494_v41 = vsel %vm493_vm10, %v492_v40, -inf }
 0x313   :  { %495 = vmax.xlane.f32.xlu1 %v494_v41 }
 0x324   :  { %558 = vrot.lane.b32.xlu1 %v3744_v23, %s4075_s27 }
 0x328   :  { %668 = vrot.lane.b32.xlu1 %v3744_v23, %s4076_s28 }
 0x32c   :  { %666 = vrot.lane.b32.xlu1 %v438_v27, %s4076_s28 }
 0x330   :  { %778 = vrot.lane.b32.xlu1 %v3744_v23, %s4077_s21 }
 0x334   :  { %776 = vrot.lane.b32.xlu1 %v438_v27, %s4077_s21 }
 0x3a0   :  { %v496_v42 = vpop.xlane.xlu1 %495 }
 0x3a1   :  { %v497_v43 = vsub.f32 %v492_v40, %v496_v42 }
 0x3a3   :  { %v498_v44 = vmul.f32 1.442695, %v497_v43 }
 0x3a4   :  { %v559_v46 = vpop.permute.xlu1 %558 }
 0x3a5   :  { %3950 = vpow2.f32 %v498_v44  ;;  %v564_v59 = vsel %vm444_vm8, %v559_v46, 0 }
 0x3a8   :  { %v669_v47 = vpop.permute.xlu1 %668 }
 0x3a9   :  { %v674_v48 = vsel %vm444_vm8, %v669_v47, 0 }
 0x3aa   :  { %3568 = vmatpush3.bf16.xpose.msra.mxu0 %v674_v48 }
 0x3ab   :  { %3579 = vmatprep.subr.bf16.mxu0 %v4069_v2 }
 0x3ac   :  { %v667_v49 = vpop.permute.xlu1 %666 }
 0x3af   :  { %v3951_v50 = vpop.eup %3950 }
 0x3b0   :  { %v779_v51 = vpop.permute.xlu1 %778  ;;  %v500_v52 = vsel %vm493_vm10, %v3951_v50, 0.0 }
 0x3b1   :  { %v784_v53 = vsel %vm444_vm8, %v779_v51, 0  ;;  %501 = vadd.xlane.f32.xlu0 %v500_v52  ;;  %3570 = vmatmul.mubr.msk.bf16.vlgmr.msra.gmra.mrb[4].mxu0 %vm444_vm8, %v667_v49 }
 0x3b2   :  { %3580 = vmatpush3.bf16.xpose.msra.mxu0 %v784_v53  ;;  %3581 = vmatprep.mubr.msk.bf16.mxu0 %vm4071_vm7, %v4069_v2 }
 0x3b3   :  { %3591 = vmatprep.subr.bf16.mxu0 %v4069_v2 }
 0x3b4   :  { %v777_v54 = vpop.permute.xlu1 %776 }
 0x3b9   :  { %3582 = vmatmul.mubr.msk.bf16.vlgmr.msra.gmra.mrb[8].mxu0 %vm444_vm8, %v777_v54 }
 0x3ba   :  { %3607 = vmatprep.mubr.msk.bf16.mxu0 %vm4071_vm7, %v4069_v2 }
 0x3c7   :  { %556 = vrot.lane.b32.xlu0 %v438_v27, %s4075_s27 }
 0x43e   :  { %v502_v55 = vpop.xlane.xlu0 %501 }
 0x43f   :  { %3952 = vrcp.f32 %v502_v55 }
 0x442   :  { %v557_v60 = vpop.permute.xlu0 %556 }
 0x449   :  { %v3953_v56 = vpop.eup %3952 }
 0x44a   :  { %v504_v57 = vmul.f32 %v3953_v56, %v3951_v50 }
 0x44c   :  { %v505_v58 = vpack.c.bf16 %v504_v57, %v504_v57 }
 0x44e   :  { %3552 = vmatmul.mubr.msk.bf16.vlgmr.msra.gmra.mrb[8].mxu1 %vm493_vm10, %v505_v58 }
 0x44f   :  { %3556 = vmatpush3.bf16.xpose.msra.mxu1 %v564_v59  ;;  %3557 = vmatprep.mubr.msk.bf16.mxu1 %vm4071_vm7, %v4069_v2 }
 0x450   :  { %3561 = vmatprep.subr.bf16.mxu1 %v4069_v2 }
 0x456   :  { %3558 = vmatmul.mubr.msk.bf16.vlgmr.msra.gmra.mrb[12].mxu1 %vm444_vm8, %v557_v60 }
 0x457   :  { %3563 = vmatprep.mubr.msk.bf16.mxu1 %vm4071_vm7, %v4069_v2 }
 0x484   :  { %v710_v61 = vpop.f32.mrb[4].mxu0 }
 0x485   :  { %v716_v62 = vmul.f32 0.17677669, %v710_v61  ;;  %v3571_v63 = vpop.f32.mrb[5].mxu0 }
 0x486   :  { %v713_v0 = vpop.f32.mrb[6].mxu0  ;;  %v3747_v63 = vld [vmem:[%s5129_s4 + $0x8] sm:$0xff]  }
 0x487   :  { %v3572_v1 = vpop.f32.mrb[7].mxu0  ;;  %v717_v3 = vadd.f32 %v716_v62, %v4396_v35  ;;  %v3746_v62 = vld [vmem:[%s5129_s4] sm:$0xff]   ;;  %v3748_v0 = vld [vmem:[%s5129_s4 + $0x10] sm:$0xff]  }
 0x488   :  { %3592 = vmatpush3.bf16.msra.mxu0 %v3746_v62  ;;  %v3749_v1 = vld [vmem:[%s5129_s4 + $0x18] sm:$0xff]   ;;  %v3784_v62 = vld [vmem:[%s5131_s6 + $0xa0] ss:$16 sps:$4 sm:$0xff]  }
 0x489   :  { %v718_v4 = vsel %vm493_vm10, %v717_v3, -inf  ;;  %3593 = vmatprep.subr.bf16.mxu0 %v4069_v2 }
 0x48a   :  { %719 = vmax.xlane.f32.xlu1 %v718_v4  ;;  %v3751_v4 = vld [vmem:[%s5129_s4 + $0x28] sm:$0xff]  }
 0x48c   :  { %v820_v5 = vpop.f32.mrb[8].mxu0  ;;  %3594 = vmatpush3.bf16.msra.mxu0 %v3747_v63  ;;  %v3787_v63 = vld [vmem:[%s5131_s6 + $0xa8] ss:$16 sps:$4 sm:$0xff]  }
 0x48d   :  { %v3583_v6 = vpop.f32.mrb[9].mxu0  ;;  %v826_v22 = vmul.f32 0.17677669, %v820_v5  ;;  %3595 = vmatprep.subr.bf16.mxu0 %v4069_v2  ;;  %v3752_v5 = vld [vmem:[%s5129_s4 + $0x30] sm:$0xff]  }
 0x48e   :  { %v823_v10 = vpop.f32.mrb[10].mxu0 }
 0x48f   :  { %v3584_v11 = vpop.f32.mrb[11].mxu0  ;;  %v827_v34 = vadd.f32 %v826_v22, %v4396_v35 }
 0x490   :  { %3596 = vmatpush3.bf16.msra.mxu0 %v3748_v0  ;;  %v3792_v0 = vld [vmem:[%s5131_s6 + $0xc4] ss:$16 sps:$4 sm:$0xff]  }
 0x491   :  { %v828_v36 = vsel %vm493_vm10, %v827_v34, -inf  ;;  %3597 = vmatprep.subr.bf16.mxu0 %v4069_v2 }
 0x494   :  { %3598 = vmatpush3.bf16.msra.mxu0 %v3749_v1  ;;  %v3795_v1 = vld [vmem:[%s5131_s6 + $0xcc] ss:$16 sps:$4 sm:$0xff]  }
 0x495   :  { %3599 = vmatprep.subr.bf16.mxu0 %v4069_v2 }
 0x517   :  { %v720_v12 = vpop.xlane.xlu1 %719 }
 0x518   :  { %v721_v13 = vsub.f32 %v717_v3, %v720_v12  ;;  %v3750_v3 = vld [vmem:[%s5129_s4 + $0x20] sm:$0xff]  }
 0x519   :  { %3600 = vmatpush3.bf16.msra.mxu0 %v3750_v3  ;;  %v3790_v3 = vld [vmem:[%s5131_s6 + $0xc0] ss:$16 sps:$4 sm:$0xff]  }
 0x51a   :  { %v722_v14 = vmul.f32 1.442695, %v721_v13  ;;  %3601 = vmatprep.subr.bf16.mxu0 %v4069_v2  ;;  %v3753_v13 = vld [vmem:[%s5129_s4 + $0x38] sm:$0xff]  }
 0x51c   :  { %3954 = vpow2.f32 %v722_v14 }
 0x51d   :  { %3602 = vmatpush3.bf16.msra.mxu0 %v3751_v4  ;;  %v3793_v4 = vld [vmem:[%s5131_s6 + $0xc8] ss:$16 sps:$4 sm:$0xff]  }
 0x51e   :  { %3603 = vmatprep.subr.bf16.mxu0 %v4069_v2 }
 0x521   :  { %v4427_v15 = vpop.f32.mrb[8].mxu1  ;;  %3604 = vmatpush3.bf16.msra.mxu0 %v3752_v5  ;;  %v3798_v5 = vld [vmem:[%s5131_s6 + $0xe4] ss:$16 sps:$4 sm:$0xff]  }
 0x522   :  { %v3553_v16 = vpop.f32.mrb[9].mxu1  ;;  %3605 = vmatprep.subr.bf16.mxu0 %v4069_v2 }
 0x523   :  { %v552_v17 = vpop.f32.mrb[10].mxu1 }
 0x524   :  { %v3554_v18 = vpop.f32.mrb[11].mxu1 }
 0x525   :  { %3606 = vmatpush3.bf16.msra.mxu0 %v3753_v13 }
 0x526   :  { %v3955_v19 = vpop.eup %3954 }
 0x527   :  { %v724_v20 = vsel %vm493_vm10, %v3955_v19, 0.0 }
 0x528   :  { %725 = vadd.xlane.f32.xlu1 %v724_v20 }
 0x529   :  { %v600_v21 = vpop.f32.mrb[12].mxu1 }
 0x52a   :  { %v606_v23 = vmul.f32 0.17677669, %v600_v21  ;;  %v3559_v24 = vpop.f32.mrb[13].mxu1 }
 0x52b   :  { %v603_v25 = vpop.f32.mrb[14].mxu1 }
 0x52c   :  { %v3560_v26 = vpop.f32.mrb[15].mxu1  ;;  %v607_v27 = vadd.f32 %v606_v23, %v4396_v35 }
 0x52e   :  { %v608_v33 = vsel %vm493_vm10, %v607_v27, -inf }
 0x52f   :  { %609 = vmax.xlane.f32.xlu0 %v608_v33 }
 0x533   :  { %829 = vmax.xlane.f32.xlu0 %v828_v36  ;;  %v3754_v36 = vld [vmem:[%s5131_s6] ss:$16 sps:$4 sm:$0xff]  }
 0x539   :  { %620 = vrot.lane.b32.xlu1 %v4381_v28, %s4075_s27 }
 0x53d   :  { %840 = vrot.lane.b32.xlu1 %v4381_v28, %s4077_s21 }
 0x5b5   :  { %v726_v37 = vpop.xlane.xlu1 %725 }
 0x5b9   :  { %v621_v38 = vpop.permute.xlu1 %620 }
 0x5ba   :  { %3562 = vmatpush3.bf16.msra.mxu1 %v621_v38  ;;  %v3759_v38 = vld [vmem:[%s5131_s6 + $0xc] ss:$16 sps:$4 sm:$0xff]  }
 0x5bb   :  { %3573 = vmatprep.subr.bf16.mxu1 %v4069_v2  ;;  %1258 = vmatprep.subr.bf16.mxu0 %v3759_v38  ;;  %v3814_v38 = vld [vmem:[%s5161_s26 + $0x70] sm:$0xff]  }
 0x5bc   :  { %v610_v39 = vpop.xlane.xlu0 %609 }
 0x5bd   :  { %v611_v40 = vsub.f32 %v607_v27, %v610_v39  ;;  %v841_v59 = vpop.permute.xlu1 %840  ;;  %v3762_v39 = vld [vmem:[%s5131_s6 + $0x24] ss:$16 sps:$4 sm:$0xff]  }
 0x5bf   :  { %v612_v41 = vmul.f32 1.442695, %v611_v40  ;;  %v3765_v40 = vld [vmem:[%s5131_s6 + $0x2c] ss:$16 sps:$4 sm:$0xff]  }
 0x5c0   :  { %v830_v42 = vpop.xlane.xlu0 %829 }
 0x5c1   :  { %3956 = vpow2.f32 %v612_v41  ;;  %v831_v43 = vsub.f32 %v827_v34, %v830_v42  ;;  %v3760_v41 = vld [vmem:[%s5131_s6 + $0x20] ss:$16 sps:$4 sm:$0xff]   ;;  %v3763_v42 = vld [vmem:[%s5131_s6 + $0x28] ss:$16 sps:$4 sm:$0xff]  }
 0x5c3   :  { %v832_v44 = vmul.f32 1.442695, %v831_v43  ;;  %v3768_v43 = vld [vmem:[%s5131_s6 + $0x44] ss:$16 sps:$4 sm:$0xff]  }
 0x5c5   :  { %3958 = vpow2.f32 %v832_v44  ;;  %v3771_v44 = vld [vmem:[%s5131_s6 + $0x4c] ss:$16 sps:$4 sm:$0xff]  }
 0x5cb   :  { %v3957_v46 = vpop.eup %3956 }
 0x5cc   :  { %v614_v47 = vsel %vm493_vm10, %v3957_v46, 0.0 }
 0x5cd   :  { %615 = vadd.xlane.f32.xlu0 %v614_v47  ;;  %v3769_v47 = vld [vmem:[%s5131_s6 + $0x48] ss:$16 sps:$4 sm:$0xff]  }
 0x5cf   :  { %v3959_v48 = vpop.eup %3958 }
 0x5d0   :  { %v834_v49 = vsel %vm493_vm10, %v3959_v48, 0.0 }
 0x5d1   :  { %835 = vadd.xlane.f32.xlu0 %v834_v49 }
 0x5e7   :  { %730 = vrot.lane.b32.xlu0 %v4381_v28, %s4076_s28 }
 0x65a   :  { %v616_v50 = vpop.xlane.xlu0 %615 }
 0x65b   :  { %3960 = vrcp.f32 %v616_v50 }
 0x65c   :  { %3962 = vrcp.f32 %v726_v37  ;;  %v3756_v37 = vld [vmem:[%s5131_s6 + $0x4] ss:$16 sps:$4 sm:$0xff]  }
 0x65e   :  { %v836_v51 = vpop.xlane.xlu0 %835 }
 0x65f   :  { %3964 = vrcp.f32 %v836_v51 }
 0x662   :  { %v731_v56 = vpop.permute.xlu0 %730 }
 0x665   :  { %v3961_v52 = vpop.eup %3960 }
 0x666   :  { %v618_v53 = vmul.f32 %v3961_v52, %v3957_v46  ;;  %v3963_v55 = vpop.eup %3962  ;;  %v3766_v46 = vld [vmem:[%s5131_s6 + $0x40] ss:$16 sps:$4 sm:$0xff]  }
 0x667   :  { %v728_v57 = vmul.f32 %v3963_v55, %v3955_v19  ;;  %v3777_v55 = vld [vmem:[%s5131_s6 + $0x6c] ss:$16 sps:$4 sm:$0xff]  }
 0x668   :  { %v619_v54 = vpack.c.bf16 %v618_v53, %v618_v53 }
 0x669   :  { %v729_v28 = vpack.c.bf16 %v728_v57, %v728_v57  ;;  %v3965_v58 = vpop.eup %3964  ;;  %v3778_v57 = vld [vmem:[%s5131_s6 + $0x80] ss:$16 sps:$4 sm:$0xff]  }
 0x66a   :  { %3564 = vmatmul.mubr.msk.bf16.vlgmr.msra.gmra.mrb[16].mxu1 %vm493_vm10, %v619_v54  ;;  %v838_v60 = vmul.f32 %v3965_v58, %v3959_v48  ;;  %v3774_v54 = vld [vmem:[%s5131_s6 + $0x64] ss:$16 sps:$4 sm:$0xff]   ;;  %v3781_v58 = vld [vmem:[%s5131_s6 + $0x88] ss:$16 sps:$4 sm:$0xff]  }
 0x66b   :  { %3574 = vmatpush3.bf16.msra.mxu1 %v731_v56  ;;  %3575 = vmatprep.mubr.msk.bf16.mxu1 %vm4071_vm7, %v4069_v2  ;;  %v3775_v56 = vld [vmem:[%s5131_s6 + $0x68] ss:$16 sps:$4 sm:$0xff]  }
 0x66c   :  { %3585 = vmatprep.subr.bf16.mxu1 %v4069_v2  ;;  %v839_v61 = vpack.c.bf16 %v838_v60, %v838_v60  ;;  %v3786_v60 = vld [vmem:[%s5131_s6 + $0xa4] ss:$16 sps:$4 sm:$0xff]  }
 0x672   :  { %3576 = vmatmul.mubr.msk.bf16.vlgmr.msra.gmra.mrb[20].mxu1 %vm493_vm10, %v729_v28  ;;  %v3780_v28 = vld [vmem:[%s5131_s6 + $0x84] ss:$16 sps:$4 sm:$0xff]  }
 0x673   :  { %3586 = vmatpush3.bf16.msra.mxu1 %v841_v59  ;;  %3587 = vmatprep.mubr.msk.bf16.mxu1 %vm4071_vm7, %v4069_v2  ;;  %v3783_v59 = vld [vmem:[%s5131_s6 + $0x8c] ss:$16 sps:$4 sm:$0xff]  }
 0x674   :  { %1217 = vmatprep.subr.bf16.mxu1 %v3756_v37  ;;  %v3812_v37 = vld [vmem:[%s5161_s26 + $0x68] sm:$0xff]  }
 0x67a   :  { %3588 = vmatmul.mubr.msk.bf16.vlgmr.msra.gmra.mrb[24].mxu1 %vm493_vm10, %v839_v61  ;;  %v3789_v61 = vld [vmem:[%s5131_s6 + $0xac] ss:$16 sps:$4 sm:$0xff]  }
 0x67b   :  { %1249 = vmatprep.mubr.bf16.mxu1 %v4070_v45  ;;  %1218 = vmatpush1.bf16.msra.mxu1 %v3754_v36  ;;  %v3811_v36 = vld [vmem:[%s5161_s26 + $0x20] sm:$0xff]  }
 0x67c   :  { %1219 = vmatprep.subr.bf16.mxu1 %v3762_v39  ;;  %v3815_v39 = vld [vmem:[%s5161_s26 + $0x30] sm:$0xff]  }
 0x67f   :  { %1220 = vmatpush1.bf16.msra.mxu1 %v3760_v41  ;;  %v3817_v41 = vld [vmem:[%s5161_s26 + $0x38] sm:$0xff]  }
 0x680   :  { %1221 = vmatprep.subr.bf16.mxu1 %v3768_v43 }
 0x683   :  { %1222 = vmatpush1.bf16.msra.mxu1 %v3766_v46 }
 0x684   :  { %1223 = vmatprep.subr.bf16.mxu1 %v3774_v54 }
 0x73d   :  { %v660_v6 = vpop.f32.mrb[16].mxu1 }
 0x73e   :  { %887 = vrot.lane.b32.xlu1 %v660_v6, %s4077_s21  ;;  %v3565_v10 = vpop.f32.mrb[17].mxu1  ;;  %v3801_v6 = vld [vmem:[%s5131_s6 + $0xec] ss:$16 sps:$4 sm:$0xff]  }
 0x73f   :  { %v663_v11 = vpop.f32.mrb[18].mxu1  ;;  %v3796_v10 = vld [vmem:[%s5131_s6 + $0xe0] ss:$16 sps:$4 sm:$0xff]  }
 0x740   :  { %v3566_v12 = vpop.f32.mrb[19].mxu1  ;;  %v3799_v11 = vld [vmem:[%s5131_s6 + $0xe8] ss:$16 sps:$4 sm:$0xff]  }
 0x745   :  { %v770_v14 = vpop.f32.mrb[20].mxu1 }
 0x746   :  { %891 = vrot.lane.b32.xlu0 %v770_v14, %s4076_s28  ;;  %v3577_v16 = vpop.f32.mrb[21].mxu1 }
 0x747   :  { %v773_v17 = vpop.f32.mrb[22].mxu1 }
 0x748   :  { %v3578_v18 = vpop.f32.mrb[23].mxu1  ;;  %v3129_v17 = vld [vmem:[%s5130_s5] ss:$0 sm:$0xff] }
 0x74d   :  { %v880_v19 = vpop.f32.mrb[24].mxu1 }
 0x74e   :  { %895 = vrot.lane.b32.xlu1 %v880_v19, %s4075_s27  ;;  %v3589_v20 = vpop.f32.mrb[25].mxu1 }
 0x74f   :  { %v883_v21 = vpop.f32.mrb[26].mxu1 }
 0x750   :  { %v3590_v22 = vpop.f32.mrb[27].mxu1  ;;  %v3802_v21 = vld [vmem:[%s5161_s26 + $0x40] sm:$0xff]  }
 0x751   :  { %v3803_v22 = vld [vmem:[%s5161_s26] sm:$0xff]  }
 0x7b0   :  { %v888_v23 = vpop.permute.xlu1 %887 }
 0x7b1   :  { %v898_v25 = vsel %vm444_vm8, %v4427_v15, %v888_v23  ;;  %v3757_v15 = vld [vmem:[%s5131_s6 + $0x8] ss:$16 sps:$4 sm:$0xff]  }
 0x7b2   :  { %v3804_v23 = vld [vmem:[%s5161_s26 + $0x48] sm:$0xff]  }
 0x7b8   :  { %v892_v24 = vpop.permute.xlu0 %891 }
 0x7b9   :  { %v900_v26 = vsel %vm899_vm11, %v898_v25, %v892_v24  ;;  %v3805_v24 = vld [vmem:[%s5161_s26 + $0x8] sm:$0xff]   ;;  %v3806_v25 = vld [vmem:[%s5161_s26 + $0x50] sm:$0xff]  }
 0x7c0   :  { %v896_v27 = vpop.permute.xlu1 %895 }
 0x7c1   :  { %v902_v33 = vsel %vm901_vm12, %v900_v26, %v896_v27  ;;  %v3807_v26 = vld [vmem:[%s5161_s26 + $0x10] sm:$0xff]   ;;  %v3808_v27 = vld [vmem:[%s5161_s26 + $0x58] sm:$0xff]  }
 0x7c2   :  { %v903_v34 = vpack.c.bf16 %v902_v33, %v902_v33  ;;  %v3809_v33 = vld [vmem:[%s5161_s26 + $0x18] sm:$0xff]  }
 0x7c4   :  { %3608 = vmatmul.mubr.bf16.vlgmr.msra.gmra.mrb[12].mxu0 %v903_v34  ;;  %v3810_v34 = vld [vmem:[%s5161_s26 + $0x60] sm:$0xff]  }
 0x7c5   :  { %1290 = vmatprep.mubr.bf16.mxu0 %v4070_v45  ;;  %1259 = vmatpush1.bf16.msra.mxu0 %v3757_v15  ;;  %v3813_v15 = vld [vmem:[%s5161_s26 + $0x28] sm:$0xff]  }
 0x7c6   :  { %1260 = vmatprep.subr.bf16.mxu0 %v3765_v40  ;;  %v3816_v40 = vld [vmem:[%s5161_s26 + $0x78] sm:$0xff]  }
 0x7c9   :  { %1261 = vmatpush1.bf16.msra.mxu0 %v3763_v42 }
 0x7ca   :  { %1262 = vmatprep.subr.bf16.mxu0 %v3771_v44 }
 0x7cd   :  { %1263 = vmatpush1.bf16.msra.mxu0 %v3769_v47 }
 0x7ce   :  { %1264 = vmatprep.subr.bf16.mxu0 %v3777_v55 }
 0x7d1   :  { %1265 = vmatpush1.bf16.msra.mxu0 %v3775_v56 }
 0x7d2   :  { %1266 = vmatprep.subr.bf16.mxu0 %v3783_v59 }
 0x7d5   :  { %1267 = vmatpush1.bf16.msra.mxu0 %v3781_v58 }
 0x7d6   :  { %1268 = vmatprep.subr.bf16.mxu0 %v3789_v61 }
 0x7d9   :  { %1269 = vmatpush1.bf16.msra.mxu0 %v3787_v63 }
 0x7da   :  { %1270 = vmatprep.subr.bf16.mxu0 %v3795_v1  ;;  %v3820_v1 = vld [vmem:[%s5128_s3 + $0xc4] ss:$12 sps:$4 sm:$0xff]  }
 0x7dd   :  { %1271 = vmatpush1.bf16.msra.mxu0 %v3793_v4  ;;  %v3824_v4 = vld [vmem:[%s5128_s3 + $0xdc] ss:$12 sps:$4 sm:$0xff]  }
 0x7de   :  { %1272 = vmatprep.subr.bf16.mxu0 %v3801_v6  ;;  %v3822_v6 = vld [vmem:[%s5128_s3 + $0xd8] ss:$12 sps:$4 sm:$0xff]  }
 0x7e1   :  { %1273 = vmatpush1.bf16.msra.mxu0 %v3799_v11  ;;  %v3829_v11 = vld [vmem:[%s5128_s3 + $0xf8] ss:$12 sps:$4 sm:$0xff]  }
 0x7e2   :  { %1664 = vmatprep.subr.bf16.mxu0 %v3820_v1 }
 0x897   :  { %v1002_v48 = vpop.f32.mrb[12].mxu0 }
 0x898   :  { %v4528_v49 = vadd.f32 %v1002_v48, %v4251_v31  ;;  %v3609_v50 = vpop.f32.mrb[13].mxu0  ;;  %v3772_v31 = vld [vmem:[%s5131_s6 + $0x60] ss:$16 sps:$4 sm:$0xff]  }
 0x899   :  { %v1005_v51 = vpop.f32.mrb[14].mxu0  ;;  %1224 = vmatpush1.bf16.msra.mxu1 %v3772_v31 }
 0x89a   :  { %v3610_v52 = vpop.f32.mrb[15].mxu0  ;;  %v1009_v53 = vmul.f32 %v4528_v49, %v4528_v49  ;;  %1225 = vmatprep.subr.bf16.mxu1 %v3780_v28 }
 0x89c   :  { %1010 = vadd.xlane.f32.xlu0 %v1009_v53 }
 0x89d   :  { %1226 = vmatpush1.bf16.msra.mxu1 %v3778_v57 }
 0x89e   :  { %1227 = vmatprep.subr.bf16.mxu1 %v3786_v60 }
 0x8a1   :  { %1228 = vmatpush1.bf16.msra.mxu1 %v3784_v62 }
 0x8a2   :  { %1229 = vmatprep.subr.bf16.mxu1 %v3792_v0  ;;  %v3818_v0 = vld [vmem:[%s5128_s3 + $0xc0] ss:$12 sps:$4 sm:$0xff]  }
 0x8a5   :  { %1230 = vmatpush1.bf16.msra.mxu1 %v3790_v3  ;;  %v3821_v3 = vld [vmem:[%s5128_s3 + $0xc8] ss:$12 sps:$4 sm:$0xff]  }
 0x8a6   :  { %1231 = vmatprep.subr.bf16.mxu1 %v3798_v5  ;;  %v3825_v5 = vld [vmem:[%s5128_s3 + $0xe0] ss:$12 sps:$4 sm:$0xff]  }
 0x8a9   :  { %1232 = vmatpush1.bf16.msra.mxu1 %v3796_v10  ;;  %v3828_v10 = vld [vmem:[%s5128_s3 + $0xf4] ss:$12 sps:$4 sm:$0xff]  }
 0x8aa   :  { %3445 = vmatprep.subr.bf16.mxu1 %v3802_v21  ;;  %v3832_v21 = vld [vmem:[%s5128_s3 + $0x10c] ss:$12 sps:$4 sm:$0xff]  }
 0x929   :  { %v1011_v12 = vpop.xlane.xlu0 %1010 }
 0x92a   :  { %v1012_v13 = vmul.f32 0.0078125, %v1011_v12  ;;  %v3826_v12 = vld [vmem:[%s5128_s3 + $0xf0] ss:$12 sps:$4 sm:$0xff]  }
 0x92c   :  { %v1013_v14 = vadd.f32 1e-06, %v1012_v13 }
 0x92e   :  { %3966 = vrsqrt.f32 %v1013_v14 }
 0x938   :  { %v3967_v16 = vpop.eup %3966 }
 0x939   :  { %v1015_v18 = vmul.f32 %v3967_v16, %v4528_v49 }
 0x93b   :  { %v1023_v19 = vmul.f32 %v3129_v17, %v1015_v18 }
 0x93d   :  { %v1024_v20 = vpack.c.bf16 %v1023_v19, %v1023_v19 }
 0x93f   :  { %1250 = vmatmul.mubr.bf16.vlgmr.msra.gmra.mrb[28].mxu1 %v1024_v20  ;;  %1291 = vmatmul.mubr.bf16.vlgmr.msra.gmra.mrb[16].mxu0 %v1024_v20 }
 0x940   :  { %1696 = vmatprep.mubr.bf16.mxu0 %v4070_v45  ;;  %3446 = vmatpush3.bf16.msra.mxu1 %v3803_v22  ;;  %v3830_v22 = vld [vmem:[%s5128_s3 + $0x108] ss:$12 sps:$4 sm:$0xff]  }
 0x941   :  { %3447 = vmatprep.subr.bf16.mxu1 %v3804_v23  ;;  %1665 = vmatpush1.bf16.msra.mxu0 %v3818_v0  ;;  %v3833_v23 = vld [vmem:[%s5128_s3 + $0x110] ss:$12 sps:$4 sm:$0xff]  }
 0x942   :  { %1666 = vmatprep.subr.bf16.mxu0 %v3824_v4 }
 0x944   :  { %3448 = vmatpush3.bf16.msra.mxu1 %v3805_v24  ;;  %v3836_v24 = vld [vmem:[%s5128_s3 + $0x124] ss:$12 sps:$4 sm:$0xff]  }
 0x945   :  { %3449 = vmatprep.subr.bf16.mxu1 %v3806_v25  ;;  %1667 = vmatpush1.bf16.msra.mxu0 %v3822_v6  ;;  %v3837_v25 = vld [vmem:[%s5128_s3 + $0x128] ss:$12 sps:$4 sm:$0xff]  }
 0x946   :  { %1668 = vmatprep.subr.bf16.mxu0 %v3828_v10 }
 0x948   :  { %3450 = vmatpush3.bf16.msra.mxu1 %v3807_v26  ;;  %v3840_v26 = vld [vmem:[%s5128_s3 + $0x13c] ss:$12 sps:$4 sm:$0xff]  }
 0x949   :  { %3451 = vmatprep.subr.bf16.mxu1 %v3808_v27  ;;  %1669 = vmatpush1.bf16.msra.mxu0 %v3826_v12  ;;  %v3838_v27 = vld [vmem:[%s5128_s3 + $0x138] ss:$12 sps:$4 sm:$0xff]  }
 0x94a   :  { %1670 = vmatprep.subr.bf16.mxu0 %v3832_v21 }
 0x94c   :  { %3452 = vmatpush3.bf16.msra.mxu1 %v3809_v33  ;;  %v3841_v33 = vld [vmem:[%s5128_s3 + $0x140] ss:$12 sps:$4 sm:$0xff]  }
 0x94d   :  { %3453 = vmatprep.subr.bf16.mxu1 %v3810_v34  ;;  %1671 = vmatpush1.bf16.msra.mxu0 %v3830_v22  ;;  %v3844_v34 = vld [vmem:[%s5128_s3 + $0x154] ss:$12 sps:$4 sm:$0xff]  }
 0x94e   :  { %1672 = vmatprep.subr.bf16.mxu0 %v3836_v24 }
 0x950   :  { %3454 = vmatpush3.bf16.msra.mxu1 %v3811_v36  ;;  %v3842_v36 = vld [vmem:[%s5128_s3 + $0x150] ss:$12 sps:$4 sm:$0xff]  }
 0x951   :  { %3455 = vmatprep.subr.bf16.mxu1 %v3812_v37  ;;  %v3845_v37 = vld [vmem:[%s5128_s3 + $0x158] ss:$12 sps:$4 sm:$0xff]  }
 0x954   :  { %3456 = vmatpush3.bf16.msra.mxu1 %v3813_v15  ;;  %v3848_v15 = vld [vmem:[%s5128_s3 + $0x16c] ss:$12 sps:$4 sm:$0xff]  }
 0x955   :  { %3457 = vmatprep.subr.bf16.mxu1 %v3814_v38  ;;  %v3846_v38 = vld [vmem:[%s5128_s3 + $0x168] ss:$12 sps:$4 sm:$0xff]  }
 0x958   :  { %3458 = vmatpush3.bf16.msra.mxu1 %v3815_v39  ;;  %v3849_v39 = vld [vmem:[%s5128_s3 + $0x170] ss:$12 sps:$4 sm:$0xff]  }
 0x959   :  { %3459 = vmatprep.subr.bf16.mxu1 %v3816_v40 }
 0x95c   :  { %3460 = vmatpush3.bf16.msra.mxu1 %v3817_v41 }
 0x95d   :  { %3611 = vmatprep.subr.bf16.mxu1 %v4069_v2 }
 0xa12   :  { %v1251_v42 = vpop.f32.mrb[28].mxu1  ;;  %v1292_v43 = vpop.f32.mrb[16].mxu0 }
 0xa13   :  { %v3162_v44 = vmul.f32 -1.442695, %v1251_v42  ;;  %v1253_v46 = vpop.f32.mrb[29].mxu1  ;;  %v1294_v47 = vpop.f32.mrb[17].mxu0 }
 0xa14   :  { %v3163_v48 = vmul.f32 -1.442695, %v1253_v46  ;;  %v1255_v50 = vpop.f32.mrb[30].mxu1  ;;  %v1296_v51 = vpop.f32.mrb[18].mxu0 }
 0xa15   :  { %3968 = vpow2.f32 %v3162_v44  ;;  %v1256_v52 = vpop.f32.mrb[31].mxu1  ;;  %v1297_v53 = vpop.f32.mrb[19].mxu0  ;;  %v3181_v44 = vld [vmem:[%s5160_s2 + $0x1] ss:$0 sm:$0xff]  ;;  %v139_v50 = vld [vmem:[%s5139_s14 + $0x8] sm:$0xf] }
 0xa16   :  { %3970 = vpow2.f32 %v3163_v48  ;;  %143 = vst [vmem:[%s5143_s18 + $0x8] sm:$0xf] %v139_v50  ;;  %v131_v52 = vld [vmem:[%s5138_s13 + $0x8] sm:$0xf] }
 0xa17   :  { %135 = vst [vmem:[%s5142_s17 + $0x8] sm:$0xf] %v131_v52 }
 0xa1d   :  { %v140_v51 = vld [vmem:[%s5139_s14 + $0xc] sm:$0xf] }
 0xa1e   :  { %144 = vst [vmem:[%s5143_s18 + $0xc] sm:$0xf] %v140_v51  ;;  %v132_v53 = vld [vmem:[%s5138_s13 + $0xc] sm:$0xf] }
 0xa1f   :  { %v3969_v54 = vpop.eup %3968  ;;  %136 = vst [vmem:[%s5142_s17 + $0xc] sm:$0xf] %v132_v53 }
 0xa20   :  { %v3971_v55 = vpop.eup %3970  ;;  %v1305_v31 = vadd.f32 1.0, %v3969_v54 }
 0xa21   :  { %v1306_v56 = vadd.f32 1.0, %v3971_v55 }
 0xa22   :  { %3972 = vrcp.f32 %v1305_v31 }
 0xa23   :  { %3974 = vrcp.f32 %v1306_v56 }
 0xa2c   :  { %v3973_v57 = vpop.eup %3972 }
 0xa2d   :  { %v3975_v28 = vpop.eup %3974  ;;  %v1311_v58 = vmul.f32 %v3973_v57, %v1251_v42 }
 0xa2e   :  { %v1312_v59 = vmul.f32 %v3975_v28, %v1253_v46 }
 0xa2f   :  { %v1313_v60 = vmul.f32 %v1311_v58, %v1292_v43 }
 0xa30   :  { %v1314_v61 = vmul.f32 %v1312_v59, %v1294_v47 }
 0xa31   :  { %v1315_v63 = vpack.c.bf16 %v1313_v60, %v1313_v60 }
 0xa32   :  { %v1316_v62 = vpack.c.bf16 %v1314_v61, %v1314_v61 }
 0xa34   :  { %1477 = vmatprep.mubr.bf16.mxu1 %v1316_v62 }
 0xa35   :  { %1478 = vmatmul.mubr.bf16.vlgmr.msra.gmra.mrb[32].mxu1 %v1315_v63 }
 0xa36   :  { %3627 = vmatprep.mubr.msk.bf16.mxu1 %vm4071_vm7, %v4069_v2  ;;  %3612 = vmatpush3.bf16.msra.mxu1 %v3821_v3 }
 0xa37   :  { %3613 = vmatprep.subr.bf16.mxu1 %v4069_v2 }
 0xa3a   :  { %3614 = vmatpush3.bf16.msra.mxu1 %v3825_v5 }
 0xa3b   :  { %3615 = vmatprep.subr.bf16.mxu1 %v4069_v2 }
 0xa3e   :  { %3616 = vmatpush3.bf16.msra.mxu1 %v3829_v11 }
 0xa3f   :  { %3617 = vmatprep.subr.bf16.mxu1 %v4069_v2 }
 0xa42   :  { %3618 = vmatpush3.bf16.msra.mxu1 %v3833_v23 }
 0xa43   :  { %3619 = vmatprep.subr.bf16.mxu1 %v4069_v2 }
 0xa46   :  { %3620 = vmatpush3.bf16.msra.mxu1 %v3837_v25 }
 0xa47   :  { %3621 = vmatprep.subr.bf16.mxu1 %v4069_v2 }
 0xa4a   :  { %3622 = vmatpush3.bf16.msra.mxu1 %v3841_v33 }
 0xa4b   :  { %3623 = vmatprep.subr.bf16.mxu1 %v4069_v2 }
 0xa4e   :  { %3624 = vmatpush3.bf16.msra.mxu1 %v3845_v37 }
 0xa4f   :  { %3625 = vmatprep.subr.bf16.mxu1 %v4069_v2 }
 0xa52   :  { %3626 = vmatpush3.bf16.msra.mxu1 %v3849_v39 }
 0xa53   :  { %3637 = vmatprep.subr.bf16.mxu1 %v4069_v2 }
 0xb08   :  { %v3461_v13 = vpop.f32.mrb[32].mxu1 }
 0xb09   :  { %v3462_v14 = vpop.f32.mrb[33].mxu1 }
 0xb0a   :  { %v3463_v16 = vadd.f32 %v3462_v14, %v3461_v13  ;;  %v3464_v17 = vpop.f32.mrb[34].mxu1 }
 0xb0b   :  { %v3465_v18 = vpop.f32.mrb[35].mxu1 }
 0xb0c   :  { %v4679_v19 = vadd.f32 %v3463_v16, %v4528_v49  ;;  %v3834_v49 = vld [vmem:[%s5128_s3 + $0x120] ss:$12 sps:$4 sm:$0xff]  }
 0xb0d   :  { %1673 = vmatpush1.bf16.msra.mxu0 %v3834_v49 }
 0xb0e   :  { %v1486_v20 = vmul.f32 %v4679_v19, %v4679_v19  ;;  %1674 = vmatprep.subr.bf16.mxu0 %v3840_v26 }
 0xb10   :  { %1487 = vadd.xlane.f32.xlu1 %v1486_v20 }
 0xb11   :  { %1675 = vmatpush1.bf16.msra.mxu0 %v3838_v27 }
 0xb12   :  { %1676 = vmatprep.subr.bf16.mxu0 %v3844_v34 }
 0xb15   :  { %1677 = vmatpush1.bf16.msra.mxu0 %v3842_v36 }
 0xb16   :  { %1678 = vmatprep.subr.bf16.mxu0 %v3848_v15 }
 0xb19   :  { %1679 = vmatpush1.bf16.msra.mxu0 %v3846_v38 }
 0xb1a   :  { %3631 = vmatprep.subr.bf16.mxu0 %v4069_v2 }
 0xb9d   :  { %v1488_v40 = vpop.xlane.xlu1 %1487 }
 0xb9e   :  { %v1489_v41 = vmul.f32 0.0078125, %v1488_v40 }
 0xba0   :  { %v1490_v42 = vadd.f32 1e-06, %v1489_v41 }
 0xba2   :  { %3976 = vrsqrt.f32 %v1490_v42 }
 0xbac   :  { %v3977_v43 = vpop.eup %3976 }
 0xbad   :  { %v1492_v46 = vmul.f32 %v3977_v43, %v4679_v19 }
 0xbaf   :  { %v1501_v47 = vmul.f32 %v3181_v44, %v1492_v46 }
 0xbb1   :  { %v1502_v48 = vpack.c.bf16 %v1501_v47, %v1501_v47 }
 0xbb3   :  { %1697 = vmatmul.mubr.bf16.vlgmr.msra.gmra.mrb[20].mxu0 %v1502_v48  ;;  %3628 = vmatmul.mubr.bf16.vlgmr.msra.gmra.mrb[36].mxu1 %v1502_v48 }
 0xbb4   :  { %3633 = vmatprep.mubr.msk.bf16.mxu0 %vm4071_vm7, %v4069_v2  ;;  %3639 = vmatprep.mubr.msk.bf16.mxu1 %vm4071_vm7, %v4069_v2 }
 0xc86   :  { %v1698_v54 = vpop.f32.mrb[20].mxu0  ;;  %v1739_v55 = vpop.f32.mrb[36].mxu1 }
 0xc87   :  { %v1766_v31 = vpack.c.bf16 %v1739_v55, %v1739_v55  ;;  %v1700_v56 = vpop.f32.mrb[21].mxu0  ;;  %v3629_v57 = vpop.f32.mrb[37].mxu1  ;;  %v1745_v10 = vmul.f32 %v1698_v54, %v4352_v7 }
 0xc88   :  { %v1742_v28 = vpop.f32.mrb[38].mxu1  ;;  %1759 = vrot.lane.b32.xlu1 %v1700_v56, %s4072_s16  ;;  %1755 = vrot.lane.b32.xlu0 %v1700_v56, %s4073_s1  ;;  %v1702_v58 = vpop.f32.mrb[22].mxu0  ;;  %v1754_v0 = vmul.f32 %v1700_v56, %v4352_v7 }
 0xc89   :  { %3239 = vst [vmem:[%s5143_s18 + $0x8] sm:$0xf] %v1766_v31  ;;  %v1703_v59 = vpop.f32.mrb[23].mxu0  ;;  %v3630_v60 = vpop.f32.mrb[39].mxu1 }
 0xc8c   :  { %1750 = vrot.lane.b32.xlu1 %v1698_v54, %s4072_s16  ;;  %1746 = vrot.lane.b32.xlu0 %v1698_v54, %s4073_s1 }
 0xc90   :  { %v4776_v61 = vld [vmem:[%s5143_s18 + $0x8] sm:$0xff]  }
 0xc91   :  { %3638 = vmatpush3.bf16.msra.mxu1 %v4776_v61 }
 0xc92   :  { %3649 = vmatprep.subr.bf16.mxu1 %v4069_v2 }
 0xcfa   :  { %v1760_v62 = vpop.permute.xlu1 %1759  ;;  %v1756_v63 = vpop.permute.xlu0 %1755 }
 0xcfb   :  { %v1757_v1 = vmul.f32 %v1756_v63, %v4357_v8  ;;  %v1761_v3 = vmul.f32 %v1760_v62, %v4362_v9 }
 0xcfd   :  { %v1758_v4 = vadd.f32 %v1757_v1, %v1754_v0 }
 0xcfe   :  { %v1751_v5 = vpop.permute.xlu1 %1750  ;;  %v1747_v6 = vpop.permute.xlu0 %1746 }
 0xcff   :  { %v1762_v11 = vadd.f32 %v1761_v3, %v1758_v4  ;;  %v1748_v12 = vmul.f32 %v1747_v6, %v4357_v8  ;;  %v1752_v14 = vmul.f32 %v1751_v5, %v4362_v9 }
 0xd01   :  { %v1763_v13 = vpack.c.bf16 %v1762_v11, %v1762_v11  ;;  %v1749_v16 = vadd.f32 %v1748_v12, %v1745_v10 }
 0xd03   :  { %3238 = vst [vmem:[%s5142_s17 + $0x8] sm:$0xf] %v1763_v13  ;;  %v1753_v17 = vadd.f32 %v1752_v14, %v1749_v16 }
 0xd05   :  { %v1773_v18 = vpack.c.bf16 %v1753_v17, %v1753_v17 }
 0xd07   :  { %1889 = vrot.lane.b32.xlu1 %v1773_v18, %s4075_s27 }
 0xd0a   :  { %v3851_v20 = vld [vmem:[%s5142_s17 + $0x8] sm:$0xff]   ;;  %s5162_s17 = sld [smem:[#allocation16_spill]] }
 0xd0b   :  { %1999 = vrot.lane.b32.xlu1 %v1773_v18, %s4076_s28  ;;  %1891 = vrot.lane.b32.xlu0 %v3851_v20, %s4075_s27  ;;  %v1783_v7 = vsel %vm444_vm8, %v3851_v20, 0 }
 0xd0c   :  { %3632 = vmatpush3.bf16.xpose.msra.mxu0 %v1783_v7 }
 0xd0d   :  { %3643 = vmatprep.subr.bf16.mxu0 %v4069_v2 }
 0xd0f   :  { %2109 = vrot.lane.b32.xlu1 %v1773_v18, %s4077_s21  ;;  %2001 = vrot.lane.b32.xlu0 %v3851_v20, %s4076_s28 }
 0xd13   :  { %2111 = vrot.lane.b32.xlu0 %v3851_v20, %s4077_s21  ;;  %3634 = vmatmul.mubr.msk.bf16.vlgmr.msra.gmra.mrb[24].mxu0 %vm444_vm8, %v1773_v18 }
 0xd14   :  { %3645 = vmatprep.mubr.msk.bf16.mxu0 %vm4071_vm7, %v4069_v2 }
 0xd79   :  { %v1890_v22 = vpop.permute.xlu1 %1889 }
 0xd7d   :  { %v1892_v8 = vpop.permute.xlu0 %1891  ;;  %v2000_v24 = vpop.permute.xlu1 %1999 }
 0xd7e   :  { %v1897_v9 = vsel %vm444_vm8, %v1892_v8, 0 }
 0xd7f   :  { %3644 = vmatpush3.bf16.xpose.msra.mxu0 %v1897_v9 }
 0xd80   :  { %3655 = vmatprep.subr.bf16.mxu0 %v4069_v2 }
 0xd81   :  { %v2002_v21 = vpop.permute.xlu0 %2001  ;;  %v2110_v26 = vpop.permute.xlu1 %2109 }
 0xd82   :  { %v2007_v23 = vsel %vm444_vm8, %v2002_v21, 0 }
 0xd85   :  { %v2112_v49 = vpop.permute.xlu0 %2111 }
 0xd86   :  { %3646 = vmatmul.mubr.msk.bf16.vlgmr.msra.gmra.mrb[28].mxu0 %vm444_vm8, %v1890_v22  ;;  %v2117_v25 = vsel %vm444_vm8, %v2112_v49, 0 }
 0xd87   :  { %3656 = vmatpush3.bf16.xpose.msra.mxu0 %v2007_v23  ;;  %3657 = vmatprep.mubr.msk.bf16.mxu0 %vm4071_vm7, %v4069_v2 }
 0xd88   :  { %3667 = vmatprep.subr.bf16.mxu0 %v4069_v2 }
 0xd8e   :  { %3658 = vmatmul.mubr.msk.bf16.vlgmr.msra.gmra.mrb[32].mxu0 %vm444_vm8, %v2000_v24 }
 0xd8f   :  { %3668 = vmatpush3.bf16.xpose.msra.mxu0 %v2117_v25  ;;  %3669 = vmatprep.mubr.msk.bf16.mxu0 %vm4071_vm7, %v4069_v2 }
 0xd90   :  { %3679 = vmatprep.subr.bf16.mxu0 %v4069_v2 }
 0xd96   :  { %3670 = vmatmul.mubr.msk.bf16.vlgmr.msra.gmra.mrb[36].mxu0 %vm444_vm8, %v2110_v26 }
 0xd97   :  { %3695 = vmatprep.mubr.msk.bf16.mxu0 %vm4071_vm7, %v4069_v2 }
 0xde6   :  { %v1819_v27 = vpop.f32.mrb[24].mxu0 }
 0xde7   :  { %v1825_v33 = vmul.f32 0.17677669, %v1819_v27  ;;  %v3635_v34 = vpop.f32.mrb[25].mxu0 }
 0xde8   :  { %v1822_v36 = vpop.f32.mrb[26].mxu0 }
 0xde9   :  { %v3636_v37 = vpop.f32.mrb[27].mxu0  ;;  %v1826_v15 = vadd.f32 %v1825_v33, %v4396_v35 }
 0xdeb   :  { %v1827_v38 = vsel %vm493_vm10, %v1826_v15, -inf }
 0xdec   :  { %1828 = vmax.xlane.f32.xlu0 %v1827_v38 }
 0xe59   :  { %v1933_v39 = vpop.f32.mrb[28].mxu0 }
 0xe5a   :  { %v1939_v40 = vmul.f32 0.17677669, %v1933_v39  ;;  %v3647_v41 = vpop.f32.mrb[29].mxu0 }
 0xe5b   :  { %v1936_v42 = vpop.f32.mrb[30].mxu0 }
 0xe5c   :  { %v3648_v43 = vpop.f32.mrb[31].mxu0  ;;  %v1940_v44 = vadd.f32 %v1939_v40, %v4396_v35 }
 0xe5e   :  { %v1941_v46 = vsel %vm493_vm10, %v1940_v44, -inf }
 0xe5f   :  { %1942 = vmax.xlane.f32.xlu1 %v1941_v46  ;;  %v3852_v46 = vld [vmem:[%s5129_s4 + $0x40] sm:$0xff]  }
 0xe60   :  { %3680 = vmatpush3.bf16.msra.mxu0 %v3852_v46  ;;  %v3899_v46 = vld [vmem:[%s5131_s6 + $0x1c8] ss:$16 sps:$4 sm:$0xff]  }
 0xe61   :  { %v2043_v47 = vpop.f32.mrb[32].mxu0  ;;  %3681 = vmatprep.subr.bf16.mxu0 %v4069_v2 }
 0xe62   :  { %v2049_v48 = vmul.f32 0.17677669, %v2043_v47  ;;  %v3659_v50 = vpop.f32.mrb[33].mxu0  ;;  %v3853_v47 = vld [vmem:[%s5129_s4 + $0x48] sm:$0xff]  }
 0xe63   :  { %v2046_v51 = vpop.f32.mrb[34].mxu0  ;;  %v3855_v50 = vld [vmem:[%s5129_s4 + $0x58] sm:$0xff]  }
 0xe64   :  { %v3660_v52 = vpop.f32.mrb[35].mxu0  ;;  %v2050_v53 = vadd.f32 %v2049_v48, %v4396_v35  ;;  %3682 = vmatpush3.bf16.msra.mxu0 %v3853_v47  ;;  %v3854_v48 = vld [vmem:[%s5129_s4 + $0x50] sm:$0xff]   ;;  %v3856_v51 = vld [vmem:[%s5129_s4 + $0x60] sm:$0xff]  }
 0xe65   :  { %3683 = vmatprep.subr.bf16.mxu0 %v4069_v2  ;;  %v3857_v52 = vld [vmem:[%s5129_s4 + $0x68] sm:$0xff]   ;;  %v3904_v47 = vld [vmem:[%s5131_s6 + $0x1e4] ss:$16 sps:$4 sm:$0xff]  }
 0xe66   :  { %v2051_v54 = vsel %vm493_vm10, %v2050_v53, -inf }
 0xe67   :  { %2052 = vmax.xlane.f32.xlu0 %v2051_v54 }
 0xe68   :  { %3684 = vmatpush3.bf16.msra.mxu0 %v3854_v48  ;;  %v3907_v48 = vld [vmem:[%s5131_s6 + $0x1ec] ss:$16 sps:$4 sm:$0xff]  }
 0xe69   :  { %v2153_v55 = vpop.f32.mrb[36].mxu0  ;;  %3685 = vmatprep.subr.bf16.mxu0 %v4069_v2 }
 0xe6a   :  { %v2159_v31 = vmul.f32 0.17677669, %v2153_v55  ;;  %v3671_v56 = vpop.f32.mrb[37].mxu0 }
 0xe6b   :  { %v2156_v57 = vpop.f32.mrb[38].mxu0 }
 0xe6c   :  { %v3672_v28 = vpop.f32.mrb[39].mxu0  ;;  %v2160_v58 = vadd.f32 %v2159_v31, %v4396_v35  ;;  %3686 = vmatpush3.bf16.msra.mxu0 %v3855_v50  ;;  %v3859_v57 = vld [vmem:[%s5129_s4 + $0x78] sm:$0xff]   ;;  %v3902_v50 = vld [vmem:[%s5131_s6 + $0x1e0] ss:$16 sps:$4 sm:$0xff]  }
 0xe6d   :  { %3687 = vmatprep.subr.bf16.mxu0 %v4069_v2 }
 0xe6e   :  { %v2161_v59 = vsel %vm493_vm10, %v2160_v58, -inf }
 0xe6f   :  { %2162 = vmax.xlane.f32.xlu0 %v2161_v59 }
 0xe70   :  { %3688 = vmatpush3.bf16.msra.mxu0 %v3856_v51  ;;  %v3905_v51 = vld [vmem:[%s5131_s6 + $0x1e8] ss:$16 sps:$4 sm:$0xff]  }
 0xe71   :  { %3689 = vmatprep.subr.bf16.mxu0 %v4069_v2 }
 0xe74   :  { %3690 = vmatpush3.bf16.msra.mxu0 %v3857_v52 }
 0xe75   :  { %3691 = vmatprep.subr.bf16.mxu0 %v4069_v2 }
 0xe79   :  { %v1829_v60 = vpop.xlane.xlu0 %1828 }
 0xe7a   :  { %v1830_v62 = vsub.f32 %v1826_v15, %v1829_v60 }
 0xe7c   :  { %v1831_v63 = vmul.f32 1.442695, %v1830_v62 }
 0xe7e   :  { %3978 = vpow2.f32 %v1831_v63 }
 0xe88   :  { %v3979_v0 = vpop.eup %3978 }
 0xe89   :  { %v1833_v1 = vsel %vm493_vm10, %v3979_v0, 0.0 }
 0xe8a   :  { %1834 = vadd.xlane.f32.xlu1 %v1833_v1 }
 0xe9b   :  { %1953 = vrot.lane.b32.xlu1 %v4776_v61, %s4075_s27 }
 0xeec   :  { %v1943_v3 = vpop.xlane.xlu1 %1942 }
 0xeed   :  { %v1944_v4 = vsub.f32 %v1940_v44, %v1943_v3 }
 0xeef   :  { %v1945_v5 = vmul.f32 1.442695, %v1944_v4 }
 0xef1   :  { %3980 = vpow2.f32 %v1945_v5 }
 0xef4   :  { %v2053_v6 = vpop.xlane.xlu0 %2052 }
 0xef5   :  { %v2054_v35 = vsub.f32 %v2050_v53, %v2053_v6  ;;  %v3858_v53 = vld [vmem:[%s5129_s4 + $0x70] sm:$0xff]  }
 0xef6   :  { %3692 = vmatpush3.bf16.msra.mxu0 %v3858_v53 }
 0xef7   :  { %v2055_v10 = vmul.f32 1.442695, %v2054_v35  ;;  %3693 = vmatprep.subr.bf16.mxu0 %v4069_v2 }
 0xef9   :  { %3982 = vpow2.f32 %v2055_v10 }
 0xefa   :  { %3694 = vmatpush3.bf16.msra.mxu0 %v3859_v57 }
 0xefb   :  { %v3981_v11 = vpop.eup %3980 }
 0xefc   :  { %v2163_v12 = vpop.xlane.xlu0 %2162  ;;  %v1947_v13 = vsel %vm493_vm10, %v3981_v11, 0.0 }
 0xefd   :  { %v2164_v14 = vsub.f32 %v2160_v58, %v2163_v12  ;;  %1948 = vadd.xlane.f32.xlu0 %v1947_v13  ;;  %v3862_v12 = vld [vmem:[%s5131_s6 + $0x104] ss:$16 sps:$4 sm:$0xff]   ;;  %v3863_v13 = vld [vmem:[%s5131_s6 + $0x108] ss:$16 sps:$4 sm:$0xff]  }
 0xeff   :  { %v2165_v16 = vmul.f32 1.442695, %v2164_v14  ;;  %v3865_v14 = vld [vmem:[%s5131_s6 + $0x10c] ss:$16 sps:$4 sm:$0xff]  }
 0xf00   :  { %2592 = vmatprep.subr.bf16.mxu0 %v3865_v14 }
 0xf01   :  { %3984 = vpow2.f32 %v2165_v16  ;;  %v3868_v16 = vld [vmem:[%s5131_s6 + $0x124] ss:$16 sps:$4 sm:$0xff]  }
 0xf03   :  { %v3983_v17 = vpop.eup %3982 }
 0xf04   :  { %v2057_v18 = vsel %vm493_vm10, %v3983_v17, 0.0 }
 0xf05   :  { %2058 = vadd.xlane.f32.xlu1 %v2057_v18  ;;  %v3866_v18 = vld [vmem:[%s5131_s6 + $0x120] ss:$16 sps:$4 sm:$0xff]  }
 0xf0b   :  { %v3985_v20 = vpop.eup %3984 }
 0xf0c   :  { %v2167_v7 = vsel %vm493_vm10, %v3985_v20, 0.0 }
 0xf0d   :  { %2168 = vadd.xlane.f32.xlu0 %v2167_v7  ;;  %v3874_v7 = vld [vmem:[%s5131_s6 + $0x144] ss:$16 sps:$4 sm:$0xff]  }
 0xf16   :  { %2173 = vrot.lane.b32.xlu1 %v4776_v61, %s4077_s21 }
 0xf17   :  { %v1835_v8 = vpop.xlane.xlu1 %1834 }
 0xf18   :  { %3986 = vrcp.f32 %v1835_v8  ;;  %v3877_v8 = vld [vmem:[%s5131_s6 + $0x14c] ss:$16 sps:$4 sm:$0xff]  }
 0xf1b   :  { %v1954_v23 = vpop.permute.xlu1 %1953 }
 0xf22   :  { %v3987_v9 = vpop.eup %3986 }
 0xf23   :  { %v1837_v21 = vmul.f32 %v3987_v9, %v3979_v0  ;;  %2063 = vrot.lane.b32.xlu0 %v4776_v61, %s4076_s28  ;;  %v3872_v9 = vld [vmem:[%s5131_s6 + $0x140] ss:$16 sps:$4 sm:$0xff]  }
 0xf25   :  { %v1838_v22 = vpack.c.bf16 %v1837_v21, %v1837_v21  ;;  %v3875_v21 = vld [vmem:[%s5131_s6 + $0x148] ss:$16 sps:$4 sm:$0xff]  }
 0xf27   :  { %3640 = vmatmul.mubr.msk.bf16.vlgmr.msra.gmra.mrb[40].mxu1 %vm493_vm10, %v1838_v22 }
 0xf28   :  { %3650 = vmatpush3.bf16.msra.mxu1 %v1954_v23  ;;  %3651 = vmatprep.mubr.msk.bf16.mxu1 %vm4071_vm7, %v4069_v2 }
 0xf29   :  { %3661 = vmatprep.subr.bf16.mxu1 %v4069_v2 }
 0xf8a   :  { %v1949_v49 = vpop.xlane.xlu0 %1948 }
 0xf8b   :  { %3988 = vrcp.f32 %v1949_v49 }
 0xf92   :  { %v2059_v24 = vpop.xlane.xlu1 %2058 }
 0xf93   :  { %3990 = vrcp.f32 %v2059_v24 }
 0xf95   :  { %v3989_v25 = vpop.eup %3988 }
 0xf96   :  { %v1951_v26 = vmul.f32 %v3989_v25, %v3981_v11  ;;  %v2174_v15 = vpop.permute.xlu1 %2173  ;;  %v3860_v11 = vld [vmem:[%s5131_s6 + $0x100] ss:$16 sps:$4 sm:$0xff]  }
 0xf98   :  { %v1952_v27 = vpack.c.bf16 %v1951_v26, %v1951_v26 }
 0xf9a   :  { %3652 = vmatmul.mubr.msk.bf16.vlgmr.msra.gmra.mrb[44].mxu1 %vm493_vm10, %v1952_v27  ;;  %v2169_v61 = vpop.xlane.xlu0 %2168  ;;  %v3880_v27 = vld [vmem:[%s5131_s6 + $0x164] ss:$16 sps:$4 sm:$0xff]  }
 0xf9b   :  { %3992 = vrcp.f32 %v2169_v61  ;;  %3663 = vmatprep.mubr.msk.bf16.mxu1 %vm4071_vm7, %v4069_v2  ;;  %v3883_v61 = vld [vmem:[%s5131_s6 + $0x16c] ss:$16 sps:$4 sm:$0xff]  }
 0xf9d   :  { %v3991_v33 = vpop.eup %3990 }
 0xf9e   :  { %v2061_v34 = vmul.f32 %v3991_v33, %v3983_v17  ;;  %v2064_v36 = vpop.permute.xlu0 %2063  ;;  %v3871_v17 = vld [vmem:[%s5131_s6 + $0x12c] ss:$16 sps:$4 sm:$0xff]   ;;  %v3881_v33 = vld [vmem:[%s5131_s6 + $0x168] ss:$16 sps:$4 sm:$0xff]  }
 0xf9f   :  { %3662 = vmatpush3.bf16.msra.mxu1 %v2064_v36  ;;  %v3886_v36 = vld [vmem:[%s5131_s6 + $0x184] ss:$16 sps:$4 sm:$0xff]  }
 0xfa0   :  { %v2062_v37 = vpack.c.bf16 %v2061_v34, %v2061_v34  ;;  %3673 = vmatprep.subr.bf16.mxu1 %v4069_v2  ;;  %v3884_v34 = vld [vmem:[%s5131_s6 + $0x180] ss:$16 sps:$4 sm:$0xff]  }
 0xfa2   :  { %3664 = vmatmul.mubr.msk.bf16.vlgmr.msra.gmra.mrb[48].mxu1 %vm493_vm10, %v2062_v37  ;;  %v3887_v37 = vld [vmem:[%s5131_s6 + $0x188] ss:$16 sps:$4 sm:$0xff]  }
 0xfa3   :  { %3674 = vmatpush3.bf16.msra.mxu1 %v2174_v15  ;;  %3675 = vmatprep.mubr.msk.bf16.mxu1 %vm4071_vm7, %v4069_v2  ;;  %v3889_v15 = vld [vmem:[%s5131_s6 + $0x18c] ss:$16 sps:$4 sm:$0xff]  }
 0xfa4   :  { %2551 = vmatprep.subr.bf16.mxu1 %v3862_v12 }
 0xfa5   :  { %v3993_v38 = vpop.eup %3992 }
 0xfa6   :  { %v2171_v39 = vmul.f32 %v3993_v38, %v3985_v20  ;;  %v3869_v20 = vld [vmem:[%s5131_s6 + $0x128] ss:$16 sps:$4 sm:$0xff]   ;;  %v3892_v38 = vld [vmem:[%s5131_s6 + $0x1a4] ss:$16 sps:$4 sm:$0xff]  }
 0xfa8   :  { %v2172_v40 = vpack.c.bf16 %v2171_v39, %v2171_v39  ;;  %v3895_v39 = vld [vmem:[%s5131_s6 + $0x1ac] ss:$16 sps:$4 sm:$0xff]  }
 0xfaa   :  { %3676 = vmatmul.mubr.msk.bf16.vlgmr.msra.gmra.mrb[52].mxu1 %vm493_vm10, %v2172_v40  ;;  %v3890_v40 = vld [vmem:[%s5131_s6 + $0x1a0] ss:$16 sps:$4 sm:$0xff]  }
 0xfab   :  { %2583 = vmatprep.mubr.bf16.mxu1 %v4070_v45  ;;  %2552 = vmatpush1.bf16.msra.mxu1 %v3860_v11  ;;  %v3923_v11 = vld [vmem:[%s5161_s26 + $0xb8] sm:$0xff]  }
 0xfac   :  { %2553 = vmatprep.subr.bf16.mxu1 %v3868_v16 }
 0xfaf   :  { %2554 = vmatpush1.bf16.msra.mxu1 %v3866_v18 }
 0xfb0   :  { %2555 = vmatprep.subr.bf16.mxu1 %v3874_v7 }
 0xfb3   :  { %2556 = vmatpush1.bf16.msra.mxu1 %v3872_v9 }
 0xfb4   :  { %2557 = vmatprep.subr.bf16.mxu1 %v3880_v27 }
 0xffa   :  { %v1882_v41 = vpop.f32.mrb[40].mxu1 }
 0xffb   :  { %v3641_v42 = vpop.f32.mrb[41].mxu1 }
 0xffc   :  { %v1885_v43 = vpop.f32.mrb[42].mxu1  ;;  %v3898_v42 = vld [vmem:[%s5131_s6 + $0x1c4] ss:$16 sps:$4 sm:$0xff]  }
 0xffd   :  { %v3642_v44 = vpop.f32.mrb[43].mxu1  ;;  %v3901_v43 = vld [vmem:[%s5131_s6 + $0x1cc] ss:$16 sps:$4 sm:$0xff]  }
 0xffe   :  { %v3896_v44 = vld [vmem:[%s5131_s6 + $0x1c0] ss:$16 sps:$4 sm:$0xff]  }
0x106d   :  { %v1993_v54 = vpop.f32.mrb[44].mxu1 }
0x106e   :  { %2220 = vrot.lane.b32.xlu1 %v1993_v54, %s4077_s21  ;;  %v3653_v55 = vpop.f32.mrb[45].mxu1 }
0x106f   :  { %v1996_v31 = vpop.f32.mrb[46].mxu1 }
0x1070   :  { %v3654_v56 = vpop.f32.mrb[47].mxu1  ;;  %v3279_v31 = vld [vmem:[%s5130_s5 + $0x1] ss:$0 sm:$0xff] }
0x1075   :  { %v2103_v28 = vpop.f32.mrb[48].mxu1 }
0x1076   :  { %2224 = vrot.lane.b32.xlu0 %v2103_v28, %s4076_s28  ;;  %v3665_v58 = vpop.f32.mrb[49].mxu1 }
0x1077   :  { %v2106_v59 = vpop.f32.mrb[50].mxu1  ;;  %v3908_v58 = vld [vmem:[%s5161_s26 + $0xc0] sm:$0xff]  }
0x1078   :  { %v3666_v60 = vpop.f32.mrb[51].mxu1  ;;  %v3909_v59 = vld [vmem:[%s5161_s26 + $0x80] sm:$0xff]  }
0x1079   :  { %v3910_v60 = vld [vmem:[%s5161_s26 + $0xc8] sm:$0xff]  }
0x107d   :  { %v2213_v62 = vpop.f32.mrb[52].mxu1 }
0x107e   :  { %2228 = vrot.lane.b32.xlu1 %v2213_v62, %s4075_s27  ;;  %v3677_v63 = vpop.f32.mrb[53].mxu1  ;;  %v3911_v62 = vld [vmem:[%s5161_s26 + $0x88] sm:$0xff]  }
0x107f   :  { %v2216_v0 = vpop.f32.mrb[54].mxu1  ;;  %v3913_v63 = vld [vmem:[%s5161_s26 + $0x90] sm:$0xff]  }
0x1080   :  { %v3678_v1 = vpop.f32.mrb[55].mxu1  ;;  %v3914_v0 = vld [vmem:[%s5161_s26 + $0xd8] sm:$0xff]  }
0x1081   :  { %v3915_v1 = vld [vmem:[%s5161_s26 + $0x98] sm:$0xff]  }
0x10e0   :  { %v2221_v3 = vpop.permute.xlu1 %2220 }
0x10e1   :  { %v2231_v4 = vsel %vm444_vm8, %v1882_v41, %v2221_v3  ;;  %v3893_v41 = vld [vmem:[%s5131_s6 + $0x1a8] ss:$16 sps:$4 sm:$0xff]   ;;  %v3916_v3 = vld [vmem:[%s5161_s26 + $0xe0] sm:$0xff]  }
0x10e8   :  { %v2225_v2 = vpop.permute.xlu0 %2224 }
0x10e9   :  { %v2232_v5 = vsel %vm899_vm11, %v2231_v4, %v2225_v2  ;;  %v3917_v2 = vld [vmem:[%s5161_s26 + $0xa0] sm:$0xff]   ;;  %v3918_v4 = vld [vmem:[%s5161_s26 + $0xe8] sm:$0xff]  }
0x10f0   :  { %v2229_v6 = vpop.permute.xlu1 %2228 }
0x10f1   :  { %v2233_v35 = vsel %vm901_vm12, %v2232_v5, %v2229_v6  ;;  %v3919_v5 = vld [vmem:[%s5161_s26 + $0xa8] sm:$0xff]   ;;  %v3920_v6 = vld [vmem:[%s5161_s26 + $0xf0] sm:$0xff]  }
0x10f2   :  { %v2234_v10 = vpack.c.bf16 %v2233_v35, %v2233_v35  ;;  %v3921_v35 = vld [vmem:[%s5161_s26 + $0xb0] sm:$0xff]  }
0x10f4   :  { %3696 = vmatmul.mubr.bf16.vlgmr.msra.gmra.mrb[40].mxu0 %v2234_v10  ;;  %v3922_v10 = vld [vmem:[%s5161_s26 + $0xf8] sm:$0xff]  }
0x10f5   :  { %2624 = vmatprep.mubr.bf16.mxu0 %v4070_v45  ;;  %2593 = vmatpush1.bf16.msra.mxu0 %v3863_v13 }
0x10f6   :  { %2594 = vmatprep.subr.bf16.mxu0 %v3871_v17 }
0x10f9   :  { %2595 = vmatpush1.bf16.msra.mxu0 %v3869_v20 }
0x10fa   :  { %2596 = vmatprep.subr.bf16.mxu0 %v3877_v8 }
0x10fd   :  { %2597 = vmatpush1.bf16.msra.mxu0 %v3875_v21 }
0x10fe   :  { %2598 = vmatprep.subr.bf16.mxu0 %v3883_v61 }
0x1101   :  { %2599 = vmatpush1.bf16.msra.mxu0 %v3881_v33 }
0x1102   :  { %2600 = vmatprep.subr.bf16.mxu0 %v3889_v15  ;;  %v3926_v15 = vld [vmem:[%s5162_s17 + $0x4] ss:$8 sps:$4 sm:$0xff]  }
0x1105   :  { %2601 = vmatpush1.bf16.msra.mxu0 %v3887_v37  ;;  %v3924_v37 = vld [vmem:[%s5162_s17] ss:$8 sps:$4 sm:$0xff]  }
0x1106   :  { %2602 = vmatprep.subr.bf16.mxu0 %v3895_v39  ;;  %v3927_v39 = vld [vmem:[%s5162_s17 + $0x10] ss:$8 sps:$4 sm:$0xff]  }
0x1109   :  { %2603 = vmatpush1.bf16.msra.mxu0 %v3893_v41 }
0x110a   :  { %2604 = vmatprep.subr.bf16.mxu0 %v3901_v43 }
0x110d   :  { %2605 = vmatpush1.bf16.msra.mxu0 %v3899_v46 }
0x110e   :  { %2606 = vmatprep.subr.bf16.mxu0 %v3907_v48 }
0x1111   :  { %2607 = vmatpush1.bf16.msra.mxu0 %v3905_v51  ;;  %v3930_v51 = vld [vmem:[%s5162_s17 + $0x20] ss:$8 sps:$4 sm:$0xff]  }
0x1112   :  { %2940 = vmatprep.subr.bf16.mxu0 %v3926_v15 }
0x11c7   :  { %v2334_v22 = vpop.f32.mrb[40].mxu0 }
0x11c8   :  { %v4924_v23 = vadd.f32 %v2334_v22, %v4679_v19  ;;  %v3697_v49 = vpop.f32.mrb[41].mxu0  ;;  %v3878_v19 = vld [vmem:[%s5131_s6 + $0x160] ss:$16 sps:$4 sm:$0xff]  }
0x11c9   :  { %v2337_v24 = vpop.f32.mrb[42].mxu0  ;;  %2558 = vmatpush1.bf16.msra.mxu1 %v3878_v19 }
0x11ca   :  { %v3698_v25 = vpop.f32.mrb[43].mxu0  ;;  %v2341_v26 = vmul.f32 %v4924_v23, %v4924_v23  ;;  %2559 = vmatprep.subr.bf16.mxu1 %v3886_v36 }
0x11cc   :  { %2342 = vadd.xlane.f32.xlu0 %v2341_v26 }
0x11cd   :  { %2560 = vmatpush1.bf16.msra.mxu1 %v3884_v34 }
0x11ce   :  { %2561 = vmatprep.subr.bf16.mxu1 %v3892_v38  ;;  %v3929_v38 = vld [vmem:[%s5162_s17 + $0x14] ss:$8 sps:$4 sm:$0xff]  }
0x11d1   :  { %2562 = vmatpush1.bf16.msra.mxu1 %v3890_v40 }
0x11d2   :  { %2563 = vmatprep.subr.bf16.mxu1 %v3898_v42 }
0x11d5   :  { %2564 = vmatpush1.bf16.msra.mxu1 %v3896_v44 }
0x11d6   :  { %2565 = vmatprep.subr.bf16.mxu1 %v3904_v47 }
0x11d9   :  { %2566 = vmatpush1.bf16.msra.mxu1 %v3902_v50  ;;  %v3932_v50 = vld [vmem:[%s5162_s17 + $0x24] ss:$8 sps:$4 sm:$0xff]  }
0x11da   :  { %3501 = vmatprep.subr.bf16.mxu1 %v3908_v58  ;;  %v3945_v58 = vld [vmem:[%s5162_s17 + $0x70] ss:$8 sps:$4 sm:$0xff]  }
0x1259   :  { %v2343_v52 = vpop.xlane.xlu0 %2342 }
0x125a   :  { %v2344_v53 = vmul.f32 0.0078125, %v2343_v52  ;;  %v3933_v52 = vld [vmem:[%s5162_s17 + $0x30] ss:$8 sps:$4 sm:$0xff]  }
0x125c   :  { %v2345_v54 = vadd.f32 1e-06, %v2344_v53  ;;  %v3938_v53 = vld [vmem:[%s5162_s17 + $0x44] ss:$8 sps:$4 sm:$0xff]  }
0x125e   :  { %3994 = vrsqrt.f32 %v2345_v54  ;;  %v3936_v54 = vld [vmem:[%s5162_s17 + $0x40] ss:$8 sps:$4 sm:$0xff]  }
0x1268   :  { %v3995_v55 = vpop.eup %3994 }
0x1269   :  { %v2347_v56 = vmul.f32 %v3995_v55, %v4924_v23  ;;  %v3941_v55 = vld [vmem:[%s5162_s17 + $0x54] ss:$8 sps:$4 sm:$0xff]  }
0x126b   :  { %v2356_v57 = vmul.f32 %v3279_v31, %v2347_v56  ;;  %v3939_v31 = vld [vmem:[%s5162_s17 + $0x50] ss:$8 sps:$4 sm:$0xff]   ;;  %v3944_v56 = vld [vmem:[%s5162_s17 + $0x64] ss:$8 sps:$4 sm:$0xff]  }
0x126d   :  { %v2357_v28 = vpack.c.bf16 %v2356_v57, %v2356_v57  ;;  %v3942_v57 = vld [vmem:[%s5162_s17 + $0x60] ss:$8 sps:$4 sm:$0xff]  }
0x126f   :  { %2584 = vmatmul.mubr.bf16.vlgmr.msra.gmra.mrb[56].mxu1 %v2357_v28  ;;  %2625 = vmatmul.mubr.bf16.vlgmr.msra.gmra.mrb[44].mxu0 %v2357_v28  ;;  %v3947_v28 = vld [vmem:[%s5162_s17 + $0x74] ss:$8 sps:$4 sm:$0xff]  }
0x1270   :  { %2972 = vmatprep.mubr.bf16.mxu0 %v4070_v45  ;;  %3502 = vmatpush3.bf16.msra.mxu1 %v3909_v59  ;;  %v3912_v45 = vld [vmem:[%s5161_s26 + $0xd0] sm:$0xff]  }
0x1271   :  { %3503 = vmatprep.subr.bf16.mxu1 %v3910_v60  ;;  %2941 = vmatpush1.bf16.msra.mxu0 %v3924_v37 }
0x1272   :  { %2942 = vmatprep.subr.bf16.mxu0 %v3929_v38 }
0x1274   :  { %3504 = vmatpush3.bf16.msra.mxu1 %v3911_v62 }
0x1275   :  { %3505 = vmatprep.subr.bf16.mxu1 %v3912_v45  ;;  %2943 = vmatpush1.bf16.msra.mxu0 %v3927_v39 }
0x1276   :  { %2944 = vmatprep.subr.bf16.mxu0 %v3932_v50 }
0x1278   :  { %3506 = vmatpush3.bf16.msra.mxu1 %v3913_v63  ;;  %v3394_v63 = vld [vmem:[%s5163_s29] ss:$0 sm:$0xff] }
0x1279   :  { %3507 = vmatprep.subr.bf16.mxu1 %v3914_v0  ;;  %2945 = vmatpush1.bf16.msra.mxu0 %v3930_v51 }
0x127c   :  { %3508 = vmatpush3.bf16.msra.mxu1 %v3915_v1 }
0x127d   :  { %3509 = vmatprep.subr.bf16.mxu1 %v3916_v3 }
0x1280   :  { %3510 = vmatpush3.bf16.msra.mxu1 %v3917_v2 }
0x1281   :  { %3511 = vmatprep.subr.bf16.mxu1 %v3918_v4 }
0x1284   :  { %3512 = vmatpush3.bf16.msra.mxu1 %v3919_v5  ;;  %v4078_v5 = vmov 1966171168  }
0x1285   :  { %3513 = vmatprep.subr.bf16.mxu1 %v3920_v6  ;;  %v2985_v6 = vunpack.c.l.s4 %v4078_v5 }
0x1288   :  { %3514 = vmatpush3.bf16.msra.mxu1 %v3921_v35  ;;  %v2986_v35 = vunpack.c.0.s8 %v2985_v6 }
0x1289   :  { %3515 = vmatprep.subr.bf16.mxu1 %v3922_v10 }
0x128c   :  { %3516 = vmatpush3.bf16.msra.mxu1 %v3923_v11  ;;  %v2989_v11 = vsub.s32 %v2986_v35, %v4389_v30 }
0x1342   :  { %v2585_v12 = vpop.f32.mrb[56].mxu1  ;;  %v2626_v13 = vpop.f32.mrb[44].mxu0 }
0x1343   :  { %v3344_v14 = vmul.f32 -1.442695, %v2585_v12  ;;  %v2587_v16 = vpop.f32.mrb[57].mxu1  ;;  %v2628_v17 = vpop.f32.mrb[45].mxu0 }
0x1344   :  { %v3345_v18 = vmul.f32 -1.442695, %v2587_v16  ;;  %v2589_v20 = vpop.f32.mrb[58].mxu1  ;;  %v2630_v7 = vpop.f32.mrb[46].mxu0 }
0x1345   :  { %3996 = vpow2.f32 %v3344_v14  ;;  %v2590_v8 = vpop.f32.mrb[59].mxu1  ;;  %v2631_v9 = vpop.f32.mrb[47].mxu0 }
0x1346   :  { %3998 = vpow2.f32 %v3345_v18  ;;  %v3009_v9 = vadd.s32 128, %v4392_v32 }
0x134f   :  { %v3997_v21 = vpop.eup %3996 }
0x1350   :  { %v3999_v22 = vpop.eup %3998  ;;  %v2639_v49 = vadd.f32 1.0, %v3997_v21 }
0x1351   :  { %v2640_v24 = vadd.f32 1.0, %v3999_v22 }
0x1352   :  { %4000 = vrcp.f32 %v2639_v49 }
0x1353   :  { %4002 = vrcp.f32 %v2640_v24 }
0x135c   :  { %v4001_v25 = vpop.eup %4000 }
0x135d   :  { %v4003_v26 = vpop.eup %4002  ;;  %v2645_v27 = vmul.f32 %v4001_v25, %v2585_v12 }
0x135e   :  { %v2646_v61 = vmul.f32 %v4003_v26, %v2587_v16 }
0x135f   :  { %v2647_v19 = vmul.f32 %v2645_v27, %v2626_v13 }
0x1360   :  { %v2648_v33 = vmul.f32 %v2646_v61, %v2628_v17 }
0x1361   :  { %v2649_v36 = vpack.c.bf16 %v2647_v19, %v2647_v19 }
0x1362   :  { %v2650_v34 = vpack.c.bf16 %v2648_v33, %v2648_v33 }
0x1364   :  { %2812 = vmatprep.mubr.bf16.mxu1 %v2650_v34 }
0x1365   :  { %2813 = vmatmul.mubr.bf16.vlgmr.msra.gmra.mrb[60].mxu1 %v2649_v36 }
0x1438   :  { %v3517_v40 = vpop.f32.mrb[60].mxu1 }
0x1439   :  { %v3518_v41 = vpop.f32.mrb[61].mxu1 }
0x143a   :  { %v3519_v42 = vadd.f32 %v3518_v41, %v3517_v40  ;;  %v3520_v43 = vpop.f32.mrb[62].mxu1 }
0x143b   :  { %v3521_v44 = vpop.f32.mrb[63].mxu1 }
0x143c   :  { %v2820_v46 = vadd.f32 %v3519_v42, %v4924_v23  ;;  %v3935_v23 = vld [vmem:[%s5162_s17 + $0x34] ss:$8 sps:$4 sm:$0xff]   ;;  %s4079_s17 = smov [#allocation5]  }
0x143d   :  { %2946 = vmatprep.subr.bf16.mxu0 %v3935_v23  ;;  %s3040_s30 = sshll.u32 %s4079_s17, 4  ;;  %s3041_s30 = int_to_ptr.vmem [resolvable:$true] %s3040_s30 }
0x143e   :  { %v2821_v47 = vmul.f32 %v2820_v46, %v2820_v46  ;;  %2947 = vmatpush1.bf16.msra.mxu0 %v3933_v52  ;;  %s4018_s2 = scalar_lea.vmem %s3041_s30, 32  ;;  %p4023_p6 = scmp.lt.s32.totalorder %s3041_s30, %s3041_s30 }
0x143f   :  { %2948 = vmatprep.subr.bf16.mxu0 %v3938_v53  ;;  %p4019_p5 = scmp.ne.s32.totalorder %s3041_s30, %s4018_s2  ;;  %p4024_p7 = scmp.lt.s32.totalorder %s4018_s2, %s4018_s2 }
0x1440   :  { %v2823_v48 = vsel %vm2822_vm13, %v2821_v47, 0.0 }
0x1441   :  { %2824 = vadd.xlane.f32.xlu1 %v2823_v48  ;;  %p4025_p8 = por %p4024_p7, %p4023_p6 }
0x1442   :  { %2949 = vmatpush1.bf16.msra.mxu0 %v3936_v54 }
0x1443   :  { %2950 = vmatprep.subr.bf16.mxu0 %v3941_v55  ;;  %p4026_p9 = pnand %p4025_p8, %p4019_p5 }
0x1446   :  { %2951 = vmatpush1.bf16.msra.mxu0 %v3939_v31 }
0x1447   :  { %2952 = vmatprep.subr.bf16.mxu0 %v3944_v56 }
0x144a   :  { %2953 = vmatpush1.bf16.msra.mxu0 %v3942_v57 }
0x144b   :  { %2954 = vmatprep.subr.bf16.mxu0 %v3947_v28 }
0x144e   :  { %2955 = vmatpush1.bf16.msra.mxu0 %v3945_v58 }
0x14ce   :  { %v2825_v59 = vpop.xlane.xlu1 %2824 }
0x14cf   :  { %v2826_v60 = vmul.f32 0.0078125, %v2825_v59 }
0x14d1   :  { %v2827_v62 = vadd.f32 1e-06, %v2826_v60 }
0x14d3   :  { %4004 = vrsqrt.f32 %v2827_v62 }
0x14dd   :  { %v4005_v45 = vpop.eup %4004 }
0x14de   :  { %v2829_v0 = vmul.f32 %v4005_v45, %v2820_v46 }
0x14e0   :  { %v2837_v1 = vmul.f32 %v3394_v63, %v2829_v0 }
0x14e2   :  { %v2838_v3 = vpack.c.bf16 %v2837_v1, %v2837_v1 }
0x14e4   :  { %v2856_v2 = vshrl.u32 %v2838_v3, 16 }
0x14e6   :  { %v2858_v4 = vrot.slane %v2856_v2, 3 }
0x14e8   :  { %2973 = vmatmul.mubr.bf16.vlgmr.msra.gmra.mrb[48].mxu0 %v2858_v4 }
0x15bb   :  { %v2974_v10 = vpop.f32.mrb[48].mxu0 }
0x15bc   :  { %v2976_v12 = vpop.f32.mrb[49].mxu0  ;;  %v3004_v13 = vsel %vm115_vm0, %v2974_v10, -inf }
0x15bd   :  { %v2983_v14 = vcombine.low %v2974_v10, %v2976_v12  ;;  %v2978_v16 = vpop.f32.mrb[50].mxu0  ;;  %v3005_v17 = vsel %vm115_vm0, %v2976_v12, -inf }
0x15be   :  { %v2979_v18 = vpop.f32.mrb[51].mxu0  ;;  %v3006_v20 = vmax.f32 %v3004_v13, %v3005_v17 }
0x15bf   :  { %v2990_v7 = vrot.slane %v2983_v14, %v2989_v11 }
0x15c0   :  { %3007 = vmax.xlane.f32.xlu0 %v3006_v20 }
0x15c1   :  { %v2997_v8 = vrot.slane %v2990_v7, %v2989_v11 }
0x15c3   :  { %3003 = vst.msk [vmem:[#allocation5] sm:$0x3] %vm3001_vm14, %v2997_v8 }
0x164d   :  { %v3008_v21 = vpop.xlane.xlu0 %3007 }
0x164e   :  { %vm3010_vm15 = vcmp.eq.f32.partialorder %v2974_v10, %v3008_v21  ;;  %vm3011_vm1 = vcmp.eq.f32.partialorder %v2976_v12, %v3008_v21 }
0x164f   :  { %v3012_v30 = vsel %vm3010_vm15, %v4392_v32, 256  ;;  %v3013_v22 = vsel %vm3011_vm1, %v3009_v9, 256 }
0x1650   :  { %v3014_v49 = vsel %vm115_vm0, %v3012_v30, 2147483647  ;;  %v3015_v24 = vsel %vm115_vm0, %v3013_v22, 2147483647 }
0x1651   :  { %vm3016_vm2 = vcmp.lt.s32.totalorder %v3014_v49, %v3015_v24 }
0x1652   :  { %v3017_v25 = vsel %vm3016_vm2, %v3014_v49, %v3015_v24 }
0x1653   :  { %v3019_v26 = vshra.s32 %v3017_v25, 16  ;;  %v3018_v29 = vand.u32 65535, %v3017_v25 }
0x1655   :  { %v3021_v27 = vcvt.s32.f32 %v3019_v26  ;;  %v3020_v19 = vcvt.s32.f32 %v3018_v29 }
0x1657   :  { %3022 = vmin.xlane.f32.xlu0 %v3021_v27 }
0x16e4   :  { %v3023_v61 = vpop.xlane.xlu0 %3022 }
0x16e5   :  { %vm3024_vm3 = vcmp.eq.f32.partialorder %v3021_v27, %v3023_v61 }
0x16e6   :  { %v3025_v33 = vsel %vm3024_vm3, %v3020_v19, inf }
0x16e7   :  { %3026 = vmin.xlane.f32.xlu1 %v3025_v33 }
0x16e8   :  { %4029 = shalt.err (!%p4026_p9)
}
0x16e9   :  { %s5164_s15 = sld [smem:[#allocation17_spill]] }
0x16ef   :  { %s4030_s24 = scalar_lea.hbm %s5164_s15, 32 }
0x16f0   :  { %p4031_p10 = scmp.ne.s32.totalorder %s5164_s15, %s4030_s24  ;;  %p4034_p11 = scmp.lt.u32.totalorder %s4030_s24, %s5164_s15 }
0x16f2   :  { %p4036_p12 = pnand %p4034_p11, %p4031_p10 }
0x16f4   :  { %4039 = shalt.err (!%p4036_p12)
}
0x16f5   :  { %3043 = dma.vmem_to_hbm [thread:$0]  %s3041_s30, 32, %s5164_s15, [#allocation3]   ;;  %v3029_v32 = vcvt.f32.s32 %v3023_v61  ;;  %vm3032_vm0 = vcmask 0  }
0x16f6   :  { %s4080_s12 = smov [#allocation6]  }
0x16f7   :  { %s3050_s4 = sshll.u32 %s4080_s12, 4  ;;  %v3030_v36 = vshll.u32 %v3029_v32, 16  ;;  %s3051_s4 = int_to_ptr.vmem [resolvable:$true] %s3050_s4 }
0x16f8   :  { %s4040_s28 = scalar_lea.vmem %s3051_s4, 16  ;;  %s4044_s27 = scalar_lea.vmem %s3051_s4, 32 }
0x16f9   :  { %p4041_p13 = scmp.ne.s32.totalorder %s3051_s4, %s4040_s28  ;;  %p4045_p0 = scmp.lt.s32.totalorder %s3051_s4, %s3051_s4 }
0x16fa   :  { %p4046_p1 = scmp.lt.s32.totalorder %s4044_s27, %s4040_s28 }
0x16fc   :  { %p4047_p2 = por %p4046_p1, %p4045_p0 }
0x16fe   :  { %p4048_p3 = pnand %p4047_p2, %p4041_p13 }
0x1774   :  { %v3027_v34 = vpop.xlane.xlu1 %3026 }
0x1775   :  { %v3028_v37 = vcvt.f32.s32 %v3027_v34 }
0x1777   :  { %v3031_v15 = vadd.s32 %v3030_v36, %v3028_v37 }
0x1779   :  { %3033 = vst.msk [vmem:[#allocation6] sm:$0x1] %vm3032_vm0, %v3031_v15 }
0x177a   :  { %4051 = shalt.err (!%p4048_p3)
}
0x177b   :  { %s5165_s8 = sld [smem:[#allocation18_spill]] }
0x1781   :  { %s4052_s13 = scalar_lea.hbm %s5165_s8, 16 }
0x1782   :  { %p4053_p4 = scmp.ne.s32.totalorder %s5165_s8, %s4052_s13  ;;  %p4056_p5 = scmp.lt.u32.totalorder %s4052_s13, %s5165_s8 }
0x1784   :  { %p4058_p6 = pnand %p4056_p5, %p4053_p4 }
0x1786   :  { %4061 = shalt.err (!%p4058_p6)
}
0x1787   :  { %3053 = dma.vmem_to_hbm [thread:$0]  %s3051_s4, 16, %s5165_s8, [#allocation7]  }
0x1788   :  { %4064 = dma.done.wait [#allocation3], 32  }
0x1789   :  { %4065 = vsyncadd [#allocation3], 4294967264 }
0x178a   :  { %4066 = dma.done.wait [#allocation7], 16  }
0x178b   :  { %4067 = vsyncadd [#allocation7], 4294967280 }
0x178c   :  { %3068 = vsyncpa [#allocation3], 1 }
0x178d   :  { %3069 = vsyncpa [#allocation7], 1 }
0x178e   :  { %3070 = vsyncpa [#allocation4], 1 }

</bundles_post_ra>
